<compile_context>
chip_gen: v7x
topology: tpu7x:2x2x1
jax: 0.10.0
libtpu: 0.0.40
codegen_flags: <defaults>
</compile_context>

<pallas_src>
import jax
import jax.numpy as jnp
from jax.experimental import pallas as pl
from jax.experimental.pallas import tpu as pltpu


def _make_vq_kernel(n_valid, tn, K):
    """Builds the per-tile kernel; n_valid / tn / K are trace-time constants."""

    needs_mask = (n_valid % tn) != 0

    def kernel(x_ref, w_ref, whsq_ref, q_ref, idx_ref, err_ref, cnt_ref):
        i = pl.program_id(0)

        x = x_ref[...].astype(jnp.float32)          # (tn, D)
        w = w_ref[...].astype(jnp.float32)          # (K, D)  (constant block,
                                                    #  DMA'd once, reused)
        w_half_sq = whsq_ref[...]                   # (1, K) = 0.5 * |w_k|^2

        # Reduced distance: 0.5|w|^2 - x.w   -> (tn, K)   (single MXU matmul)
        xw = jax.lax.dot_general(
            x, w,
            dimension_numbers=(((1,), (1,)), ((), ())),
            preferred_element_type=jnp.float32)
        dist = w_half_sq - xw

        # First-occurrence argmin along K (torch.argmin semantics).
        min_d = jnp.min(dist, axis=1, keepdims=True)                 # (tn, 1)
        col = jax.lax.broadcasted_iota(jnp.int32, dist.shape, 1)     # (tn, K)
        idx = jnp.min(jnp.where(dist == min_d, col, K), axis=1,
                      keepdims=True)                                 # (tn, 1)
        idx_ref[...] = idx

        # One-hot encodings; mask padded rows on the (only) ragged tile so
        # they contribute neither to counts nor (via q == x == 0) to the error.
        enc = (col == idx).astype(jnp.float32)                       # (tn, K)
        if needs_mask:
            rows = i * tn + jax.lax.broadcasted_iota(jnp.int32, (tn, 1), 0)
            enc = enc * (rows < n_valid).astype(jnp.float32)

        q = jnp.dot(enc, w, preferred_element_type=jnp.float32)      # (tn, D)
        q_ref[...] = q.astype(q_ref.dtype)

        # Lane-wide per-tile partials (sublane reduce only; no cross-lane
        # reduce and no read-modify-write of a (1,1) block in the hot loop).
        diff = q - x
        err_ref[0] = jnp.sum(diff * diff, axis=0, keepdims=True)     # (1, D)
        cnt_ref[0] = jnp.sum(enc, axis=0, keepdims=True)             # (1, K)

    return kernel


def vq_ema_forward(inputs_flat, embedding_weight, commitment_cost, *, tn=512):
    """Eval-mode forward of VectorQuantizerEMA.

    inputs_flat:      (N, D) float32
    embedding_weight: (K, D) float32
    Returns (loss, quantized (N, D), perplexity, encoding_indices (N, 1) int32)
    """
    N, D = inputs_flat.shape
    K = embedding_weight.shape[0]

    # Row tile: multiple of 8, never larger than the (rounded-up) problem.
    tn = max(8, (int(tn) // 8) * 8)
    tn = min(tn, ((N + 7) // 8) * 8)
    num_tiles = -(-N // tn)
    n_pad = num_tiles * tn

    x = inputs_flat
    if n_pad != N:
        x = jnp.pad(x, ((0, n_pad - N), (0, 0)))

    w = embedding_weight
    # Hoisted codebook norm term (computed once, passed as a (1, K) input).
    w_half_sq = (0.5 * jnp.sum(w.astype(jnp.float32) ** 2, axis=1))[None, :]

    kernel = _make_vq_kernel(N, tn, K)

    itemsize = jnp.dtype(inputs_flat.dtype).itemsize
    lanes = 128
    # Rough VMEM budget: double-buffered x/q tiles, double-buffered codebook,
    # padded (tn,1) index block, partial-output blocks, (tn,K) temporaries.
    vmem_est = (
        2 * tn * D * itemsize
        + 2 * tn * D * itemsize
        + 2 * K * D * 4
        + 2 * max(K, lanes) * 8 * 4
        + 2 * tn * lanes * 4
        + 4 * (max(D, lanes) + max(K, lanes)) * 8 * 4
        + 6 * tn * max(K, lanes) * 4
    )
    vmem_limit = int(min(64 * 2**20, max(32 * 2**20, 2 * vmem_est)))

    cost = pl.CostEstimate(
        flops=int(4 * N * K * D),          # two (N,K,D) matmuls
        transcendentals=0,
        bytes_accessed=int((2 * n_pad * D + K * D) * itemsize
                           + n_pad * 4 + num_tiles * (D + K) * 4 + K * 4),
    )

    q_pad, idx_pad, err_part, cnt_part = pl.pallas_call(
        kernel,
        out_shape=(
            jax.ShapeDtypeStruct((n_pad, D), inputs_flat.dtype),   # quantized
            jax.ShapeDtypeStruct((n_pad, 1), jnp.int32),           # indices
            jax.ShapeDtypeStruct((num_tiles, 1, D), jnp.float32),  # sq-err partials
            jax.ShapeDtypeStruct((num_tiles, 1, K), jnp.float32),  # count partials
        ),
        grid_spec=pltpu.PrefetchScalarGridSpec(
            num_scalar_prefetch=0,
            grid=(num_tiles,),
            in_specs=[
                pl.BlockSpec((tn, D), lambda i: (i, 0)),    # input rows tile
                pl.BlockSpec((K, D), lambda i: (0, 0)),     # full codebook
                pl.BlockSpec((1, K), lambda i: (0, 0)),     # 0.5*|w|^2 (hoisted)
            ],
            out_specs=[
                pl.BlockSpec((tn, D), lambda i: (i, 0)),
                pl.BlockSpec((tn, 1), lambda i: (i, 0)),
                pl.BlockSpec((1, 1, D), lambda i: (i, 0, 0)),
                pl.BlockSpec((1, 1, K), lambda i: (i, 0, 0)),
            ],
        ),
        compiler_params=pltpu.CompilerParams(
            dimension_semantics=("parallel",),
            vmem_limit_bytes=vmem_limit,
        ),
        cost_estimate=cost,
    )(x, w, w_half_sq)

    quantized = q_pad[:N]
    encoding_indices = idx_pad[:N]

    # F.mse_loss(quantized.detach(), inputs); straight-through value == quantized.
    e_latent_loss = jnp.sum(err_part) / (N * D)
    loss = commitment_cost * e_latent_loss

    avg_probs = jnp.sum(cnt_part, axis=(0, 1)) / N
    perplexity = jnp.exp(-jnp.sum(avg_probs * jnp.log(avg_probs + 1e-10)))

    return loss, quantized, perplexity, encoding_indices


if __name__ == "__main__":
    key = jax.random.PRNGKey(0)
    k_x, k_w = jax.random.split(key)

    # Shapes consistent with the module: embedding_dim D = 64 and 16x16
    # spatial (indices2quantized hard-codes (B, 16, 16, 64)); K = 32 codes.
    B, C, H, W = 2, 64, 16, 16
    K, D = 32, C
    commitment_cost = 0.25

    x_nchw = jax.random.normal(k_x, (B, C, H, W), dtype=jnp.float32)
    embedding_weight = jax.random.normal(k_w, (K, D), dtype=jnp.float32)

    # NCHW -> NHWC -> (N, D), the layout forward() operates on.
    inputs_flat = jnp.transpose(x_nchw, (0, 2, 3, 1)).reshape(-1, D)
    N = inputs_flat.shape[0]

    # Pure-JAX reference (same math as the PyTorch forward, eval mode).
    dist_ref = (jnp.sum(inputs_flat ** 2, axis=1, keepdims=True)
                + jnp.sum(embedding_weight ** 2, axis=1)
                - 2.0 * inputs_flat @ embedding_weight.T)
    idx_ref = jnp.argmin(dist_ref, axis=1)
    q_ref = embedding_weight[idx_ref]
    loss_ref = commitment_cost * jnp.mean((q_ref - inputs_flat) ** 2)
    probs_ref = jnp.mean(jax.nn.one_hot(idx_ref, K, dtype=jnp.float32), axis=0)
    ppl_ref = jnp.exp(-jnp.sum(probs_ref * jnp.log(probs_ref + 1e-10)))

    # Run once with the default large tile (single tile here) and once with a
    # tile that does not divide N, exercising the padded/masked last tile.
    for tile in (512, 192):
        loss, quantized, perplexity, indices = vq_ema_forward(
            inputs_flat, embedding_weight, commitment_cost, tn=tile)
        jax.block_until_ready((loss, quantized, perplexity, indices))

        assert indices.shape == (N, 1)
        assert jnp.all(indices[:, 0] == idx_ref.astype(jnp.int32))
        assert jnp.allclose(quantized, q_ref, atol=1e-5, rtol=1e-5)
        assert jnp.allclose(loss, loss_ref, atol=1e-5, rtol=1e-5)
        assert jnp.allclose(perplexity, ppl_ref, atol=1e-4, rtol=1e-4)

    print("KERNEL_OK")
</pallas_src>

<mosaic_0001>
module attributes {stable_mosaic.version = 11 : i64} {
  func.func @kernel(%arg0: i32, %arg1: memref<512x64xf32, #tpu.memory_space<vmem>>, %arg2: memref<32x64xf32, #tpu.memory_space<vmem>>, %arg3: memref<1x32xf32, #tpu.memory_space<vmem>>, %arg4: memref<512x64xf32, #tpu.memory_space<vmem>>, %arg5: memref<512x1xi32, #tpu.memory_space<vmem>>, %arg6: memref<1x1x64xf32, #tpu.memory_space<vmem>>, %arg7: memref<1x1x32xf32, #tpu.memory_space<vmem>>) attributes {dimension_semantics = [#tpu.dimension_semantics<parallel>], iteration_bounds = array<i64: 1>, scalar_prefetch = 0 : i64, scratch_operands = 0 : i64, tpu.core_type = #tpu.core_type<tc>, window_params = [{transform_indices = @transform_0, window_bounds = array<i64: 512, 64>}, {pipeline_mode = #tpu.pipeline_mode<synchronous>, transform_indices = @transform_1, window_bounds = array<i64: 32, 64>}, {pipeline_mode = #tpu.pipeline_mode<synchronous>, transform_indices = @transform_2, window_bounds = array<i64: 1, 32>}, {transform_indices = @transform_3, window_bounds = array<i64: 512, 64>}, {transform_indices = @transform_4, window_bounds = array<i64: 512, 1>}, {transform_indices = @transform_5, window_bounds = array<i64: 1, 1, 64>}, {transform_indices = @transform_6, window_bounds = array<i64: 1, 1, 32>}]} {
    %c0 = arith.constant 0 : index
    %c0_0 = arith.constant 0 : index
    %0 = vector.load %arg1[%c0, %c0_0] : memref<512x64xf32, #tpu.memory_space<vmem>>, vector<512x64xf32>
    %c0_1 = arith.constant 0 : index
    %c0_2 = arith.constant 0 : index
    %1 = vector.load %arg2[%c0_1, %c0_2] : memref<32x64xf32, #tpu.memory_space<vmem>>, vector<32x64xf32>
    %c0_3 = arith.constant 0 : index
    %c0_4 = arith.constant 0 : index
    %2 = vector.load %arg3[%c0_3, %c0_4] : memref<1x32xf32, #tpu.memory_space<vmem>>, vector<1x32xf32>
    %cst = arith.constant dense<0.000000e+00> : vector<512x32xf32>
    %3 = tpu.matmul %0, %1, %cst {dimension_numbers = #tpu.dot_dimension_numbers<[1], [1], [0], [0], [0, 0, 1, 0], [], []>} : vector<512x64xf32>, vector<32x64xf32>, vector<512x32xf32> -> vector<512x32xf32>
    %4 = vector.broadcast %2 : vector<1x32xf32> to vector<512x32xf32>
    %5 = arith.subf %4, %3 : vector<512x32xf32>
    %cst_5 = arith.constant dense<0x7F800000> : vector<512xf32>
    %6 = vector.multi_reduction <minimumf>, %5, %cst_5 [1] : vector<512x32xf32> to vector<512xf32>
    %7 = vector.shape_cast %6 : vector<512xf32> to vector<512x1xf32>
    %8 = tpu.iota {dimensions = array<i32: 1>} : vector<512x32xi32>
    %9 = vector.broadcast %7 : vector<512x1xf32> to vector<512x32xf32>
    %10 = arith.cmpf oeq, %5, %9 : vector<512x32xf32>
    %c32_i32 = arith.constant 32 : i32
    %11 = vector.broadcast %c32_i32 : i32 to vector<512x32xi32>
    %12 = arith.select %10, %8, %11 : vector<512x32xi1>, vector<512x32xi32>
    %cst_6 = arith.constant dense<2147483647> : vector<512xi32>
    %13 = vector.multi_reduction <minsi>, %12, %cst_6 [1] : vector<512x32xi32> to vector<512xi32>
    %14 = vector.shape_cast %13 : vector<512xi32> to vector<512x1xi32>
    %c0_7 = arith.constant 0 : index
    %c0_8 = arith.constant 0 : index
    %15 = vector.load %arg5[%c0_7, %c0_8] : memref<512x1xi32, #tpu.memory_space<vmem>>, vector<512x1xi32>
    tpu.vector_store %arg5[%c0_7, %c0_8], %14 {strides = array<i32>} : memref<512x1xi32, #tpu.memory_space<vmem>>, vector<512x1xi32>,
    %16 = vector.broadcast %14 : vector<512x1xi32> to vector<512x32xi32>
    %17 = arith.cmpi eq, %8, %16 : vector<512x32xi32>
    %18 = arith.extui %17 : vector<512x32xi1> to vector<512x32xi32>
    %19 = arith.sitofp %18 : vector<512x32xi32> to vector<512x32xf32>
    %cst_9 = arith.constant dense<0.000000e+00> : vector<512x64xf32>
    %20 = tpu.matmul %19, %1, %cst_9 {dimension_numbers = #tpu.dot_dimension_numbers<[1], [0], [0], [1], [0, 0, 1, 1], [], []>} : vector<512x32xf32>, vector<32x64xf32>, vector<512x64xf32> -> vector<512x64xf32>
    %c0_10 = arith.constant 0 : index
    %c0_11 = arith.constant 0 : index
    %21 = vector.load %arg4[%c0_10, %c0_11] : memref<512x64xf32, #tpu.memory_space<vmem>>, vector<512x64xf32>
    tpu.vector_store %arg4[%c0_10, %c0_11], %20 {strides = array<i32>} : memref<512x64xf32, #tpu.memory_space<vmem>>, vector<512x64xf32>,
    %22 = arith.subf %20, %0 : vector<512x64xf32>
    %23 = arith.mulf %22, %22 : vector<512x64xf32>
    %cst_12 = arith.constant dense<0.000000e+00> : vector<64xf32>
    %24 = vector.multi_reduction <add>, %23, %cst_12 [0] : vector<512x64xf32> to vector<64xf32>
    %25 = vector.shape_cast %24 : vector<64xf32> to vector<1x64xf32>
    %c0_13 = arith.constant 0 : index
    %c0_14 = arith.constant 0 : index
    %c0_15 = arith.constant 0 : index
    %26 = vector.load %arg6[%c0_13, %c0_14, %c0_15] : memref<1x1x64xf32, #tpu.memory_space<vmem>>, vector<1x1x64xf32>
    %27 = vector.shape_cast %26 : vector<1x1x64xf32> to vector<1x64xf32>
    %28 = vector.shape_cast %25 : vector<1x64xf32> to vector<1x1x64xf32>
    tpu.vector_store %arg6[%c0_13, %c0_14, %c0_15], %28 {strides = array<i32>} : memref<1x1x64xf32, #tpu.memory_space<vmem>>, vector<1x1x64xf32>,
    %cst_16 = arith.constant dense<0.000000e+00> : vector<32xf32>
    %29 = vector.multi_reduction <add>, %19, %cst_16 [0] : vector<512x32xf32> to vector<32xf32>
    %30 = vector.shape_cast %29 : vector<32xf32> to vector<1x32xf32>
    %c0_17 = arith.constant 0 : index
    %c0_18 = arith.constant 0 : index
    %c0_19 = arith.constant 0 : index
    %31 = vector.load %arg7[%c0_17, %c0_18, %c0_19] : memref<1x1x32xf32, #tpu.memory_space<vmem>>, vector<1x1x32xf32>
    %32 = vector.shape_cast %31 : vector<1x1x32xf32> to vector<1x32xf32>
    %33 = vector.shape_cast %30 : vector<1x32xf32> to vector<1x1x32xf32>
    tpu.vector_store %arg7[%c0_17, %c0_18, %c0_19], %33 {strides = array<i32>} : memref<1x1x32xf32, #tpu.memory_space<vmem>>, vector<1x1x32xf32>,
    return
  }
  func.func @transform_0(%arg0: i32) -> (i32, i32) {
    %c0_i32 = arith.constant 0 : i32
    %c0_i32_0 = arith.constant 0 : i32
    return %arg0, %c0_i32 : i32, i32
  }
  func.func @transform_1(%arg0: i32) -> (i32, i32) {
    %c0_i32 = arith.constant 0 : i32
    %c0_i32_0 = arith.constant 0 : i32
    %c0_i32_1 = arith.constant 0 : i32
    return %c0_i32, %c0_i32_0 : i32, i32
  }
  func.func @transform_2(%arg0: i32) -> (i32, i32) {
    %c0_i32 = arith.constant 0 : i32
    %c0_i32_0 = arith.constant 0 : i32
    %c0_i32_1 = arith.constant 0 : i32
    return %c0_i32, %c0_i32_0 : i32, i32
  }
  func.func @transform_3(%arg0: i32) -> (i32, i32) {
    %c0_i32 = arith.constant 0 : i32
    %c0_i32_0 = arith.constant 0 : i32
    return %arg0, %c0_i32 : i32, i32
  }
  func.func @transform_4(%arg0: i32) -> (i32, i32) {
    %c0_i32 = arith.constant 0 : i32
    %c0_i32_0 = arith.constant 0 : i32
    return %arg0, %c0_i32 : i32, i32
  }
  func.func @transform_5(%arg0: i32) -> (i32, i32, i32) {
    %c0_i32 = arith.constant 0 : i32
    %c0_i32_0 = arith.constant 0 : i32
    %c0_i32_1 = arith.constant 0 : i32
    return %arg0, %c0_i32, %c0_i32_0 : i32, i32, i32
  }
  func.func @transform_6(%arg0: i32) -> (i32, i32, i32) {
    %c0_i32 = arith.constant 0 : i32
    %c0_i32_0 = arith.constant 0 : i32
    %c0_i32_1 = arith.constant 0 : i32
    return %arg0, %c0_i32, %c0_i32_0 : i32, i32, i32
  }
}

</mosaic_0001>

<bundles_post_ra>
// kernel: tpu_custom_call.1
= control target key start
LH: loop header
LB: loop body
LE: loop exit
PB: predicated region body
PF: predicated region fallthrough
CT: control target
= control target key end

     0   :  { %12 = vsyncpa [#allocation3], 0  ;;  %vm89_vm0 = vcmask 523264   ;;  %s6773_s0 = inlined_call_operand.vmem [shape: f32[512,64], index: 0, kind: input, shape index: {}]   ;;  %s6774_s1 = inlined_call_operand.vmem [shape: f32[32,64], index: 1, kind: input, shape index: {}]   ;;  %s6775_s2 = inlined_call_operand.vmem [shape: f32[1,32], index: 2, kind: input, shape index: {}]   ;;  %s6776_s3 = inlined_call_operand.vmem [shape: f32[512,64], index: 3, kind: output, shape index: {0}]   ;;  %s6777_s4 = inlined_call_operand.vmem [shape: s32[512,1], index: 4, kind: output, shape index: {1}]   ;;  %s6778_s5 = inlined_call_operand.hbm [shape: f32[1,1,64], index: 5, kind: output, shape index: {2}]   ;;  %s6779_s6 = inlined_call_operand.hbm [shape: f32[1,1,32], index: 6, kind: output, shape index: {3}]  }
   0x1   :  { %v84_v0 = vld [vmem:[%s6774_s1] sm:$0xff]  ;;  %v85_v1 = vld [vmem:[%s6774_s1 + $0x8] sm:$0xff]  ;;  %v86_v2 = vld [vmem:[%s6774_s1 + $0x10] sm:$0xff] }
   0x2   :  { %v3905_v3 = vpack.c.bf16 %v85_v1, %v84_v0  ;;  %vm3906_vm1 = vmpackc.low %vm89_vm0, %vm89_vm0  ;;  %v87_v4 = vld [vmem:[%s6774_s1 + $0x18] sm:$0xff]  ;;  %v20_v5 = vld [vmem:[%s6773_s0] sm:$0xff] }
   0x3   :  { %v3911_v6 = vpack.c.bf16 %v87_v4, %v86_v2  ;;  %3705 = vmatprep.mubr.msk.f32.mxu0 %vm89_vm0, %v20_v5  ;;  %v21_v7 = vld [vmem:[%s6773_s0 + $0x8] sm:$0xff]  ;;  %v22_v8 = vld [vmem:[%s6773_s0 + $0x10] sm:$0xff]  ;;  %v23_v9 = vld [vmem:[%s6773_s0 + $0x18] sm:$0xff] }
   0x4   :  { %3907 = vmatprep.subr.msk.bf16.mxu0 %vm3906_vm1, %v3905_v3  ;;  %3918 = vmatprep.subr.bf16.mxu1 %v3905_v3  ;;  %v24_v10 = vld [vmem:[%s6773_s0 + $0x20] sm:$0xff] }
   0x5   :  { %3910 = vmatpush3.bf16.xpose.msk.msra.mxu0 %vm3906_vm1, %v3905_v3  ;;  %3920 = vmatpush3.bf16.msra.mxu1 %v3905_v3 }
   0x6   :  { %3913 = vmatprep.subr.msk.bf16.mxu0 %vm3906_vm1, %v3911_v6  ;;  %3922 = vmatprep.subr.bf16.mxu1 %v3911_v6 }
   0x9   :  { %3924 = vmatpush3.bf16.msra.mxu1 %v3911_v6 }
   0xd   :  { %3916 = vmatpush3.bf16.xpose.msk.msra.mxu0 %vm3906_vm1, %v3911_v6 }
  0x14   :  { %3706 = vmatmul.mubr.msk.f32.vlgmr.msra.gmra.mrb[0].mxu0 %vm89_vm0, %v21_v7 }
  0x15   :  { %3708 = vmatprep.mubr.msk.f32.mxu0 %vm89_vm0, %v22_v8 }
  0x18   :  { %3709 = vmatmul.mubr.msk.f32.gmra.mrb[2].mxu0 %vm89_vm0, %v23_v9 }
  0x19   :  { %13 = vsyncpa [#allocation5], 0  ;;  %3711 = vmatprep.mubr.msk.f32.mxu0 %vm89_vm0, %v24_v10  ;;  %v25_v11 = vld [vmem:[%s6773_s0 + $0x28] sm:$0xff]  ;;  %v26_v12 = vld [vmem:[%s6773_s0 + $0x30] sm:$0xff]  ;;  %vm749_vm2 = vcmask 261120   ;;  %s4041_s23 = smov [#allocation4]  }
  0x1a   :  { %v27_v13 = vld [vmem:[%s6773_s0 + $0x38] sm:$0xff]  ;;  %v28_v14 = vld [vmem:[%s6773_s0 + $0x40] sm:$0xff]  ;;  %v29_v15 = vld [vmem:[%s6773_s0 + $0x48] sm:$0xff]  ;;  %s3348_s24 = sshll.u32 %s4041_s23, 4  ;;  %s3349_s24 = int_to_ptr.vmem [resolvable:$true] %s3348_s24 }
  0x1b   :  { %v30_v16 = vld [vmem:[%s6773_s0 + $0x50] sm:$0xff]  ;;  %v31_v17 = vld [vmem:[%s6773_s0 + $0x58] sm:$0xff]  ;;  %v32_v18 = vld [vmem:[%s6773_s0 + $0x60] sm:$0xff]  ;;  %s3992_s25 = scalar_lea.vmem %s3349_s24, 16  ;;  %s3996_s26 = scalar_lea.vmem %s3349_s24, 32 }
  0x1c   :  { %3712 = vmatmul.mubr.msk.f32.gmra.mrb[4].mxu0 %vm89_vm0, %v25_v11  ;;  %v33_v19 = vld [vmem:[%s6773_s0 + $0x68] sm:$0xff]  ;;  %v34_v20 = vld [vmem:[%s6773_s0 + $0x70] sm:$0xff]  ;;  %v35_v21 = vld [vmem:[%s6773_s0 + $0x78] sm:$0xff]  ;;  %p3993_p0 = scmp.ne.s32.totalorder %s3349_s24, %s3992_s25  ;;  %p3997_p1 = scmp.lt.s32.totalorder %s3349_s24, %s3349_s24 }
  0x1d   :  { %3714 = vmatprep.mubr.msk.f32.mxu0 %vm89_vm0, %v26_v12  ;;  %v36_v22 = vld [vmem:[%s6773_s0 + $0x80] sm:$0xff]  ;;  %v37_v23 = vld [vmem:[%s6773_s0 + $0x88] sm:$0xff]  ;;  %v38_v24 = vld [vmem:[%s6773_s0 + $0x90] sm:$0xff]  ;;  %p3998_p2 = scmp.lt.s32.totalorder %s3996_s26, %s3992_s25 }
  0x1e   :  { %v39_v25 = vld [vmem:[%s6773_s0 + $0x98] sm:$0xff]  ;;  %v40_v26 = vld [vmem:[%s6773_s0 + $0xa0] sm:$0xff]  ;;  %v41_v27 = vld [vmem:[%s6773_s0 + $0xa8] sm:$0xff] }
  0x1f   :  { %v42_v28 = vld [vmem:[%s6773_s0 + $0xb0] sm:$0xff]  ;;  %v43_v29 = vld [vmem:[%s6773_s0 + $0xb8] sm:$0xff]  ;;  %v44_v30 = vld [vmem:[%s6773_s0 + $0xc0] sm:$0xff]  ;;  %p3999_p3 = por %p3998_p2, %p3997_p1 }
  0x20   :  { %3715 = vmatmul.mubr.msk.f32.gmra.mrb[6].mxu0 %vm89_vm0, %v27_v13  ;;  %v45_v31 = vld [vmem:[%s6773_s0 + $0xc8] sm:$0xff]  ;;  %v46_v32 = vld [vmem:[%s6773_s0 + $0xd0] sm:$0xff]  ;;  %v47_v33 = vld [vmem:[%s6773_s0 + $0xd8] sm:$0xff] }
  0x21   :  { %3717 = vmatprep.mubr.msk.f32.mxu0 %vm89_vm0, %v28_v14  ;;  %v48_v34 = vld [vmem:[%s6773_s0 + $0xe0] sm:$0xff]  ;;  %v49_v35 = vld [vmem:[%s6773_s0 + $0xe8] sm:$0xff]  ;;  %v50_v36 = vld [vmem:[%s6773_s0 + $0xf0] sm:$0xff]  ;;  %p4000_p4 = pnand %p3999_p3, %p3993_p0 }
  0x22   :  { %v51_v37 = vld [vmem:[%s6773_s0 + $0xf8] sm:$0xff]  ;;  %v52_v38 = vld [vmem:[%s6773_s0 + $0x100] sm:$0xff]  ;;  %v53_v39 = vld [vmem:[%s6773_s0 + $0x108] sm:$0xff] }
  0x23   :  { %v54_v40 = vld [vmem:[%s6773_s0 + $0x110] sm:$0xff]  ;;  %v55_v41 = vld [vmem:[%s6773_s0 + $0x118] sm:$0xff]  ;;  %v56_v42 = vld [vmem:[%s6773_s0 + $0x120] sm:$0xff] }
  0x24   :  { %3718 = vmatmul.mubr.msk.f32.gmra.mrb[8].mxu0 %vm89_vm0, %v29_v15  ;;  %v57_v43 = vld [vmem:[%s6773_s0 + $0x128] sm:$0xff]  ;;  %v58_v44 = vld [vmem:[%s6773_s0 + $0x130] sm:$0xff]  ;;  %v59_v45 = vld [vmem:[%s6773_s0 + $0x138] sm:$0xff] }
  0x25   :  { %3720 = vmatprep.mubr.msk.f32.mxu0 %vm89_vm0, %v30_v16  ;;  %v60_v46 = vld [vmem:[%s6773_s0 + $0x140] sm:$0xff]  ;;  %v61_v47 = vld [vmem:[%s6773_s0 + $0x148] sm:$0xff]  ;;  %v62_v48 = vld [vmem:[%s6773_s0 + $0x150] sm:$0xff] }
  0x26   :  { %v63_v49 = vld [vmem:[%s6773_s0 + $0x158] sm:$0xff]  ;;  %v64_v50 = vld [vmem:[%s6773_s0 + $0x160] sm:$0xff]  ;;  %v65_v51 = vld [vmem:[%s6773_s0 + $0x168] sm:$0xff] }
  0x27   :  { %v66_v52 = vld [vmem:[%s6773_s0 + $0x170] sm:$0xff]  ;;  %v67_v53 = vld [vmem:[%s6773_s0 + $0x178] sm:$0xff]  ;;  %v68_v54 = vld [vmem:[%s6773_s0 + $0x180] sm:$0xff] }
  0x28   :  { %3721 = vmatmul.mubr.msk.f32.gmra.mrb[10].mxu0 %vm89_vm0, %v31_v17  ;;  %v69_v55 = vld [vmem:[%s6773_s0 + $0x188] sm:$0xff]  ;;  %v70_v56 = vld [vmem:[%s6773_s0 + $0x190] sm:$0xff]  ;;  %v71_v57 = vld [vmem:[%s6773_s0 + $0x198] sm:$0xff] }
  0x29   :  { %3723 = vmatprep.mubr.msk.f32.mxu0 %vm89_vm0, %v32_v18  ;;  %v72_v58 = vld [vmem:[%s6773_s0 + $0x1a0] sm:$0xff]  ;;  %v73_v59 = vld [vmem:[%s6773_s0 + $0x1a8] sm:$0xff]  ;;  %v74_v60 = vld [vmem:[%s6773_s0 + $0x1b0] sm:$0xff] }
  0x2a   :  { %v75_v61 = vld [vmem:[%s6773_s0 + $0x1b8] sm:$0xff]  ;;  %v76_v62 = vld [vmem:[%s6773_s0 + $0x1c0] sm:$0xff]  ;;  %v77_v63 = vld [vmem:[%s6773_s0 + $0x1c8] sm:$0xff] }
  0x2b   :  { %v78_v0 = vld [vmem:[%s6773_s0 + $0x1d0] sm:$0xff]  ;;  %v79_v1 = vld [vmem:[%s6773_s0 + $0x1d8] sm:$0xff]  ;;  %v80_v2 = vld [vmem:[%s6773_s0 + $0x1e0] sm:$0xff] }
  0x2c   :  { %3724 = vmatmul.mubr.msk.f32.gmra.mrb[12].mxu0 %vm89_vm0, %v33_v19  ;;  %v81_v3 = vld [vmem:[%s6773_s0 + $0x1e8] sm:$0xff]  ;;  %v82_v4 = vld [vmem:[%s6773_s0 + $0x1f0] sm:$0xff]  ;;  %v83_v5 = vld [vmem:[%s6773_s0 + $0x1f8] sm:$0xff] }
  0x2d   :  { %3726 = vmatprep.mubr.msk.f32.mxu0 %vm89_vm0, %v34_v20  ;;  %v4351_v6 = vld [vmem:[%s6775_s2] ss:$0 sm:$0xff] }
  0x30   :  { %3727 = vmatmul.mubr.msk.f32.gmra.mrb[14].mxu0 %vm89_vm0, %v35_v21 }
  0x31   :  { %3729 = vmatprep.mubr.msk.f32.mxu0 %vm89_vm0, %v36_v22 }
  0x34   :  { %3730 = vmatmul.mubr.msk.f32.gmra.mrb[16].mxu0 %vm89_vm0, %v37_v23 }
  0x35   :  { %3732 = vmatprep.mubr.msk.f32.mxu0 %vm89_vm0, %v38_v24 }
  0x38   :  { %3733 = vmatmul.mubr.msk.f32.gmra.mrb[18].mxu0 %vm89_vm0, %v39_v25 }
  0x39   :  { %3735 = vmatprep.mubr.msk.f32.mxu0 %vm89_vm0, %v40_v26 }
  0x3c   :  { %3736 = vmatmul.mubr.msk.f32.gmra.mrb[20].mxu0 %vm89_vm0, %v41_v27 }
  0x3d   :  { %3738 = vmatprep.mubr.msk.f32.mxu0 %vm89_vm0, %v42_v28 }
  0x40   :  { %3739 = vmatmul.mubr.msk.f32.gmra.mrb[22].mxu0 %vm89_vm0, %v43_v29 }
  0x41   :  { %3741 = vmatprep.mubr.msk.f32.mxu0 %vm89_vm0, %v44_v30 }
  0x44   :  { %3742 = vmatmul.mubr.msk.f32.gmra.mrb[24].mxu0 %vm89_vm0, %v45_v31 }
  0x45   :  { %3744 = vmatprep.mubr.msk.f32.mxu0 %vm89_vm0, %v46_v32 }
  0x48   :  { %3745 = vmatmul.mubr.msk.f32.gmra.mrb[26].mxu0 %vm89_vm0, %v47_v33 }
  0x49   :  { %3747 = vmatprep.mubr.msk.f32.mxu0 %vm89_vm0, %v48_v34 }
  0x4c   :  { %3748 = vmatmul.mubr.msk.f32.gmra.mrb[28].mxu0 %vm89_vm0, %v49_v35 }
  0x4d   :  { %3750 = vmatprep.mubr.msk.f32.mxu0 %vm89_vm0, %v50_v36 }
  0x50   :  { %3751 = vmatmul.mubr.msk.f32.gmra.mrb[30].mxu0 %vm89_vm0, %v51_v37 }
  0x51   :  { %3753 = vmatprep.mubr.msk.f32.mxu0 %vm89_vm0, %v52_v38 }
  0x54   :  { %3754 = vmatmul.mubr.msk.f32.gmra.mrb[32].mxu0 %vm89_vm0, %v53_v39 }
  0x55   :  { %3756 = vmatprep.mubr.msk.f32.mxu0 %vm89_vm0, %v54_v40 }
  0x58   :  { %3757 = vmatmul.mubr.msk.f32.gmra.mrb[34].mxu0 %vm89_vm0, %v55_v41 }
  0x59   :  { %3759 = vmatprep.mubr.msk.f32.mxu0 %vm89_vm0, %v56_v42 }
  0x5c   :  { %3760 = vmatmul.mubr.msk.f32.gmra.mrb[36].mxu0 %vm89_vm0, %v57_v43 }
  0x5d   :  { %3762 = vmatprep.mubr.msk.f32.mxu0 %vm89_vm0, %v58_v44 }
  0x60   :  { %3763 = vmatmul.mubr.msk.f32.gmra.mrb[38].mxu0 %vm89_vm0, %v59_v45 }
  0x61   :  { %3765 = vmatprep.mubr.msk.f32.mxu0 %vm89_vm0, %v60_v46 }
  0x64   :  { %3766 = vmatmul.mubr.msk.f32.gmra.mrb[40].mxu0 %vm89_vm0, %v61_v47 }
  0x65   :  { %3768 = vmatprep.mubr.msk.f32.mxu0 %vm89_vm0, %v62_v48 }
  0x68   :  { %3769 = vmatmul.mubr.msk.f32.gmra.mrb[42].mxu0 %vm89_vm0, %v63_v49 }
  0x69   :  { %3771 = vmatprep.mubr.msk.f32.mxu0 %vm89_vm0, %v64_v50 }
  0x6c   :  { %3772 = vmatmul.mubr.msk.f32.gmra.mrb[44].mxu0 %vm89_vm0, %v65_v51 }
  0x6d   :  { %3774 = vmatprep.mubr.msk.f32.mxu0 %vm89_vm0, %v66_v52 }
  0x70   :  { %3775 = vmatmul.mubr.msk.f32.gmra.mrb[46].mxu0 %vm89_vm0, %v67_v53 }
  0x71   :  { %3777 = vmatprep.mubr.msk.f32.mxu0 %vm89_vm0, %v68_v54 }
  0x74   :  { %3778 = vmatmul.mubr.msk.f32.gmra.mrb[48].mxu0 %vm89_vm0, %v69_v55 }
  0x75   :  { %3780 = vmatprep.mubr.msk.f32.mxu0 %vm89_vm0, %v70_v56 }
  0x78   :  { %3781 = vmatmul.mubr.msk.f32.gmra.mrb[50].mxu0 %vm89_vm0, %v71_v57 }
  0x79   :  { %3783 = vmatprep.mubr.msk.f32.mxu0 %vm89_vm0, %v72_v58 }
  0x7c   :  { %3784 = vmatmul.mubr.msk.f32.gmra.mrb[52].mxu0 %vm89_vm0, %v73_v59 }
  0x7d   :  { %3786 = vmatprep.mubr.msk.f32.mxu0 %vm89_vm0, %v74_v60 }
  0x80   :  { %3787 = vmatmul.mubr.msk.f32.gmra.mrb[54].mxu0 %vm89_vm0, %v75_v61 }
  0x81   :  { %3789 = vmatprep.mubr.msk.f32.mxu0 %vm89_vm0, %v76_v62 }
  0x84   :  { %3790 = vmatmul.mubr.msk.f32.gmra.mrb[56].mxu0 %vm89_vm0, %v77_v63 }
  0x85   :  { %3792 = vmatprep.mubr.msk.f32.mxu0 %vm89_vm0, %v78_v0 }
  0x88   :  { %3793 = vmatmul.mubr.msk.f32.gmra.mrb[58].mxu0 %vm89_vm0, %v79_v1 }
  0x89   :  { %3795 = vmatprep.mubr.msk.f32.mxu0 %vm89_vm0, %v80_v2 }
  0x8c   :  { %3796 = vmatmul.mubr.msk.f32.gmra.mrb[60].mxu0 %vm89_vm0, %v81_v3 }
  0x8d   :  { %3798 = vmatprep.mubr.msk.f32.mxu0 %vm89_vm0, %v82_v4 }
  0x90   :  { %3799 = vmatmul.mubr.msk.f32.gmra.mrb[62].mxu0 %vm89_vm0, %v83_v5 }
  0xe7   :  { %v3707_v7 = vpop.f32.mrb[0].mxu0 }
  0xe8   :  { %v4354_v8 = vsub.f32 %v4351_v6, %v3707_v7  ;;  %v360_v9 = vpop.f32.mrb[1].mxu0 }
  0xe9   :  { %v4357_v10 = vsub.f32 %v4351_v6, %v360_v9 }
  0xea   :  { %v753_v11 = vsel %vm749_vm2, %v4354_v8, inf }
  0xeb   :  { %754 = vmin.xlane.f32.xlu0 %v753_v11  ;;  %v3710_v12 = vpop.f32.mrb[2].mxu0  ;;  %v750_v16 = vsel %vm749_vm2, %v4357_v10, inf }
  0xec   :  { %v4362_v13 = vsub.f32 %v4351_v6, %v3710_v12  ;;  %v370_v14 = vpop.f32.mrb[3].mxu0 }
  0xed   :  { %v4365_v15 = vsub.f32 %v4351_v6, %v370_v14 }
  0xee   :  { %v759_v17 = vsel %vm749_vm2, %v4362_v13, inf }
  0xef   :  { %751 = vmin.xlane.f32.xlu0 %v750_v16  ;;  %760 = vmin.xlane.f32.xlu1 %v759_v17  ;;  %v3713_v18 = vpop.f32.mrb[4].mxu0  ;;  %v756_v22 = vsel %vm749_vm2, %v4365_v15, inf }
  0xf0   :  { %v4372_v19 = vsub.f32 %v4351_v6, %v3713_v18  ;;  %v380_v20 = vpop.f32.mrb[5].mxu0 }
  0xf1   :  { %v4375_v21 = vsub.f32 %v4351_v6, %v380_v20 }
  0xf2   :  { %v765_v27 = vsel %vm749_vm2, %v4372_v19, inf }
  0xf3   :  { %757 = vmin.xlane.f32.xlu1 %v756_v22  ;;  %v3716_v23 = vpop.f32.mrb[6].mxu0  ;;  %v762_v24 = vsel %vm749_vm2, %v4375_v21, inf }
  0xf4   :  { %v4382_v25 = vsub.f32 %v4351_v6, %v3716_v23  ;;  %763 = vmin.xlane.f32.xlu0 %v762_v24  ;;  %v390_v26 = vpop.f32.mrb[7].mxu0 }
  0xf5   :  { %v4387_v28 = vsub.f32 %v4351_v6, %v390_v26 }
  0xf6   :  { %v771_v33 = vsel %vm749_vm2, %v4382_v25, inf }
  0xf7   :  { %766 = vmin.xlane.f32.xlu1 %v765_v27  ;;  %v3719_v29 = vpop.f32.mrb[8].mxu0  ;;  %v768_v30 = vsel %vm749_vm2, %v4387_v28, inf }
  0xf8   :  { %v4392_v31 = vsub.f32 %v4351_v6, %v3719_v29  ;;  %769 = vmin.xlane.f32.xlu0 %v768_v30  ;;  %v400_v32 = vpop.f32.mrb[9].mxu0 }
  0xf9   :  { %v4397_v34 = vsub.f32 %v4351_v6, %v400_v32 }
  0xfa   :  { %v777_v39 = vsel %vm749_vm2, %v4392_v31, inf }
  0xfb   :  { %772 = vmin.xlane.f32.xlu1 %v771_v33  ;;  %v3722_v35 = vpop.f32.mrb[10].mxu0  ;;  %v774_v36 = vsel %vm749_vm2, %v4397_v34, inf }
  0xfc   :  { %v4402_v37 = vsub.f32 %v4351_v6, %v3722_v35  ;;  %775 = vmin.xlane.f32.xlu0 %v774_v36  ;;  %v410_v38 = vpop.f32.mrb[11].mxu0 }
  0xfd   :  { %v4407_v40 = vsub.f32 %v4351_v6, %v410_v38 }
  0xfe   :  { %v783_v45 = vsel %vm749_vm2, %v4402_v37, inf }
  0xff   :  { %778 = vmin.xlane.f32.xlu1 %v777_v39  ;;  %v3725_v41 = vpop.f32.mrb[12].mxu0  ;;  %v780_v42 = vsel %vm749_vm2, %v4407_v40, inf }
 0x100   :  { %v4412_v43 = vsub.f32 %v4351_v6, %v3725_v41  ;;  %781 = vmin.xlane.f32.xlu0 %v780_v42  ;;  %v420_v44 = vpop.f32.mrb[13].mxu0 }
 0x101   :  { %v4417_v46 = vsub.f32 %v4351_v6, %v420_v44 }
 0x102   :  { %v789_v51 = vsel %vm749_vm2, %v4412_v43, inf }
 0x103   :  { %784 = vmin.xlane.f32.xlu1 %v783_v45  ;;  %v3728_v47 = vpop.f32.mrb[14].mxu0  ;;  %v786_v48 = vsel %vm749_vm2, %v4417_v46, inf }
 0x104   :  { %v4422_v49 = vsub.f32 %v4351_v6, %v3728_v47  ;;  %787 = vmin.xlane.f32.xlu0 %v786_v48  ;;  %v430_v50 = vpop.f32.mrb[15].mxu0 }
 0x105   :  { %v4427_v52 = vsub.f32 %v4351_v6, %v430_v50 }
 0x106   :  { %v795_v57 = vsel %vm749_vm2, %v4422_v49, inf }
 0x107   :  { %790 = vmin.xlane.f32.xlu1 %v789_v51  ;;  %v3731_v53 = vpop.f32.mrb[16].mxu0  ;;  %v792_v54 = vsel %vm749_vm2, %v4427_v52, inf }
 0x108   :  { %v4432_v55 = vsub.f32 %v4351_v6, %v3731_v53  ;;  %793 = vmin.xlane.f32.xlu0 %v792_v54  ;;  %v440_v56 = vpop.f32.mrb[17].mxu0 }
 0x109   :  { %v4437_v58 = vsub.f32 %v4351_v6, %v440_v56 }
 0x10a   :  { %v801_v63 = vsel %vm749_vm2, %v4432_v55, inf }
 0x10b   :  { %796 = vmin.xlane.f32.xlu1 %v795_v57  ;;  %v3734_v59 = vpop.f32.mrb[18].mxu0  ;;  %v798_v60 = vsel %vm749_vm2, %v4437_v58, inf }
 0x10c   :  { %v4442_v61 = vsub.f32 %v4351_v6, %v3734_v59  ;;  %799 = vmin.xlane.f32.xlu0 %v798_v60  ;;  %v450_v62 = vpop.f32.mrb[19].mxu0 }
 0x10d   :  { %v4447_v0 = vsub.f32 %v4351_v6, %v450_v62 }
 0x10e   :  { %v807_v5 = vsel %vm749_vm2, %v4442_v61, inf }
 0x10f   :  { %802 = vmin.xlane.f32.xlu1 %v801_v63  ;;  %v3737_v1 = vpop.f32.mrb[20].mxu0  ;;  %v804_v2 = vsel %vm749_vm2, %v4447_v0, inf }
 0x110   :  { %v4452_v3 = vsub.f32 %v4351_v6, %v3737_v1  ;;  %805 = vmin.xlane.f32.xlu0 %v804_v2  ;;  %v460_v4 = vpop.f32.mrb[21].mxu0 }
 0x111   :  { %v4457_v7 = vsub.f32 %v4351_v6, %v460_v4 }
 0x112   :  { %v813_v16 = vsel %vm749_vm2, %v4452_v3, inf }
 0x113   :  { %808 = vmin.xlane.f32.xlu1 %v807_v5  ;;  %v3740_v9 = vpop.f32.mrb[22].mxu0  ;;  %v810_v11 = vsel %vm749_vm2, %v4457_v7, inf }
 0x114   :  { %v4462_v12 = vsub.f32 %v4351_v6, %v3740_v9  ;;  %811 = vmin.xlane.f32.xlu0 %v810_v11  ;;  %v470_v14 = vpop.f32.mrb[23].mxu0 }
 0x115   :  { %v4467_v17 = vsub.f32 %v4351_v6, %v470_v14 }
 0x116   :  { %v819_v24 = vsel %vm749_vm2, %v4462_v12, inf }
 0x117   :  { %814 = vmin.xlane.f32.xlu1 %v813_v16  ;;  %v3743_v18 = vpop.f32.mrb[24].mxu0  ;;  %v816_v20 = vsel %vm749_vm2, %v4467_v17, inf }
 0x118   :  { %v4472_v22 = vsub.f32 %v4351_v6, %v3743_v18  ;;  %817 = vmin.xlane.f32.xlu0 %v816_v20  ;;  %v480_v23 = vpop.f32.mrb[25].mxu0 }
 0x119   :  { %v4477_v26 = vsub.f32 %v4351_v6, %v480_v23 }
 0x11a   :  { %v825_v33 = vsel %vm749_vm2, %v4472_v22, inf }
 0x11b   :  { %820 = vmin.xlane.f32.xlu1 %v819_v24  ;;  %v3746_v27 = vpop.f32.mrb[26].mxu0  ;;  %v822_v29 = vsel %vm749_vm2, %v4477_v26, inf }
 0x11c   :  { %v4482_v30 = vsub.f32 %v4351_v6, %v3746_v27  ;;  %823 = vmin.xlane.f32.xlu0 %v822_v29  ;;  %v490_v32 = vpop.f32.mrb[27].mxu0 }
 0x11d   :  { %v4487_v35 = vsub.f32 %v4351_v6, %v490_v32 }
 0x11e   :  { %v831_v42 = vsel %vm749_vm2, %v4482_v30, inf }
 0x11f   :  { %826 = vmin.xlane.f32.xlu1 %v825_v33  ;;  %v3749_v36 = vpop.f32.mrb[28].mxu0  ;;  %v828_v38 = vsel %vm749_vm2, %v4487_v35, inf }
 0x120   :  { %v4492_v39 = vsub.f32 %v4351_v6, %v3749_v36  ;;  %829 = vmin.xlane.f32.xlu0 %v828_v38  ;;  %v500_v41 = vpop.f32.mrb[29].mxu0 }
 0x121   :  { %v4497_v44 = vsub.f32 %v4351_v6, %v500_v41 }
 0x122   :  { %v837_v51 = vsel %vm749_vm2, %v4492_v39, inf }
 0x123   :  { %832 = vmin.xlane.f32.xlu1 %v831_v42  ;;  %v3752_v45 = vpop.f32.mrb[30].mxu0  ;;  %v834_v47 = vsel %vm749_vm2, %v4497_v44, inf }
 0x124   :  { %v4502_v48 = vsub.f32 %v4351_v6, %v3752_v45  ;;  %835 = vmin.xlane.f32.xlu0 %v834_v47  ;;  %v510_v50 = vpop.f32.mrb[31].mxu0 }
 0x125   :  { %v4507_v53 = vsub.f32 %v4351_v6, %v510_v50 }
 0x126   :  { %v843_v60 = vsel %vm749_vm2, %v4502_v48, inf }
 0x127   :  { %838 = vmin.xlane.f32.xlu1 %v837_v51  ;;  %v3755_v54 = vpop.f32.mrb[32].mxu0  ;;  %v840_v56 = vsel %vm749_vm2, %v4507_v53, inf }
 0x128   :  { %v4512_v57 = vsub.f32 %v4351_v6, %v3755_v54  ;;  %841 = vmin.xlane.f32.xlu0 %v840_v56  ;;  %v520_v59 = vpop.f32.mrb[33].mxu0 }
 0x129   :  { %v4517_v62 = vsub.f32 %v4351_v6, %v520_v59 }
 0x12a   :  { %v849_v5 = vsel %vm749_vm2, %v4512_v57, inf }
 0x12b   :  { %844 = vmin.xlane.f32.xlu1 %v843_v60  ;;  %v3758_v63 = vpop.f32.mrb[34].mxu0  ;;  %v846_v1 = vsel %vm749_vm2, %v4517_v62, inf }
 0x12c   :  { %v4522_v2 = vsub.f32 %v4351_v6, %v3758_v63  ;;  %847 = vmin.xlane.f32.xlu0 %v846_v1  ;;  %v530_v4 = vpop.f32.mrb[35].mxu0 }
 0x12d   :  { %v4527_v9 = vsub.f32 %v4351_v6, %v530_v4 }
 0x12e   :  { %v855_v20 = vsel %vm749_vm2, %v4522_v2, inf }
 0x12f   :  { %850 = vmin.xlane.f32.xlu1 %v849_v5  ;;  %v3761_v11 = vpop.f32.mrb[36].mxu0  ;;  %v852_v14 = vsel %vm749_vm2, %v4527_v9, inf }
 0x130   :  { %v4532_v16 = vsub.f32 %v4351_v6, %v3761_v11  ;;  %853 = vmin.xlane.f32.xlu0 %v852_v14  ;;  %v540_v18 = vpop.f32.mrb[37].mxu0 }
 0x131   :  { %v4537_v23 = vsub.f32 %v4351_v6, %v540_v18 }
 0x132   :  { %v861_v33 = vsel %vm749_vm2, %v4532_v16, inf }
 0x133   :  { %856 = vmin.xlane.f32.xlu1 %v855_v20  ;;  %v3764_v24 = vpop.f32.mrb[38].mxu0  ;;  %v858_v27 = vsel %vm749_vm2, %v4537_v23, inf }
 0x134   :  { %v4542_v29 = vsub.f32 %v4351_v6, %v3764_v24  ;;  %859 = vmin.xlane.f32.xlu0 %v858_v27  ;;  %v550_v32 = vpop.f32.mrb[39].mxu0 }
 0x135   :  { %v4547_v36 = vsub.f32 %v4351_v6, %v550_v32 }
 0x136   :  { %v867_v45 = vsel %vm749_vm2, %v4542_v29, inf }
 0x137   :  { %6895 = vst [vmem:[#allocation8_spill] sm:$0xff] %v4547_v36  ;;  %862 = vmin.xlane.f32.xlu1 %v861_v33  ;;  %v864_v38 = vsel %vm749_vm2, %v4547_v36, inf  ;;  %v3767_v41 = vpop.f32.mrb[40].mxu0 }
 0x138   :  { %865 = vmin.xlane.f32.xlu0 %v864_v38  ;;  %v4552_v42 = vsub.f32 %v4351_v6, %v3767_v41  ;;  %v560_v47 = vpop.f32.mrb[41].mxu0 }
 0x139   :  { %v4559_v56 = vsub.f32 %v4351_v6, %v560_v47 }
 0x13a   :  { %v873_v51 = vsel %vm749_vm2, %v4552_v42, inf }
 0x13b   :  { %868 = vmin.xlane.f32.xlu1 %v867_v45  ;;  %v3770_v50 = vpop.f32.mrb[42].mxu0  ;;  %6896 = vst [vmem:[#allocation9_spill] sm:$0xff] %v4559_v56  ;;  %v870_v1 = vsel %vm749_vm2, %v4559_v56, inf }
 0x13c   :  { %v570_v54 = vpop.f32.mrb[43].mxu0  ;;  %v4562_v60 = vsub.f32 %v4351_v6, %v3770_v50 }
 0x13d   :  { %v4569_v14 = vsub.f32 %v4351_v6, %v570_v54 }
 0x13e   :  { %v879_v5 = vsel %vm749_vm2, %v4562_v60, inf }
 0x13f   :  { %874 = vmin.xlane.f32.xlu1 %v873_v51  ;;  %v3773_v59 = vpop.f32.mrb[44].mxu0  ;;  %6897 = vst [vmem:[#allocation10_spill] sm:$0xff] %v4569_v14  ;;  %v876_v27 = vsel %vm749_vm2, %v4569_v14, inf }
 0x140   :  { %v580_v63 = vpop.f32.mrb[45].mxu0  ;;  %v4572_v20 = vsub.f32 %v4351_v6, %v3773_v59 }
 0x141   :  { %v4579_v41 = vsub.f32 %v4351_v6, %v580_v63 }
 0x142   :  { %v885_v33 = vsel %vm749_vm2, %v4572_v20, inf }
 0x143   :  { %871 = vmin.xlane.f32.xlu1 %v870_v1  ;;  %v3776_v4 = vpop.f32.mrb[46].mxu0  ;;  %6898 = vst [vmem:[#allocation11_spill] sm:$0xff] %v4579_v41  ;;  %v882_v51 = vsel %vm749_vm2, %v4579_v41, inf }
 0x144   :  { %v590_v11 = vpop.f32.mrb[47].mxu0  ;;  %v4582_v47 = vsub.f32 %v4351_v6, %v3776_v4 }
 0x146   :  { %v891_v59 = vsel %vm749_vm2, %v4582_v47, inf }
 0x147   :  { %880 = vmin.xlane.f32.xlu1 %v879_v5  ;;  %v3779_v18 = vpop.f32.mrb[48].mxu0  ;;  %v4589_v5 = vsub.f32 %v4351_v6, %v590_v11 }
 0x148   :  { %v600_v24 = vpop.f32.mrb[49].mxu0 }
 0x149   :  { %6899 = vst [vmem:[#allocation12_spill] sm:$0xff] %v4589_v5  ;;  %v4601_v56 = vsub.f32 %v4351_v6, %v600_v24 }
 0x14b   :  { %877 = vmin.xlane.f32.xlu1 %v876_v27  ;;  %v3782_v32 = vpop.f32.mrb[50].mxu0  ;;  %v4592_v27 = vsub.f32 %v4351_v6, %v3779_v18  ;;  %6901 = vst [vmem:[#allocation14_spill] sm:$0xff] %v4601_v56 }
 0x14c   :  { %v610_v38 = vpop.f32.mrb[51].mxu0  ;;  %v4606_v18 = vsub.f32 %v4351_v6, %v3782_v32 }
 0x14d   :  { %6900 = vst [vmem:[#allocation13_spill] sm:$0xff] %v4592_v27  ;;  %v4619_v24 = vsub.f32 %v4351_v6, %v610_v38 }
 0x14e   :  { %6902 = vst [vmem:[#allocation15_spill] sm:$0xff] %v4606_v18 }
 0x14f   :  { %886 = vmin.xlane.f32.xlu1 %v885_v33  ;;  %v3785_v45 = vpop.f32.mrb[52].mxu0  ;;  %v888_v33 = vsel %vm749_vm2, %v4589_v5, inf  ;;  %6903 = vst [vmem:[#allocation16_spill] sm:$0xff] %v4619_v24 }
 0x150   :  { %v620_v50 = vpop.f32.mrb[53].mxu0  ;;  %v4622_v32 = vsub.f32 %v4351_v6, %v3785_v45 }
 0x153   :  { %883 = vmin.xlane.f32.xlu1 %v882_v51  ;;  %v3788_v54 = vpop.f32.mrb[54].mxu0  ;;  %v897_v51 = vsel %vm749_vm2, %v4592_v27, inf  ;;  %v903_v27 = vsel %vm749_vm2, %v4606_v18, inf }
 0x154   :  { %v630_v1 = vpop.f32.mrb[55].mxu0  ;;  %v4632_v18 = vsub.f32 %v4351_v6, %v3788_v54 }
 0x156   :  { %6905 = vst [vmem:[#allocation18_spill] sm:$0xff] %v4632_v18  ;;  %v915_v45 = vsel %vm749_vm2, %v4632_v18, inf }
 0x157   :  { %892 = vmin.xlane.f32.xlu1 %v891_v59  ;;  %v3791_v63 = vpop.f32.mrb[56].mxu0 }
 0x158   :  { %v640_v4 = vpop.f32.mrb[57].mxu0 }
 0x15b   :  { %889 = vmin.xlane.f32.xlu1 %v888_v33  ;;  %v3794_v41 = vpop.f32.mrb[58].mxu0  ;;  %v894_v33 = vsel %vm749_vm2, %v4601_v56, inf  ;;  %v4629_v56 = vsub.f32 %v4351_v6, %v620_v50 }
 0x15c   :  { %v4598_v14 = vpop.f32.mrb[59].mxu0 }
 0x15d   :  { %6904 = vst [vmem:[#allocation17_spill] sm:$0xff] %v4629_v56  ;;  %v906_v38 = vsel %vm749_vm2, %v4629_v56, inf }
 0x15f   :  { %898 = vmin.xlane.f32.xlu1 %v897_v51  ;;  %v4603_v11 = vpop.f32.mrb[60].mxu0  ;;  %v900_v51 = vsel %vm749_vm2, %v4619_v24, inf }
 0x160   :  { %v4608_v59 = vpop.f32.mrb[61].mxu0 }
 0x163   :  { %895 = vmin.xlane.f32.xlu1 %v894_v33  ;;  %v4612_v5 = vpop.f32.mrb[62].mxu0  ;;  %v909_v33 = vsel %vm749_vm2, %v4622_v32, inf }
 0x164   :  { %v4616_v36 = vpop.f32.mrb[63].mxu0 }
 0x167   :  { %904 = vmin.xlane.f32.xlu1 %v903_v27  ;;  %v942_v27 = vlaneseq }
 0x169   :  { %v4641_v24 = vand.u32 127, %v942_v27 }
 0x16b   :  { %901 = vmin.xlane.f32.xlu1 %v900_v51  ;;  %v4639_v51 = vsub.f32 %v4351_v6, %v630_v1  ;;  %6906 = vst [vmem:[#allocation19_spill] sm:$0xff] %v4641_v24 }
 0x16f   :  { %910 = vmin.xlane.f32.xlu1 %v909_v33  ;;  %v4644_v33 = vsub.f32 %v4351_v6, %v3791_v63 }
 0x171   :  { %6907 = vst [vmem:[#allocation20_spill] sm:$0xff] %v4644_v33  ;;  %v921_v27 = vsel %vm749_vm2, %v4644_v33, inf }
 0x173   :  { %907 = vmin.xlane.f32.xlu1 %v906_v38  ;;  %v912_v38 = vsel %vm749_vm2, %v4639_v51, inf }
 0x177   :  { %916 = vmin.xlane.f32.xlu1 %v915_v45 }
 0x178   :  { %v755_v50 = vpop.xlane.xlu0 %754 }
 0x179   :  { %vm945_vm3 = vcmp.eq.f32.partialorder %v4354_v8, %v755_v50  ;;  %v4659_v8 = vsub.f32 %v4351_v6, %v640_v4 }
 0x17a   :  { %v1009_v54 = vsel %vm945_vm3, %v4641_v24, 32 }
 0x17b   :  { %913 = vmin.xlane.f32.xlu1 %v912_v38  ;;  %v4651_v56 = vsel %vm749_vm2, %v1009_v54, 2147483647 }
 0x17c   :  { %6908 = vst [vmem:[#allocation21_spill] sm:$0xff] %v4651_v56  ;;  %v752_v1 = vpop.xlane.xlu0 %751  ;;  %v761_v18 = vpop.xlane.xlu1 %760  ;;  %v1089_v45 = vshra.s32 %v4651_v56, 16 }
 0x17d   :  { %vm944_vm4 = vcmp.eq.f32.partialorder %v4357_v10, %v752_v1  ;;  %vm947_vm5 = vcmp.eq.f32.partialorder %v4362_v13, %v761_v18  ;;  %v4673_v10 = vsub.f32 %v4351_v6, %v3794_v41  ;;  %v918_v1 = vsel %vm749_vm2, %v4659_v8, inf }
 0x17e   :  { %v1008_v63 = vsel %vm944_vm4, %v4641_v24, 32  ;;  %v1011_v50 = vsel %vm947_vm5, %v4641_v24, 32  ;;  %v4663_v54 = vcvt.s32.f32 %v1089_v45 }
 0x17f   :  { %922 = vmin.xlane.f32.xlu1 %v921_v27  ;;  %v4666_v38 = vsel %vm749_vm2, %v1008_v63, 2147483647  ;;  %v4669_v33 = vsel %vm749_vm2, %v1011_v50, 2147483647 }
 0x180   :  { %6909 = vst [vmem:[#allocation22_spill] sm:$0xff] %v4669_v33  ;;  %v758_v56 = vpop.xlane.xlu1 %757  ;;  %1092 = vmin.xlane.f32.xlu0 %v4663_v54  ;;  %v1074_v13 = vshra.s32 %v4666_v38, 16  ;;  %v1119_v45 = vshra.s32 %v4669_v33, 16 }
 0x181   :  { %vm946_vm6 = vcmp.eq.f32.partialorder %v4365_v15, %v758_v56  ;;  %v764_v18 = vpop.xlane.xlu0 %763  ;;  %v927_v15 = vsel %vm749_vm2, %v4673_v10, inf  ;;  %v4693_v56 = vsub.f32 %v4351_v6, %v4598_v14 }
 0x182   :  { %v1010_v4 = vsel %vm946_vm6, %v4641_v24, 32  ;;  %v4680_v27 = vcvt.s32.f32 %v1074_v13  ;;  %vm948_vm7 = vcmp.eq.f32.partialorder %v4375_v21, %v764_v18  ;;  %v4696_v13 = vcvt.s32.f32 %v1119_v45 }
 0x183   :  { %919 = vmin.xlane.f32.xlu1 %v918_v1  ;;  %v4684_v63 = vsel %vm749_vm2, %v1010_v4, 2147483647  ;;  %v924_v14 = vsel %vm749_vm2, %v4693_v56, inf }
 0x184   :  { %6910 = vst [vmem:[#allocation23_spill] sm:$0xff] %v4680_v27  ;;  %v767_v41 = vpop.xlane.xlu1 %766  ;;  %1077 = vmin.xlane.f32.xlu0 %v4680_v27  ;;  %v1104_v4 = vshra.s32 %v4684_v63, 16  ;;  %v1012_v27 = vsel %vm948_vm7, %v4641_v24, 32 }
 0x185   :  { %vm949_vm8 = vcmp.eq.f32.partialorder %v4372_v19, %v767_v41  ;;  %v4706_v19 = vsub.f32 %v4351_v6, %v4603_v11  ;;  %v770_v21 = vpop.xlane.xlu0 %769  ;;  %v4715_v41 = vsel %vm749_vm2, %v1012_v27, 2147483647  ;;  %v4724_v11 = vsub.f32 %v4351_v6, %v4608_v59 }
 0x186   :  { %v1013_v50 = vsel %vm949_vm8, %v4641_v24, 32  ;;  %v4711_v18 = vcvt.s32.f32 %v1104_v4  ;;  %6913 = vst [vmem:[#allocation26_spill] sm:$0xff] %v4715_v41  ;;  %vm950_vm10 = vcmp.eq.f32.partialorder %v4387_v28, %v770_v21  ;;  %v1134_v4 = vshra.s32 %v4715_v41, 16 }
 0x187   :  { %928 = vmin.xlane.f32.xlu1 %v927_v15  ;;  %v4700_v1 = vsel %vm749_vm2, %v1013_v50, 2147483647  ;;  %v4736_v28 = vsub.f32 %v4351_v6, %v4612_v5  ;;  %v930_v59 = vsel %vm749_vm2, %v4724_v11, inf }
 0x188   :  { %6911 = vst [vmem:[#allocation24_spill] sm:$0xff] %v4700_v1  ;;  %v773_v33 = vpop.xlane.xlu1 %772  ;;  %1122 = vmin.xlane.f32.xlu0 %v4696_v13  ;;  %6912 = vst [vmem:[#allocation25_spill] sm:$0xff] %v4711_v18  ;;  %v1149_v45 = vshra.s32 %v4700_v1, 16  ;;  %v4741_v21 = vcvt.s32.f32 %v1134_v4 }
 0x189   :  { %vm951_vm9 = vcmp.eq.f32.partialorder %v4382_v25, %v773_v33  ;;  %v933_v25 = vsel %vm749_vm2, %v4706_v19, inf  ;;  %v939_v5 = vsel %vm749_vm2, %v4736_v28, inf }
 0x18a   :  { %v1015_v15 = vsel %vm951_vm9, %v4641_v24, 32  ;;  %v4726_v33 = vcvt.s32.f32 %v1149_v45  ;;  %6915 = vst [vmem:[#allocation28_spill] sm:$0xff] %v4741_v21 }
 0x18b   :  { %925 = vmin.xlane.f32.xlu1 %v924_v14  ;;  %v4730_v27 = vsel %vm749_vm2, %v1015_v15, 2147483647  ;;  %v1014_v14 = vsel %vm950_vm10, %v4641_v24, 32 }
 0x18c   :  { %v779_v50 = vpop.xlane.xlu1 %778  ;;  %1107 = vmin.xlane.f32.xlu0 %v4711_v18  ;;  %6914 = vst [vmem:[#allocation27_spill] sm:$0xff] %v4730_v27  ;;  %v776_v18 = vpop.xlane.xlu0 %775  ;;  %v1179_v45 = vshra.s32 %v4730_v27, 16  ;;  %v4745_v15 = vsel %vm749_vm2, %v1014_v14, 2147483647 }
 0x18d   :  { %vm953_vm11 = vcmp.eq.f32.partialorder %v4392_v31, %v779_v50  ;;  %6916 = vst [vmem:[#allocation29_spill] sm:$0xff] %v4745_v15  ;;  %vm952_vm12 = vcmp.eq.f32.partialorder %v4397_v34, %v776_v18  ;;  %v4754_v50 = vsub.f32 %v4351_v6, %v4616_v36  ;;  %v1164_v14 = vshra.s32 %v4745_v15, 16 }
 0x18e   :  { %v4756_v4 = vcvt.s32.f32 %v1179_v45 }
 0x18f   :  { %934 = vmin.xlane.f32.xlu1 %v933_v25  ;;  %v1017_v25 = vsel %vm953_vm11, %v4641_v24, 32  ;;  %v936_v34 = vsel %vm749_vm2, %v4754_v50, inf  ;;  %v4767_v6 = vcvt.s32.f32 %v1164_v14 }
 0x190   :  { %v785_v1 = vpop.xlane.xlu1 %784  ;;  %1152 = vmin.xlane.f32.xlu0 %v4726_v33  ;;  %v782_v31 = vpop.xlane.xlu0 %781 }
 0x191   :  { %vm955_vm13 = vcmp.eq.f32.partialorder %v4402_v37, %v785_v1  ;;  %6918 = vst [vmem:[#allocation31_spill] sm:$0xff] %v4767_v6  ;;  %vm954_vm14 = vcmp.eq.f32.partialorder %v4407_v40, %v782_v31 }
 0x192   :  { %v1019_v45 = vsel %vm955_vm13, %v4641_v24, 32 }
 0x193   :  { %931 = vmin.xlane.f32.xlu1 %v930_v59  ;;  %v4760_v59 = vsel %vm749_vm2, %v1017_v25, 2147483647  ;;  %v4780_v14 = vsel %vm749_vm2, %v1019_v45, 2147483647 }
 0x194   :  { %v791_v41 = vpop.xlane.xlu1 %790  ;;  %1137 = vmin.xlane.f32.xlu0 %v4741_v21  ;;  %6917 = vst [vmem:[#allocation30_spill] sm:$0xff] %v4760_v59  ;;  %v1016_v21 = vsel %vm952_vm12, %v4641_v24, 32  ;;  %v1209_v36 = vshra.s32 %v4760_v59, 16  ;;  %v788_v25 = vpop.xlane.xlu0 %787  ;;  %6920 = vst [vmem:[#allocation33_spill] sm:$0xff] %v4780_v14  ;;  %v1239_v40 = vshra.s32 %v4780_v14, 16 }
 0x195   :  { %v4771_v18 = vsel %vm749_vm2, %v1016_v21, 2147483647  ;;  %vm957_vm15 = vcmp.eq.f32.partialorder %v4412_v43, %v791_v41  ;;  %vm956_vm1 = vcmp.eq.f32.partialorder %v4417_v46, %v788_v25 }
 0x196   :  { %6919 = vst [vmem:[#allocation32_spill] sm:$0xff] %v4771_v18  ;;  %v4776_v37 = vcvt.s32.f32 %v1209_v36  ;;  %v1194_v1 = vshra.s32 %v4771_v18, 16  ;;  %v1021_v36 = vsel %vm957_vm15, %v4641_v24, 32  ;;  %v4798_v18 = vcvt.s32.f32 %v1239_v40 }
 0x197   :  { %940 = vmin.xlane.f32.xlu1 %v939_v5  ;;  %v4802_v41 = vsel %vm749_vm2, %v1021_v36, 2147483647 }
 0x198   :  { %v797_v27 = vpop.xlane.xlu1 %796  ;;  %1182 = vmin.xlane.f32.xlu0 %v4756_v4  ;;  %v794_v21 = vpop.xlane.xlu0 %793  ;;  %v4787_v15 = vcvt.s32.f32 %v1194_v1  ;;  %6923 = vst [vmem:[#allocation36_spill] sm:$0xff] %v4802_v41  ;;  %v1020_v1 = vsel %vm956_vm1, %v4641_v24, 32  ;;  %v1269_v46 = vshra.s32 %v4802_v41, 16 }
 0x199   :  { %vm959_vm3 = vcmp.eq.f32.partialorder %v4422_v49, %v797_v27  ;;  %v4813_v25 = vsel %vm749_vm2, %v1020_v1, 2147483647  ;;  %vm958_vm4 = vcmp.eq.f32.partialorder %v4427_v52, %v794_v21 }
 0x19a   :  { %6921 = vst [vmem:[#allocation34_spill] sm:$0xff] %v4787_v15  ;;  %6925 = vst [vmem:[#allocation38_spill] sm:$0xff] %v4813_v25  ;;  %v1023_v40 = vsel %vm959_vm3, %v4641_v24, 32  ;;  %v4820_v49 = vcvt.s32.f32 %v1269_v46  ;;  %v1254_v27 = vshra.s32 %v4813_v25, 16  ;;  %v1022_v41 = vsel %vm958_vm4, %v4641_v24, 32 }
 0x19b   :  { %937 = vmin.xlane.f32.xlu1 %v936_v34  ;;  %v1018_v34 = vsel %vm954_vm14, %v4641_v24, 32  ;;  %v4827_v1 = vsel %vm749_vm2, %v1023_v40, 2147483647 }
 0x19c   :  { %v803_v5 = vpop.xlane.xlu1 %802  ;;  %1167 = vmin.xlane.f32.xlu0 %v4767_v6  ;;  %v4791_v31 = vsel %vm749_vm2, %v1018_v34, 2147483647  ;;  %v800_v14 = vpop.xlane.xlu0 %799  ;;  %v4835_v21 = vcvt.s32.f32 %v1254_v27  ;;  %v1299_v46 = vshra.s32 %v4827_v1, 16 }
 0x19d   :  { %6922 = vst [vmem:[#allocation35_spill] sm:$0xff] %v4791_v31  ;;  %v1224_v43 = vshra.s32 %v4791_v31, 16  ;;  %vm961_vm6 = vcmp.eq.f32.partialorder %v4432_v55, %v803_v5  ;;  %vm960_vm8 = vcmp.eq.f32.partialorder %v4437_v58, %v800_v14 }
 0x19e   :  { %v4855_v5 = vcvt.s32.f32 %v1299_v46 }
 0x19f   :  { %v4809_v6 = vcvt.s32.f32 %v1224_v43 }
 0x1a0   :  { %v4783_v59 = vpop.xlane.xlu1 %808  ;;  %1212 = vmin.xlane.f32.xlu0 %v4776_v37  ;;  %v806_v31 = vpop.xlane.xlu0 %805 }
 0x1a1   :  { %6924 = vst [vmem:[#allocation37_spill] sm:$0xff] %v4809_v6  ;;  %vm963_vm10 = vcmp.eq.f32.partialorder %v4442_v61, %v4783_v59  ;;  %vm962_vm12 = vcmp.eq.f32.partialorder %v4447_v0, %v806_v31 }
 0x1a2   :  { %v1027_v61 = vsel %vm963_vm10, %v4641_v24, 32 }
 0x1a4   :  { %v4794_v45 = vpop.xlane.xlu1 %814  ;;  %1197 = vmin.xlane.f32.xlu0 %v4787_v15  ;;  %v4847_v25 = vpop.xlane.xlu0 %811 }
 0x1a5   :  { %vm965_vm14 = vcmp.eq.f32.partialorder %v4452_v3, %v4794_v45  ;;  %vm964_vm1 = vcmp.eq.f32.partialorder %v4457_v7, %v4847_v25 }
 0x1a8   :  { %v4805_v34 = vpop.xlane.xlu1 %820  ;;  %1242 = vmin.xlane.f32.xlu0 %v4798_v18 }
 0x1a9   :  { %vm967_vm4 = vcmp.eq.f32.partialorder %v4462_v12, %v4805_v34 }
 0x1ac   :  { %v827_v36 = vpop.xlane.xlu1 %826  ;;  %1227 = vmin.xlane.f32.xlu0 %v4809_v6 }
 0x1ad   :  { %vm969_vm5 = vcmp.eq.f32.partialorder %v4472_v22, %v827_v36  ;;  %v4844_v36 = vsel %vm749_vm2, %v1022_v41, 2147483647 }
 0x1ae   :  { %v1033_v15 = vsel %vm969_vm5, %v4641_v24, 32  ;;  %v1284_v27 = vshra.s32 %v4844_v36, 16 }
 0x1af   :  { %v4824_v43 = vsel %vm749_vm2, %v1033_v15, 2147483647 }
 0x1b0   :  { %6926 = vst [vmem:[#allocation39_spill] sm:$0xff] %v4824_v43  ;;  %v833_v6 = vpop.xlane.xlu1 %832  ;;  %1272 = vmin.xlane.f32.xlu0 %v4820_v49  ;;  %v1449_v52 = vshra.s32 %v4824_v43, 16  ;;  %v1025_v43 = vsel %vm961_vm6, %v4641_v24, 32 }
 0x1b1   :  { %vm971_vm7 = vcmp.eq.f32.partialorder %v4482_v30, %v833_v6 }
 0x1b2   :  { %v1035_v22 = vsel %vm971_vm7, %v4641_v24, 32  ;;  %v4837_v15 = vcvt.s32.f32 %v1449_v52 }
 0x1b3   :  { %v4841_v40 = vsel %vm749_vm2, %v1035_v22, 2147483647  ;;  %v4864_v22 = vsel %vm749_vm2, %v1025_v43, 2147483647  ;;  %v4876_v43 = vcvt.s32.f32 %v1284_v27 }
 0x1b4   :  { %6927 = vst [vmem:[#allocation40_spill] sm:$0xff] %v4837_v15  ;;  %6928 = vst [vmem:[#allocation41_spill] sm:$0xff] %v4841_v40  ;;  %v839_v55 = vpop.xlane.xlu1 %838  ;;  %1257 = vmin.xlane.f32.xlu0 %v4835_v21  ;;  %1452 = vmin.xlane.f32.xlu1 %v4837_v15  ;;  %v1479_v30 = vshra.s32 %v4841_v40, 16  ;;  %v1024_v40 = vsel %vm960_vm8, %v4641_v24, 32 }
 0x1b5   :  { %vm973_vm9 = vcmp.eq.f32.partialorder %v4492_v39, %v839_v55  ;;  %v4873_v39 = vpop.xlane.xlu0 %817  ;;  %v1329_v55 = vshra.s32 %v4864_v22, 16 }
 0x1b6   :  { %v1037_v6 = vsel %vm973_vm9, %v4641_v24, 32  ;;  %v4857_v41 = vcvt.s32.f32 %v1479_v30  ;;  %vm966_vm6 = vcmp.eq.f32.partialorder %v4467_v17, %v4873_v39 }
 0x1b7   :  { %v4861_v52 = vsel %vm749_vm2, %v1037_v6, 2147483647  ;;  %v4885_v6 = vsel %vm749_vm2, %v1024_v40, 2147483647  ;;  %v4894_v27 = vcvt.s32.f32 %v1329_v55 }
 0x1b8   :  { %6929 = vst [vmem:[#allocation42_spill] sm:$0xff] %v4861_v52  ;;  %v845_v15 = vpop.xlane.xlu1 %844  ;;  %1302 = vmin.xlane.f32.xlu0 %v4855_v5  ;;  %1482 = vmin.xlane.f32.xlu1 %v4857_v41  ;;  %v1509_v58 = vshra.s32 %v4861_v52, 16  ;;  %v1314_v40 = vshra.s32 %v4885_v6, 16  ;;  %v4903_v52 = vsel %vm749_vm2, %v1027_v61, 2147483647 }
 0x1b9   :  { %vm975_vm11 = vcmp.eq.f32.partialorder %v4502_v48, %v845_v15 }
 0x1ba   :  { %v1039_v14 = vsel %vm975_vm11, %v4641_v24, 32  ;;  %v4878_v46 = vcvt.s32.f32 %v1509_v58  ;;  %v4915_v55 = vcvt.s32.f32 %v1314_v40 }
 0x1bb   :  { %v4882_v30 = vsel %vm749_vm2, %v1039_v14, 2147483647 }
 0x1bc   :  { %6930 = vst [vmem:[#allocation43_spill] sm:$0xff] %v4878_v46  ;;  %6931 = vst [vmem:[#allocation44_spill] sm:$0xff] %v4882_v30  ;;  %v851_v59 = vpop.xlane.xlu1 %850  ;;  %1287 = vmin.xlane.f32.xlu0 %v4876_v43  ;;  %1512 = vmin.xlane.f32.xlu1 %v4878_v46  ;;  %v1539_v48 = vshra.s32 %v4882_v30, 16  ;;  %v1026_v30 = vsel %vm962_vm12, %v4641_v24, 32  ;;  %v4906_v46 = vpop.xlane.xlu0 %823 }
 0x1bd   :  { %vm977_vm13 = vcmp.eq.f32.partialorder %v4512_v57, %v851_v59  ;;  %v1359_v59 = vshra.s32 %v4903_v52, 16  ;;  %vm968_vm8 = vcmp.eq.f32.partialorder %v4477_v26, %v4906_v46 }
 0x1be   :  { %v1041_v15 = vsel %vm977_vm13, %v4641_v24, 32  ;;  %v4896_v58 = vcvt.s32.f32 %v1539_v48 }
 0x1bf   :  { %v4900_v14 = vsel %vm749_vm2, %v1041_v15, 2147483647  ;;  %v4924_v15 = vsel %vm749_vm2, %v1026_v30, 2147483647  ;;  %v4934_v40 = vcvt.s32.f32 %v1359_v59 }
 0x1c0   :  { %6932 = vst [vmem:[#allocation45_spill] sm:$0xff] %v4896_v58  ;;  %6933 = vst [vmem:[#allocation46_spill] sm:$0xff] %v4900_v14  ;;  %v857_v0 = vpop.xlane.xlu1 %856  ;;  %1332 = vmin.xlane.f32.xlu0 %v4894_v27  ;;  %1542 = vmin.xlane.f32.xlu1 %v4896_v58  ;;  %v1569_v57 = vshra.s32 %v4900_v14, 16  ;;  %v1029_v14 = vsel %vm965_vm14, %v4641_v24, 32 }
 0x1c1   :  { %vm979_vm15 = vcmp.eq.f32.partialorder %v4522_v2, %v857_v0  ;;  %v830_v2 = vpop.xlane.xlu0 %829  ;;  %v1344_v0 = vshra.s32 %v4924_v15, 16 }
 0x1c2   :  { %v1043_v31 = vsel %vm979_vm15, %v4641_v24, 32  ;;  %v4917_v61 = vcvt.s32.f32 %v1569_v57  ;;  %vm970_vm9 = vcmp.eq.f32.partialorder %v4487_v35, %v830_v2 }
 0x1c3   :  { %v4921_v48 = vsel %vm749_vm2, %v1043_v31, 2147483647  ;;  %v4943_v31 = vsel %vm749_vm2, %v1029_v14, 2147483647 }
 0x1c4   :  { %6934 = vst [vmem:[#allocation47_spill] sm:$0xff] %v4917_v61  ;;  %6935 = vst [vmem:[#allocation48_spill] sm:$0xff] %v4921_v48  ;;  %v863_v58 = vpop.xlane.xlu1 %862  ;;  %1317 = vmin.xlane.f32.xlu0 %v4915_v55  ;;  %1572 = vmin.xlane.f32.xlu1 %v4917_v61  ;;  %v1599_v3 = vshra.s32 %v4921_v48, 16  ;;  %v1028_v48 = vsel %vm964_vm1, %v4641_v24, 32  ;;  %v1389_v59 = vshra.s32 %v4943_v31, 16 }
 0x1c5   :  { %vm981_vm3 = vcmp.eq.f32.partialorder %v4532_v16, %v863_v58  ;;  %v4953_v58 = vcvt.s32.f32 %v1344_v0 }
 0x1c6   :  { %v1045_v45 = vsel %vm981_vm3, %v4641_v24, 32  ;;  %v4936_v30 = vcvt.s32.f32 %v1599_v3  ;;  %v4972_v0 = vcvt.s32.f32 %v1389_v59 }
 0x1c7   :  { %v4940_v57 = vsel %vm749_vm2, %v1045_v45, 2147483647  ;;  %v4962_v45 = vsel %vm749_vm2, %v1028_v48, 2147483647 }
 0x1c8   :  { %6936 = vst [vmem:[#allocation49_spill] sm:$0xff] %v4936_v30  ;;  %6937 = vst [vmem:[#allocation50_spill] sm:$0xff] %v4940_v57  ;;  %v869_v7 = vpop.xlane.xlu1 %868  ;;  %1362 = vmin.xlane.f32.xlu0 %v4934_v40  ;;  %1602 = vmin.xlane.f32.xlu1 %v4936_v30  ;;  %v1629_v16 = vshra.s32 %v4940_v57, 16  ;;  %v1031_v57 = vsel %vm967_vm4, %v4641_v24, 32  ;;  %v836_v30 = vpop.xlane.xlu0 %835 }
 0x1c9   :  { %vm983_vm5 = vcmp.eq.f32.partialorder %v4542_v29, %v869_v7  ;;  %v1374_v7 = vshra.s32 %v4962_v45, 16  ;;  %vm972_vm11 = vcmp.eq.f32.partialorder %v4497_v44, %v836_v30 }
 0x1ca   :  { %v1047_v25 = vsel %vm983_vm5, %v4641_v24, 32  ;;  %v4955_v14 = vcvt.s32.f32 %v1629_v16 }
 0x1cb   :  { %v4959_v3 = vsel %vm749_vm2, %v1047_v25, 2147483647  ;;  %v4981_v25 = vsel %vm749_vm2, %v1031_v57, 2147483647  ;;  %v4991_v59 = vcvt.s32.f32 %v1374_v7 }
 0x1cc   :  { %6938 = vst [vmem:[#allocation51_spill] sm:$0xff] %v4955_v14  ;;  %6939 = vst [vmem:[#allocation52_spill] sm:$0xff] %v4959_v3  ;;  %1347 = vmin.xlane.f32.xlu0 %v4953_v58  ;;  %v875_v12 = vpop.xlane.xlu1 %874  ;;  %1632 = vmin.xlane.f32.xlu1 %v4955_v14  ;;  %v1659_v29 = vshra.s32 %v4959_v3, 16  ;;  %v1030_v3 = vsel %vm966_vm6, %v4641_v24, 32  ;;  %v842_v39 = vpop.xlane.xlu0 %841  ;;  %v1419_v57 = vshra.s32 %v4981_v25, 16 }
 0x1cd   :  { %vm985_vm7 = vcmp.eq.f32.partialorder %v4552_v42, %v875_v12  ;;  %vm974_vm12 = vcmp.eq.f32.partialorder %v4507_v53, %v842_v39 }
 0x1ce   :  { %v1049_v34 = vsel %vm985_vm7, %v4641_v24, 32  ;;  %v4974_v48 = vcvt.s32.f32 %v1659_v29  ;;  %v4997_v29 = vsel %vm749_vm2, %v1030_v3, 2147483647  ;;  %v5005_v46 = vcvt.s32.f32 %v1419_v57 }
 0x1cf   :  { %v4978_v16 = vsel %vm749_vm2, %v1049_v34, 2147483647  ;;  %v1032_v34 = vsel %vm968_vm8, %v4641_v24, 32  ;;  %v1404_v7 = vshra.s32 %v4997_v29, 16  ;;  %v1038_v61 = vsel %vm974_vm12, %v4641_v24, 32 }
 0x1d0   :  { %6940 = vst [vmem:[#allocation53_spill] sm:$0xff] %v4974_v48  ;;  %6941 = vst [vmem:[#allocation54_spill] sm:$0xff] %v4978_v16  ;;  %1392 = vmin.xlane.f32.xlu0 %v4972_v0  ;;  %v4985_v17 = vpop.xlane.xlu1 %871  ;;  %1662 = vmin.xlane.f32.xlu1 %v4974_v48  ;;  %v1689_v42 = vshra.s32 %v4978_v16, 16  ;;  %v1034_v16 = vsel %vm970_vm9, %v4641_v24, 32  ;;  %v848_v14 = vpop.xlane.xlu0 %847 }
 0x1d1   :  { %v5020_v2 = vcvt.s32.f32 %v1404_v7  ;;  %vm976_vm14 = vcmp.eq.f32.partialorder %v4517_v62, %v848_v14 }
 0x1d2   :  { %v4993_v12 = vcvt.s32.f32 %v1689_v42  ;;  %v5012_v42 = vsel %vm749_vm2, %v1032_v34, 2147483647  ;;  %v5026_v34 = vsel %vm749_vm2, %v1034_v16, 2147483647 }
 0x1d3   :  { %v1434_v57 = vshra.s32 %v5012_v42, 16 }
 0x1d4   :  { %6942 = vst [vmem:[#allocation55_spill] sm:$0xff] %v4993_v12  ;;  %1377 = vmin.xlane.f32.xlu0 %v4991_v59  ;;  %v881_v48 = vpop.xlane.xlu1 %880  ;;  %1692 = vmin.xlane.f32.xlu1 %v4993_v12  ;;  %v854_v44 = vpop.xlane.xlu0 %853 }
 0x1d5   :  { %vm987_vm10 = vcmp.eq.f32.partialorder %v4562_v60, %v881_v48  ;;  %v5034_v7 = vcvt.s32.f32 %v1434_v57  ;;  %vm978_vm15 = vcmp.eq.f32.partialorder %v4527_v9, %v854_v44 }
 0x1d6   :  { %v1051_v26 = vsel %vm987_vm10, %v4641_v24, 32 }
 0x1d7   :  { %v5009_v3 = vsel %vm749_vm2, %v1051_v26, 2147483647  ;;  %v1036_v26 = vsel %vm972_vm11, %v4641_v24, 32  ;;  %6945 = vst [vmem:[#allocation58_spill] sm:$0xff] %v5034_v7 }
 0x1d8   :  { %6943 = vst [vmem:[#allocation56_spill] sm:$0xff] %v5009_v3  ;;  %1422 = vmin.xlane.f32.xlu0 %v5005_v46  ;;  %v5016_v35 = vpop.xlane.xlu1 %877  ;;  %v1719_v60 = vshra.s32 %v5009_v3, 16  ;;  %v5041_v3 = vsel %vm749_vm2, %v1036_v26, 2147483647  ;;  %v1040_v26 = vsel %vm976_vm14, %v4641_v24, 32 }
 0x1d9   :  { %v1494_v57 = vshra.s32 %v5041_v3, 16 }
 0x1da   :  { %v5022_v48 = vcvt.s32.f32 %v1719_v60  ;;  %v1464_v60 = vshra.s32 %v5026_v34, 16 }
 0x1db   :  { %v5063_v14 = vcvt.s32.f32 %v1494_v57 }
 0x1dc   :  { %6944 = vst [vmem:[#allocation57_spill] sm:$0xff] %v5022_v48  ;;  %1407 = vmin.xlane.f32.xlu0 %v5020_v2  ;;  %v887_v12 = vpop.xlane.xlu1 %886  ;;  %1722 = vmin.xlane.f32.xlu1 %v5022_v48  ;;  %v5049_v39 = vcvt.s32.f32 %v1464_v60  ;;  %v860_v48 = vpop.xlane.xlu0 %859 }
 0x1dd   :  { %vm989_vm13 = vcmp.eq.f32.partialorder %v4572_v20, %v887_v12  ;;  %6948 = vst [vmem:[#allocation61_spill] sm:$0xff] %v5063_v14  ;;  %vm980_vm3 = vcmp.eq.f32.partialorder %v4537_v23, %v860_v48  ;;  %v6954_v23 = vld [vmem:[#allocation13_spill] sm:$0xff] }
 0x1de   :  { %v1053_v30 = vsel %vm989_vm13, %v4641_v24, 32 }
 0x1df   :  { %v5038_v16 = vsel %vm749_vm2, %v1053_v30, 2147483647  ;;  %v5055_v30 = vsel %vm749_vm2, %v1038_v61, 2147483647 }
 0x1e0   :  { %6946 = vst [vmem:[#allocation59_spill] sm:$0xff] %v5038_v16  ;;  %1437 = vmin.xlane.f32.xlu0 %v5034_v7  ;;  %v5045_v53 = vpop.xlane.xlu1 %883  ;;  %v1749_v20 = vshra.s32 %v5038_v16, 16  ;;  %v1524_v60 = vshra.s32 %v5055_v30, 16  ;;  %v1042_v16 = vsel %vm978_vm15, %v4641_v24, 32 }
 0x1e2   :  { %v5051_v12 = vcvt.s32.f32 %v1749_v20  ;;  %v5070_v20 = vsel %vm749_vm2, %v1040_v26, 2147483647  ;;  %v5076_v44 = vcvt.s32.f32 %v1524_v60  ;;  %v1044_v26 = vsel %vm980_vm3, %v4641_v24, 32 }
 0x1e3   :  { %6950 = vst [vmem:[#allocation63_spill] sm:$0xff] %v5070_v20  ;;  %v1554_v57 = vshra.s32 %v5070_v20, 16 }
 0x1e4   :  { %6947 = vst [vmem:[#allocation60_spill] sm:$0xff] %v5051_v12  ;;  %1467 = vmin.xlane.f32.xlu0 %v5049_v39  ;;  %v893_v7 = vpop.xlane.xlu1 %892  ;;  %1752 = vmin.xlane.f32.xlu1 %v5051_v12  ;;  %6951 = vst [vmem:[#allocation64_spill] sm:$0xff] %v5076_v44 }
 0x1e5   :  { %vm991_vm1 = vcmp.eq.f32.partialorder %v4582_v47, %v893_v7  ;;  %v866_v47 = vpop.xlane.xlu0 %865  ;;  %v5090_v60 = vcvt.s32.f32 %v1554_v57 }
 0x1e6   :  { %v1055_v62 = vsel %vm991_vm1, %v4641_v24, 32 }
 0x1e7   :  { %v5067_v61 = vsel %vm749_vm2, %v1055_v62, 2147483647  ;;  %v5082_v62 = vsel %vm749_vm2, %v1042_v16, 2147483647  ;;  %v5094_v16 = vsel %vm749_vm2, %v1044_v26, 2147483647 }
 0x1e8   :  { %6949 = vst [vmem:[#allocation62_spill] sm:$0xff] %v5067_v61  ;;  %1497 = vmin.xlane.f32.xlu0 %v5063_v14  ;;  %v890_v12 = vpop.xlane.xlu1 %889  ;;  %v1779_v9 = vshra.s32 %v5067_v61, 16  ;;  %v6953_v61 = vld [vmem:[#allocation8_spill] sm:$0xff]  ;;  %6956 = vst [vmem:[#allocation13_spill] sm:$0xff] %v5094_v16  ;;  %v1614_v26 = vshra.s32 %v5094_v16, 16 }
 0x1e9   :  { %vm982_vm4 = vcmp.eq.f32.partialorder %v6953_v61, %v866_v47  ;;  %6955 = vst [vmem:[#allocation8_spill] sm:$0xff] %v5090_v60 }
 0x1ea   :  { %v5078_v7 = vcvt.s32.f32 %v1779_v9  ;;  %v1584_v9 = vshra.s32 %v5082_v62, 16 }
 0x1ec   :  { %6952 = vst [vmem:[#allocation65_spill] sm:$0xff] %v5078_v7  ;;  %1527 = vmin.xlane.f32.xlu0 %v5076_v44  ;;  %v899_v14 = vpop.xlane.xlu1 %898  ;;  %1782 = vmin.xlane.f32.xlu1 %v5078_v7  ;;  %v1046_v44 = vsel %vm982_vm4, %v4641_v24, 32  ;;  %v5104_v47 = vcvt.s32.f32 %v1584_v9 }
 0x1ed   :  { %vm993_vm5 = vcmp.eq.f32.partialorder %v6954_v23, %v899_v14  ;;  %v6958_v14 = vld [vmem:[#allocation9_spill] sm:$0xff]  ;;  %v5110_v23 = vsel %vm749_vm2, %v1046_v44, 2147483647 }
 0x1ee   :  { %v1057_v48 = vsel %vm993_vm5, %v4641_v24, 32  ;;  %vm984_vm6 = vcmp.eq.f32.partialorder %v6958_v14, %v4985_v17  ;;  %6959 = vst [vmem:[#allocation9_spill] sm:$0xff] %v5104_v47  ;;  %v6962_v17 = vld [vmem:[#allocation15_spill] sm:$0xff]  ;;  %v1644_v14 = vshra.s32 %v5110_v23, 16 }
 0x1ef   :  { %v5097_v20 = vsel %vm749_vm2, %v1057_v48, 2147483647  ;;  %v1048_v48 = vsel %vm984_vm6, %v4641_v24, 32 }
 0x1f0   :  { %6957 = vst [vmem:[#allocation66_spill] sm:$0xff] %v5097_v20  ;;  %1557 = vmin.xlane.f32.xlu0 %v5090_v60  ;;  %v896_v7 = vpop.xlane.xlu1 %895  ;;  %v1809_v61 = vshra.s32 %v5097_v20, 16  ;;  %v6961_v20 = vld [vmem:[#allocation10_spill] sm:$0xff]  ;;  %v5123_v44 = vsel %vm749_vm2, %v1048_v48, 2147483647 }
 0x1f1   :  { %vm986_vm7 = vcmp.eq.f32.partialorder %v6961_v20, %v5016_v35  ;;  %v6965_v20 = vld [vmem:[#allocation11_spill] sm:$0xff]  ;;  %v1674_v48 = vshra.s32 %v5123_v44, 16 }
 0x1f2   :  { %v5106_v57 = vcvt.s32.f32 %v1809_v61  ;;  %v5119_v61 = vcvt.s32.f32 %v1614_v26  ;;  %vm988_vm9 = vcmp.eq.f32.partialorder %v6965_v20, %v5045_v53 }
 0x1f4   :  { %6960 = vst [vmem:[#allocation67_spill] sm:$0xff] %v5106_v57  ;;  %1587 = vmin.xlane.f32.xlu0 %v5104_v47  ;;  %v905_v60 = vpop.xlane.xlu1 %904  ;;  %1812 = vmin.xlane.f32.xlu1 %v5106_v57  ;;  %6963 = vst [vmem:[#allocation10_spill] sm:$0xff] %v5119_v61  ;;  %v1050_v47 = vsel %vm986_vm7, %v4641_v24, 32 }
 0x1f5   :  { %vm995_vm8 = vcmp.eq.f32.partialorder %v6962_v17, %v905_v60  ;;  %v5133_v60 = vcvt.s32.f32 %v1644_v14  ;;  %v5139_v17 = vsel %vm749_vm2, %v1050_v47, 2147483647  ;;  %v5147_v14 = vcvt.s32.f32 %v1674_v48 }
 0x1f6   :  { %v1059_v9 = vsel %vm995_vm8, %v4641_v24, 32  ;;  %6968 = vst [vmem:[#allocation69_spill] sm:$0xff] %v5139_v17 }
 0x1f7   :  { %v5126_v16 = vsel %vm749_vm2, %v1059_v9, 2147483647  ;;  %6966 = vst [vmem:[#allocation11_spill] sm:$0xff] %v5133_v60  ;;  %v1052_v9 = vsel %vm988_vm9, %v4641_v24, 32 }
 0x1f8   :  { %6964 = vst [vmem:[#allocation15_spill] sm:$0xff] %v5126_v16  ;;  %1617 = vmin.xlane.f32.xlu0 %v5119_v61  ;;  %v902_v57 = vpop.xlane.xlu1 %901  ;;  %v1839_v35 = vshra.s32 %v5126_v16, 16  ;;  %v6969_v16 = vld [vmem:[#allocation12_spill] sm:$0xff]  ;;  %v5151_v47 = vsel %vm749_vm2, %v1052_v9, 2147483647 }
 0x1f9   :  { %vm990_vm10 = vcmp.eq.f32.partialorder %v6969_v16, %v890_v12  ;;  %6970 = vst [vmem:[#allocation12_spill] sm:$0xff] %v5147_v14  ;;  %v1734_v48 = vshra.s32 %v5151_v47, 16 }
 0x1fa   :  { %v5135_v26 = vcvt.s32.f32 %v1839_v35  ;;  %v1704_v35 = vshra.s32 %v5139_v17, 16 }
 0x1fc   :  { %6967 = vst [vmem:[#allocation68_spill] sm:$0xff] %v5135_v26  ;;  %1647 = vmin.xlane.f32.xlu0 %v5133_v60  ;;  %v911_v61 = vpop.xlane.xlu1 %910  ;;  %1842 = vmin.xlane.f32.xlu1 %v5135_v26  ;;  %v1054_v60 = vsel %vm990_vm10, %v4641_v24, 32  ;;  %v5160_v16 = vcvt.s32.f32 %v1704_v35  ;;  %v5174_v35 = vcvt.s32.f32 %v1734_v48 }
 0x1fd   :  { %vm997_vm11 = vcmp.eq.f32.partialorder %v4622_v32, %v911_v61  ;;  %v6972_v32 = vld [vmem:[#allocation14_spill] sm:$0xff]  ;;  %v5166_v9 = vsel %vm749_vm2, %v1054_v60, 2147483647 }
 0x1fe   :  { %v1061_v53 = vsel %vm997_vm11, %v4641_v24, 32  ;;  %vm992_vm12 = vcmp.eq.f32.partialorder %v6972_v32, %v896_v7  ;;  %6973 = vst [vmem:[#allocation14_spill] sm:$0xff] %v5160_v16  ;;  %6975 = vst [vmem:[#allocation72_spill] sm:$0xff] %v5166_v9 }
 0x1ff   :  { %v5154_v20 = vsel %vm749_vm2, %v1061_v53, 2147483647  ;;  %v1056_v53 = vsel %vm992_vm12, %v4641_v24, 32 }
 0x200   :  { %6971 = vst [vmem:[#allocation70_spill] sm:$0xff] %v5154_v20  ;;  %1677 = vmin.xlane.f32.xlu0 %v5147_v14  ;;  %v908_v26 = vpop.xlane.xlu1 %907  ;;  %v1869_v12 = vshra.s32 %v5154_v20, 16  ;;  %v6976_v14 = vld [vmem:[#allocation16_spill] sm:$0xff]  ;;  %v6977_v20 = vld [vmem:[#allocation18_spill] sm:$0xff]  ;;  %v5178_v60 = vsel %vm749_vm2, %v1056_v53, 2147483647 }
 0x201   :  { %vm994_vm13 = vcmp.eq.f32.partialorder %v6976_v14, %v902_v57  ;;  %v1794_v48 = vshra.s32 %v5178_v60, 16 }
 0x202   :  { %v5162_v61 = vcvt.s32.f32 %v1869_v12  ;;  %v1764_v12 = vshra.s32 %v5166_v9, 16 }
 0x204   :  { %6974 = vst [vmem:[#allocation71_spill] sm:$0xff] %v5162_v61  ;;  %1707 = vmin.xlane.f32.xlu0 %v5160_v16  ;;  %v917_v17 = vpop.xlane.xlu1 %916  ;;  %1872 = vmin.xlane.f32.xlu1 %v5162_v61  ;;  %v1058_v16 = vsel %vm994_vm13, %v4641_v24, 32  ;;  %v5187_v14 = vcvt.s32.f32 %v1764_v12 }
 0x205   :  { %vm999_vm14 = vcmp.eq.f32.partialorder %v6977_v20, %v917_v17  ;;  %v6979_v17 = vld [vmem:[#allocation17_spill] sm:$0xff]  ;;  %v5193_v53 = vsel %vm749_vm2, %v1058_v16, 2147483647 }
 0x206   :  { %v1063_v7 = vsel %vm999_vm14, %v4641_v24, 32  ;;  %vm996_vm15 = vcmp.eq.f32.partialorder %v6979_v17, %v908_v26  ;;  %6980 = vst [vmem:[#allocation18_spill] sm:$0xff] %v5187_v14  ;;  %6982 = vst [vmem:[#allocation73_spill] sm:$0xff] %v5193_v53  ;;  %v1824_v16 = vshra.s32 %v5193_v53, 16 }
 0x207   :  { %v5181_v32 = vsel %vm749_vm2, %v1063_v7, 2147483647  ;;  %v1060_v7 = vsel %vm996_vm15, %v4641_v24, 32 }
 0x208   :  { %6978 = vst [vmem:[#allocation16_spill] sm:$0xff] %v5181_v32  ;;  %1737 = vmin.xlane.f32.xlu0 %v5174_v35  ;;  %v914_v61 = vpop.xlane.xlu1 %913  ;;  %v1899_v57 = vshra.s32 %v5181_v32, 16  ;;  %v6983_v32 = vld [vmem:[#allocation20_spill] sm:$0xff]  ;;  %v5207_v17 = vsel %vm749_vm2, %v1060_v7, 2147483647 }
 0x209   :  { %vm998_vm1 = vcmp.eq.f32.partialorder %v4639_v51, %v914_v61  ;;  %v1854_v7 = vshra.s32 %v5207_v17, 16 }
 0x20a   :  { %v5189_v20 = vcvt.s32.f32 %v1899_v57  ;;  %v5203_v57 = vcvt.s32.f32 %v1794_v48 }
 0x20c   :  { %6981 = vst [vmem:[#allocation17_spill] sm:$0xff] %v5189_v20  ;;  %1767 = vmin.xlane.f32.xlu0 %v5187_v14  ;;  %v923_v9 = vpop.xlane.xlu1 %922  ;;  %1902 = vmin.xlane.f32.xlu1 %v5189_v20  ;;  %6985 = vst [vmem:[#allocation74_spill] sm:$0xff] %v5203_v57  ;;  %v1062_v20 = vsel %vm998_vm1, %v4641_v24, 32 }
 0x20d   :  { %vm1001_vm3 = vcmp.eq.f32.partialorder %v6983_v32, %v923_v9  ;;  %v5200_v26 = vpop.xlane.xlu0 %1092  ;;  %v5218_v32 = vcvt.s32.f32 %v1824_v16 }
 0x20e   :  { %6984 = vst [vmem:[#allocation20_spill] sm:$0xff] %v5200_v26  ;;  %v1065_v12 = vsel %vm1001_vm3, %v4641_v24, 32  ;;  %vm1094_vm11 = vcmp.eq.f32.partialorder %v4663_v54, %v5200_v26  ;;  %v7008_v54 = vld [vmem:[#allocation23_spill] sm:$0xff] }
 0x20f   :  { %v5210_v14 = vsel %vm749_vm2, %v1065_v12, 2147483647  ;;  %6987 = vst [vmem:[#allocation76_spill] sm:$0xff] %v5218_v32  ;;  %v5224_v12 = vsel %vm749_vm2, %v1062_v20, 2147483647 }
 0x210   :  { %6986 = vst [vmem:[#allocation75_spill] sm:$0xff] %v5210_v14  ;;  %1797 = vmin.xlane.f32.xlu0 %v5203_v57  ;;  %v920_v51 = vpop.xlane.xlu1 %919  ;;  %v1929_v61 = vshra.s32 %v5210_v14, 16  ;;  %6989 = vst [vmem:[#allocation78_spill] sm:$0xff] %v5224_v12 }
 0x211   :  { %vm1000_vm4 = vcmp.eq.f32.partialorder %v4659_v8, %v920_v51  ;;  %v5216_v9 = vpop.xlane.xlu0 %1077  ;;  %v5233_v51 = vcvt.s32.f32 %v1854_v7 }
 0x212   :  { %v5220_v48 = vcvt.s32.f32 %v1929_v61  ;;  %v1064_v53 = vsel %vm1000_vm4, %v4641_v24, 32  ;;  %v1884_v61 = vshra.s32 %v5224_v12, 16  ;;  %vm1079_vm13 = vcmp.eq.f32.partialorder %v7008_v54, %v5216_v9  ;;  %v7012_v54 = vld [vmem:[#allocation27_spill] sm:$0xff] }
 0x213   :  { %6991 = vst [vmem:[#allocation80_spill] sm:$0xff] %v5233_v51  ;;  %v5237_v20 = vsel %vm749_vm2, %v1064_v53, 2147483647 }
 0x214   :  { %6988 = vst [vmem:[#allocation77_spill] sm:$0xff] %v5220_v48  ;;  %1827 = vmin.xlane.f32.xlu0 %v5218_v32  ;;  %v929_v57 = vpop.xlane.xlu1 %928  ;;  %1932 = vmin.xlane.f32.xlu1 %v5220_v48  ;;  %v5248_v7 = vcvt.s32.f32 %v1884_v61  ;;  %v1914_v53 = vshra.s32 %v5237_v20, 16 }
 0x215   :  { %vm1003_vm5 = vcmp.eq.f32.partialorder %v4673_v10, %v929_v57  ;;  %v5230_v8 = vpop.xlane.xlu0 %1122 }
 0x216   :  { %6990 = vst [vmem:[#allocation79_spill] sm:$0xff] %v5230_v8  ;;  %v1067_v16 = vsel %vm1003_vm5, %v4641_v24, 32  ;;  %6993 = vst [vmem:[#allocation82_spill] sm:$0xff] %v5248_v7  ;;  %v5262_v61 = vcvt.s32.f32 %v1914_v53  ;;  %vm1124_vm12 = vcmp.eq.f32.partialorder %v4696_v13, %v5230_v8  ;;  %v7010_v13 = vld [vmem:[#allocation25_spill] sm:$0xff] }
 0x217   :  { %v5240_v14 = vsel %vm749_vm2, %v1067_v16, 2147483647 }
 0x218   :  { %6992 = vst [vmem:[#allocation81_spill] sm:$0xff] %v5240_v14  ;;  %1857 = vmin.xlane.f32.xlu0 %v5233_v51  ;;  %v926_v32 = vpop.xlane.xlu1 %925  ;;  %v1959_v48 = vshra.s32 %v5240_v14, 16  ;;  %6996 = vst [vmem:[#allocation85_spill] sm:$0xff] %v5262_v61 }
 0x219   :  { %vm1002_vm6 = vcmp.eq.f32.partialorder %v4693_v56, %v926_v32  ;;  %v5245_v10 = vpop.xlane.xlu0 %1107 }
 0x21a   :  { %v1066_v57 = vsel %vm1002_vm6, %v4641_v24, 32  ;;  %v5250_v12 = vcvt.s32.f32 %v1959_v48  ;;  %vm1109_vm15 = vcmp.eq.f32.partialorder %v7010_v13, %v5245_v10 }
 0x21b   :  { %v5254_v16 = vsel %vm749_vm2, %v1066_v57, 2147483647 }
 0x21c   :  { %6994 = vst [vmem:[#allocation83_spill] sm:$0xff] %v5250_v12  ;;  %6995 = vst [vmem:[#allocation84_spill] sm:$0xff] %v5254_v16  ;;  %1887 = vmin.xlane.f32.xlu0 %v5248_v7  ;;  %v935_v51 = vpop.xlane.xlu1 %934  ;;  %1962 = vmin.xlane.f32.xlu1 %v5250_v12  ;;  %v1944_v48 = vshra.s32 %v5254_v16, 16 }
 0x21d   :  { %vm1005_vm7 = vcmp.eq.f32.partialorder %v4706_v19, %v935_v51  ;;  %v5259_v56 = vpop.xlane.xlu0 %1152 }
 0x21e   :  { %v1069_v32 = vsel %vm1005_vm7, %v4641_v24, 32  ;;  %v5274_v51 = vcvt.s32.f32 %v1944_v48  ;;  %vm1154_vm14 = vcmp.eq.f32.partialorder %v4726_v33, %v5259_v56  ;;  %v7013_v33 = vld [vmem:[#allocation28_spill] sm:$0xff] }
 0x21f   :  { %v5266_v14 = vsel %vm749_vm2, %v1069_v32, 2147483647 }
 0x220   :  { %6997 = vst [vmem:[#allocation86_spill] sm:$0xff] %v5266_v14  ;;  %1917 = vmin.xlane.f32.xlu0 %v5262_v61  ;;  %v932_v57 = vpop.xlane.xlu1 %931  ;;  %v1989_v7 = vshra.s32 %v5266_v14, 16  ;;  %6998 = vst [vmem:[#allocation87_spill] sm:$0xff] %v5274_v51  ;;  %v7003_v14 = vld [vmem:[#allocation21_spill] sm:$0xff] }
 0x221   :  { %vm1004_vm8 = vcmp.eq.f32.partialorder %v4724_v11, %v932_v57  ;;  %v5271_v12 = vpop.xlane.xlu0 %1137 }
 0x222   :  { %v1068_v19 = vsel %vm1004_vm8, %v4641_v24, 32  ;;  %v5276_v53 = vcvt.s32.f32 %v1989_v7  ;;  %vm1139_vm3 = vcmp.eq.f32.partialorder %v7013_v33, %v5271_v12 }
 0x223   :  { %v5279_v16 = vsel %vm749_vm2, %v1068_v19, 2147483647 }
 0x224   :  { %6999 = vst [vmem:[#allocation88_spill] sm:$0xff] %v5276_v53  ;;  %7000 = vst [vmem:[#allocation89_spill] sm:$0xff] %v5279_v16  ;;  %1947 = vmin.xlane.f32.xlu0 %v5274_v51  ;;  %v941_v32 = vpop.xlane.xlu1 %940  ;;  %1992 = vmin.xlane.f32.xlu1 %v5276_v53  ;;  %v1974_v61 = vshra.s32 %v5279_v16, 16  ;;  %v1088_v53 = vand.u32 65535, %v7003_v14  ;;  %v1073_v14 = vand.u32 65535, %v4666_v38  ;;  %v7009_v38 = vld [vmem:[#allocation24_spill] sm:$0xff] }
 0x225   :  { %vm1007_vm9 = vcmp.eq.f32.partialorder %v4736_v28, %v941_v32  ;;  %v5285_v11 = vpop.xlane.xlu0 %1182 }
 0x226   :  { %v1071_v57 = vsel %vm1007_vm9, %v4641_v24, 32  ;;  %v5288_v48 = vcvt.s32.f32 %v1974_v61  ;;  %vm1184_vm1 = vcmp.eq.f32.partialorder %v4756_v4, %v5285_v11  ;;  %v7016_v4 = vld [vmem:[#allocation31_spill] sm:$0xff] }
 0x227   :  { %v5291_v7 = vsel %vm749_vm2, %v1071_v57, 2147483647 }
 0x228   :  { %7001 = vst [vmem:[#allocation90_spill] sm:$0xff] %v5288_v48  ;;  %7002 = vst [vmem:[#allocation91_spill] sm:$0xff] %v5291_v7  ;;  %1977 = vmin.xlane.f32.xlu0 %v5288_v48  ;;  %v938_v19 = vpop.xlane.xlu1 %937  ;;  %v2019_v51 = vshra.s32 %v5291_v7, 16  ;;  %v7006_v48 = vld [vmem:[#allocation22_spill] sm:$0xff]  ;;  %v1090_v7 = vcvt.s32.f32 %v1088_v53  ;;  %v1075_v53 = vcvt.s32.f32 %v1073_v14 }
 0x229   :  { %vm1006_vm10 = vcmp.eq.f32.partialorder %v4754_v50, %v938_v19  ;;  %v5297_v16 = vpop.xlane.xlu0 %1167  ;;  %v1118_v50 = vand.u32 65535, %v7006_v48 }
 0x22a   :  { %v1070_v28 = vsel %vm1006_vm10, %v4641_v24, 32  ;;  %v5300_v32 = vcvt.s32.f32 %v2019_v51  ;;  %v1095_v51 = vsel %vm1094_vm11, %v1090_v7, inf  ;;  %v7011_v7 = vld [vmem:[#allocation26_spill] sm:$0xff]  ;;  %vm1169_vm5 = vcmp.eq.f32.partialorder %v7016_v4, %v5297_v16 }
 0x22b   :  { %v5303_v61 = vsel %vm749_vm2, %v1070_v28, 2147483647  ;;  %v1103_v28 = vand.u32 65535, %v4684_v63  ;;  %v1120_v26 = vcvt.s32.f32 %v1118_v50  ;;  %v1178_v63 = vand.u32 65535, %v7012_v54 }
 0x22c   :  { %7004 = vst [vmem:[#allocation21_spill] sm:$0xff] %v5300_v32  ;;  %7005 = vst [vmem:[#allocation92_spill] sm:$0xff] %v5303_v61  ;;  %2022 = vmin.xlane.f32.xlu1 %v5300_v32  ;;  %v2004_v57 = vshra.s32 %v5303_v61, 16  ;;  %v1148_v32 = vand.u32 65535, %v7009_v38  ;;  %v1080_v61 = vsel %vm1079_vm13, %v1075_v53, inf  ;;  %v7015_v53 = vld [vmem:[#allocation30_spill] sm:$0xff] }
 0x22d   :  { %v5311_v19 = vpop.xlane.xlu0 %1212  ;;  %v1105_v8 = vcvt.s32.f32 %v1103_v28 }
 0x22e   :  { %v5313_v24 = vcvt.s32.f32 %v2004_v57  ;;  %v1125_v57 = vsel %vm1124_vm12, %v1120_v26, inf  ;;  %v1150_v38 = vcvt.s32.f32 %v1148_v32  ;;  %v7014_v26 = vld [vmem:[#allocation29_spill] sm:$0xff]  ;;  %vm1214_vm4 = vcmp.eq.f32.partialorder %v4776_v37, %v5311_v19  ;;  %v7019_v37 = vld [vmem:[#allocation34_spill] sm:$0xff] }
 0x22f   :  { %v1110_v14 = vsel %vm1109_vm15, %v1105_v8, inf  ;;  %v7017_v8 = vld [vmem:[#allocation32_spill] sm:$0xff] }
 0x230   :  { %7007 = vst [vmem:[#allocation22_spill] sm:$0xff] %v5313_v24  ;;  %1096 = vmin.xlane.f32.xlu1 %v1095_v51  ;;  %2007 = vmin.xlane.f32.xlu0 %v5313_v24  ;;  %v1133_v51 = vand.u32 65535, %v7011_v7  ;;  %v1155_v50 = vsel %vm1154_vm14, %v1150_v38, inf  ;;  %v1180_v7 = vcvt.s32.f32 %v1178_v63  ;;  %v1193_v38 = vand.u32 65535, %v7017_v8 }
 0x231   :  { %v5322_v48 = vpop.xlane.xlu0 %1197 }
 0x232   :  { %v1135_v54 = vcvt.s32.f32 %v1133_v51  ;;  %v1185_v32 = vsel %vm1184_vm1, %v1180_v7, inf  ;;  %vm1199_vm7 = vcmp.eq.f32.partialorder %v7019_v37, %v5322_v48  ;;  %v7020_v7 = vld [vmem:[#allocation35_spill] sm:$0xff] }
 0x234   :  { %1126 = vmin.xlane.f32.xlu1 %v1125_v57  ;;  %1081 = vmin.xlane.f32.xlu0 %v1080_v61  ;;  %v1163_v61 = vand.u32 65535, %v7014_v26  ;;  %v1208_v57 = vand.u32 65535, %v7015_v53  ;;  %v1140_v28 = vsel %vm1139_vm3, %v1135_v54, inf  ;;  %v1223_v54 = vand.u32 65535, %v7020_v7 }
 0x235   :  { %v5330_v24 = vpop.xlane.xlu0 %1242 }
 0x236   :  { %v1210_v26 = vcvt.s32.f32 %v1208_v57  ;;  %v1165_v53 = vcvt.s32.f32 %v1163_v61  ;;  %vm1244_vm6 = vcmp.eq.f32.partialorder %v4798_v18, %v5330_v24  ;;  %v7022_v18 = vld [vmem:[#allocation37_spill] sm:$0xff]  ;;  %v1225_v7 = vcvt.s32.f32 %v1223_v54 }
 0x238   :  { %1156 = vmin.xlane.f32.xlu1 %v1155_v50  ;;  %1111 = vmin.xlane.f32.xlu0 %v1110_v14  ;;  %v7018_v50 = vld [vmem:[#allocation33_spill] sm:$0xff]  ;;  %v1215_v63 = vsel %vm1214_vm4, %v1210_v26, inf  ;;  %v1170_v51 = vsel %vm1169_vm5, %v1165_v53, inf  ;;  %v7023_v26 = vld [vmem:[#allocation38_spill] sm:$0xff] }
 0x239   :  { %v5338_v13 = vpop.xlane.xlu0 %1227  ;;  %v1238_v14 = vand.u32 65535, %v7018_v50  ;;  %v1195_v50 = vcvt.s32.f32 %v1193_v38  ;;  %v1253_v53 = vand.u32 65535, %v7023_v26 }
 0x23a   :  { %vm1229_vm9 = vcmp.eq.f32.partialorder %v7022_v18, %v5338_v13  ;;  %v1358_v18 = vand.u32 65535, %v4903_v52  ;;  %v1388_v52 = vand.u32 65535, %v4943_v31  ;;  %v1418_v31 = vand.u32 65535, %v4981_v25 }
 0x23b   :  { %v1240_v8 = vcvt.s32.f32 %v1238_v14  ;;  %v1200_v61 = vsel %vm1199_vm7, %v1195_v50, inf  ;;  %v1230_v38 = vsel %vm1229_vm9, %v1225_v7, inf  ;;  %v1255_v50 = vcvt.s32.f32 %v1253_v53 }
 0x23c   :  { %1186 = vmin.xlane.f32.xlu1 %v1185_v32  ;;  %1141 = vmin.xlane.f32.xlu0 %v1140_v28  ;;  %v7021_v32 = vld [vmem:[#allocation36_spill] sm:$0xff] }
 0x23d   :  { %v5346_v33 = vpop.xlane.xlu0 %1272  ;;  %v1268_v28 = vand.u32 65535, %v7021_v32  ;;  %v1245_v57 = vsel %vm1244_vm6, %v1240_v8, inf  ;;  %v1328_v32 = vand.u32 65535, %v4864_v22 }
 0x23e   :  { %vm1274_vm8 = vcmp.eq.f32.partialorder %v4820_v49, %v5346_v33  ;;  %v1283_v49 = vand.u32 65535, %v4844_v36 }
 0x23f   :  { %v1270_v37 = vcvt.s32.f32 %v1268_v28 }
 0x240   :  { %1216 = vmin.xlane.f32.xlu1 %v1215_v63  ;;  %1171 = vmin.xlane.f32.xlu0 %v1170_v51  ;;  %v1298_v63 = vand.u32 65535, %v4827_v1 }
 0x241   :  { %v5354_v4 = vpop.xlane.xlu0 %1257  ;;  %v1275_v14 = vsel %vm1274_vm8, %v1270_v37, inf }
 0x242   :  { %vm1259_vm11 = vcmp.eq.f32.partialorder %v4835_v21, %v5354_v4  ;;  %v1300_v1 = vcvt.s32.f32 %v1298_v63  ;;  %v1330_v21 = vcvt.s32.f32 %v1328_v32  ;;  %v5385_v63 = vpop.xlane.xlu1 %1452 }
 0x243   :  { %v1260_v54 = vsel %vm1259_vm11, %v1255_v50, inf }
 0x244   :  { %1246 = vmin.xlane.f32.xlu1 %v1245_v57  ;;  %1201 = vmin.xlane.f32.xlu0 %v1200_v61  ;;  %v1285_v61 = vcvt.s32.f32 %v1283_v49  ;;  %v1373_v49 = vand.u32 65535, %v4962_v45  ;;  %v7024_v45 = vld [vmem:[#allocation39_spill] sm:$0xff] }
 0x245   :  { %v5362_v51 = vpop.xlane.xlu0 %1302 }
 0x246   :  { %vm1304_vm10 = vcmp.eq.f32.partialorder %v4855_v5, %v5362_v51  ;;  %v1313_v5 = vand.u32 65535, %v4885_v6  ;;  %v1343_v6 = vand.u32 65535, %v4924_v15 }
 0x247   :  { %v1305_v28 = vsel %vm1304_vm10, %v1300_v1, inf  ;;  %v1390_v1 = vcvt.s32.f32 %v1388_v52 }
 0x248   :  { %1276 = vmin.xlane.f32.xlu1 %v1275_v14  ;;  %1231 = vmin.xlane.f32.xlu0 %v1230_v38  ;;  %v1315_v53 = vcvt.s32.f32 %v1313_v5  ;;  %v1345_v38 = vcvt.s32.f32 %v1343_v6  ;;  %v1448_v5 = vand.u32 65535, %v7024_v45 }
 0x249   :  { %v5370_v8 = vpop.xlane.xlu0 %1287 }
 0x24a   :  { %vm1289_vm12 = vcmp.eq.f32.partialorder %v4876_v43, %v5370_v8  ;;  %v1450_v6 = vcvt.s32.f32 %v1448_v5 }
 0x24b   :  { %v1290_v22 = vsel %vm1289_vm12, %v1285_v61, inf }
 0x24c   :  { %1306 = vmin.xlane.f32.xlu1 %v1305_v28  ;;  %1261 = vmin.xlane.f32.xlu0 %v1260_v54 }
 0x24d   :  { %v5375_v57 = vpop.xlane.xlu0 %1332 }
 0x24e   :  { %vm1334_vm13 = vcmp.eq.f32.partialorder %v4894_v27, %v5375_v57  ;;  %v1360_v27 = vcvt.s32.f32 %v1358_v18 }
 0x24f   :  { %v1335_v36 = vsel %vm1334_vm13, %v1330_v21, inf  ;;  %v1403_v21 = vand.u32 65535, %v4997_v29 }
 0x250   :  { %1336 = vmin.xlane.f32.xlu1 %v1335_v36  ;;  %1291 = vmin.xlane.f32.xlu0 %v1290_v22  ;;  %v7025_v22 = vld [vmem:[#allocation40_spill] sm:$0xff] }
 0x251   :  { %v5380_v26 = vpop.xlane.xlu0 %1317  ;;  %vm1454_vm6 = vcmp.eq.f32.partialorder %v7025_v22, %v5385_v63  ;;  %v1405_v29 = vcvt.s32.f32 %v1403_v21 }
 0x252   :  { %vm1319_vm14 = vcmp.eq.f32.partialorder %v4915_v55, %v5380_v26  ;;  %v5396_v55 = vpop.xlane.xlu1 %1482 }
 0x253   :  { %v1320_v43 = vsel %vm1319_vm14, %v1315_v53, inf  ;;  %v1433_v53 = vand.u32 65535, %v5012_v42  ;;  %vm1484_vm8 = vcmp.eq.f32.partialorder %v4857_v41, %v5396_v55  ;;  %v7030_v41 = vld [vmem:[#allocation44_spill] sm:$0xff] }
 0x254   :  { %1321 = vmin.xlane.f32.xlu0 %v1320_v43 }
 0x255   :  { %v5387_v37 = vpop.xlane.xlu0 %1362 }
 0x256   :  { %vm1364_vm15 = vcmp.eq.f32.partialorder %v4934_v40, %v5387_v37  ;;  %v5404_v50 = vpop.xlane.xlu1 %1512 }
 0x257   :  { %v1365_v7 = vsel %vm1364_vm15, %v1360_v27, inf }
 0x258   :  { %1366 = vmin.xlane.f32.xlu1 %v1365_v7  ;;  %v7027_v7 = vld [vmem:[#allocation42_spill] sm:$0xff] }
 0x259   :  { %v5392_v14 = vpop.xlane.xlu0 %1347  ;;  %v1508_v52 = vand.u32 65535, %v7027_v7 }
 0x25a   :  { %vm1349_vm1 = vcmp.eq.f32.partialorder %v4953_v58, %v5392_v14  ;;  %v1375_v58 = vcvt.s32.f32 %v1373_v49  ;;  %v5416_v25 = vpop.xlane.xlu1 %1542  ;;  %v1435_v49 = vcvt.s32.f32 %v1433_v53 }
 0x25b   :  { %v1350_v15 = vsel %vm1349_vm1, %v1345_v38, inf  ;;  %v1463_v38 = vand.u32 65535, %v5026_v34  ;;  %v1493_v34 = vand.u32 65535, %v5041_v3  ;;  %v1510_v21 = vcvt.s32.f32 %v1508_v52  ;;  %v7034_v52 = vld [vmem:[#allocation47_spill] sm:$0xff] }
 0x25c   :  { %1351 = vmin.xlane.f32.xlu0 %v1350_v15  ;;  %v1523_v3 = vand.u32 65535, %v5055_v30 }
 0x25d   :  { %v5399_v32 = vpop.xlane.xlu0 %1392  ;;  %v1465_v5 = vcvt.s32.f32 %v1463_v38  ;;  %v7035_v38 = vld [vmem:[#allocation63_spill] sm:$0xff] }
 0x25e   :  { %vm1394_vm3 = vcmp.eq.f32.partialorder %v4972_v0, %v5399_v32  ;;  %v1420_v0 = vcvt.s32.f32 %v1418_v31  ;;  %v5430_v15 = vpop.xlane.xlu1 %1572  ;;  %v1525_v30 = vcvt.s32.f32 %v1523_v3  ;;  %v7040_v3 = vld [vmem:[#allocation8_spill] sm:$0xff] }
 0x25f   :  { %v1395_v40 = vsel %vm1394_vm3, %v1390_v1, inf  ;;  %vm1574_vm14 = vcmp.eq.f32.partialorder %v7034_v52, %v5430_v15 }
 0x260   :  { %1396 = vmin.xlane.f32.xlu1 %v1395_v40  ;;  %v7028_v40 = vld [vmem:[#allocation58_spill] sm:$0xff] }
 0x261   :  { %v5406_v28 = vpop.xlane.xlu0 %1377 }
 0x262   :  { %vm1379_vm4 = vcmp.eq.f32.partialorder %v4991_v59, %v5406_v28  ;;  %v7026_v59 = vld [vmem:[#allocation41_spill] sm:$0xff] }
 0x263   :  { %v1380_v54 = vsel %vm1379_vm4, %v1375_v58, inf  ;;  %v1478_v18 = vand.u32 65535, %v7026_v59  ;;  %v7029_v58 = vld [vmem:[#allocation43_spill] sm:$0xff]  ;;  %v7031_v59 = vld [vmem:[#allocation45_spill] sm:$0xff] }
 0x264   :  { %1381 = vmin.xlane.f32.xlu0 %v1380_v54  ;;  %vm1514_vm10 = vcmp.eq.f32.partialorder %v7029_v58, %v5404_v50  ;;  %v1538_v54 = vand.u32 65535, %v7030_v41  ;;  %vm1544_vm12 = vcmp.eq.f32.partialorder %v7031_v59, %v5416_v25  ;;  %v7037_v41 = vld [vmem:[#allocation64_spill] sm:$0xff]  ;;  %v1583_v59 = vand.u32 65535, %v5082_v62 }
 0x265   :  { %v5412_v61 = vpop.xlane.xlu0 %1422  ;;  %v1480_v1 = vcvt.s32.f32 %v1478_v18  ;;  %v1515_v22 = vsel %vm1514_vm10, %v1510_v21, inf  ;;  %v7032_v18 = vld [vmem:[#allocation46_spill] sm:$0xff] }
 0x266   :  { %vm1424_vm5 = vcmp.eq.f32.partialorder %v5005_v46, %v5412_v61  ;;  %v1455_v46 = vsel %vm1454_vm6, %v1450_v6, inf  ;;  %v1568_v53 = vand.u32 65535, %v7032_v18  ;;  %v1495_v6 = vcvt.s32.f32 %v1493_v34  ;;  %v7039_v18 = vld [vmem:[#allocation50_spill] sm:$0xff] }
 0x267   :  { %v1425_v36 = vsel %vm1424_vm5, %v1420_v0, inf  ;;  %v1485_v31 = vsel %vm1484_vm8, %v1480_v1, inf  ;;  %v5444_v0 = vpop.xlane.xlu1 %1602  ;;  %v1585_v52 = vcvt.s32.f32 %v1583_v59  ;;  %v1643_v59 = vand.u32 65535, %v5110_v23 }
 0x268   :  { %1426 = vmin.xlane.f32.xlu1 %v1425_v36  ;;  %v1673_v23 = vand.u32 65535, %v5123_v44 }
 0x269   :  { %v5422_v43 = vpop.xlane.xlu0 %1407 }
 0x26a   :  { %vm1409_vm7 = vcmp.eq.f32.partialorder %v5020_v2, %v5422_v43 }
 0x26b   :  { %v1410_v27 = vsel %vm1409_vm7, %v1405_v29, inf  ;;  %v5457_v1 = vpop.xlane.xlu1 %1632 }
 0x26c   :  { %1411 = vmin.xlane.f32.xlu0 %v1410_v27  ;;  %1456 = vmin.xlane.f32.xlu1 %v1455_v46  ;;  %v1540_v27 = vcvt.s32.f32 %v1538_v54  ;;  %v7033_v46 = vld [vmem:[#allocation61_spill] sm:$0xff] }
 0x26d   :  { %v5432_v42 = vpop.xlane.xlu0 %1437 }
 0x26e   :  { %vm1439_vm9 = vcmp.eq.f32.partialorder %v7028_v40, %v5432_v42  ;;  %v1545_v7 = vsel %vm1544_vm12, %v1540_v27, inf }
 0x26f   :  { %v1440_v2 = vsel %vm1439_vm9, %v1435_v49, inf  ;;  %v1553_v49 = vand.u32 65535, %v7035_v38 }
 0x270   :  { %1441 = vmin.xlane.f32.xlu0 %v1440_v2  ;;  %1486 = vmin.xlane.f32.xlu1 %v1485_v31  ;;  %v1570_v2 = vcvt.s32.f32 %v1568_v53  ;;  %v7036_v31 = vld [vmem:[#allocation48_spill] sm:$0xff]  ;;  %v1628_v53 = vand.u32 65535, %v7039_v18  ;;  %v7046_v18 = vld [vmem:[#allocation54_spill] sm:$0xff] }
 0x271   :  { %v5440_v45 = vpop.xlane.xlu0 %1467  ;;  %v1598_v58 = vand.u32 65535, %v7036_v31  ;;  %v7044_v31 = vld [vmem:[#allocation9_spill] sm:$0xff] }
 0x272   :  { %vm1469_vm11 = vcmp.eq.f32.partialorder %v5049_v39, %v5440_v45  ;;  %v1575_v34 = vsel %vm1574_vm14, %v1570_v2, inf  ;;  %v1630_v38 = vcvt.s32.f32 %v1628_v53  ;;  %v1688_v53 = vand.u32 65535, %v7046_v18 }
 0x273   :  { %v1470_v36 = vsel %vm1469_vm11, %v1465_v5, inf  ;;  %v7038_v5 = vld [vmem:[#allocation49_spill] sm:$0xff] }
 0x274   :  { %1471 = vmin.xlane.f32.xlu0 %v1470_v36  ;;  %1516 = vmin.xlane.f32.xlu1 %v1515_v22  ;;  %vm1604_vm1 = vcmp.eq.f32.partialorder %v7038_v5, %v5444_v0  ;;  %v1555_v36 = vcvt.s32.f32 %v1553_v49  ;;  %v1600_v22 = vcvt.s32.f32 %v1598_v58  ;;  %v7042_v49 = vld [vmem:[#allocation13_spill] sm:$0xff] }
 0x275   :  { %v5450_v29 = vpop.xlane.xlu0 %1497  ;;  %v1613_v62 = vand.u32 65535, %v7042_v49  ;;  %v1645_v49 = vcvt.s32.f32 %v1643_v59  ;;  %v1675_v59 = vcvt.s32.f32 %v1673_v23 }
 0x276   :  { %vm1499_vm13 = vcmp.eq.f32.partialorder %v7033_v46, %v5450_v29  ;;  %v1605_v46 = vsel %vm1604_vm1, %v1600_v22, inf }
 0x277   :  { %v1500_v39 = vsel %vm1499_vm13, %v1495_v6, inf  ;;  %v5472_v6 = vpop.xlane.xlu1 %1662 }
 0x278   :  { %1501 = vmin.xlane.f32.xlu0 %v1500_v39  ;;  %1546 = vmin.xlane.f32.xlu1 %v1545_v7  ;;  %v7041_v39 = vld [vmem:[#allocation51_spill] sm:$0xff] }
 0x279   :  { %v5459_v40 = vpop.xlane.xlu0 %1527  ;;  %vm1634_vm4 = vcmp.eq.f32.partialorder %v7041_v39, %v5457_v1  ;;  %v7048_v39 = vld [vmem:[#allocation55_spill] sm:$0xff] }
 0x27a   :  { %vm1529_vm15 = vcmp.eq.f32.partialorder %v7037_v41, %v5459_v40  ;;  %v1635_v41 = vsel %vm1634_vm4, %v1630_v38, inf }
 0x27b   :  { %v1530_v54 = vsel %vm1529_vm15, %v1525_v30, inf  ;;  %v7043_v30 = vld [vmem:[#allocation52_spill] sm:$0xff] }
 0x27c   :  { %1531 = vmin.xlane.f32.xlu0 %v1530_v54  ;;  %1576 = vmin.xlane.f32.xlu1 %v1575_v34  ;;  %v1658_v2 = vand.u32 65535, %v7043_v30  ;;  %v7045_v54 = vld [vmem:[#allocation53_spill] sm:$0xff]  ;;  %v5484_v34 = vpop.xlane.xlu1 %1692  ;;  %v7049_v30 = vld [vmem:[#allocation56_spill] sm:$0xff] }
 0x27d   :  { %v5466_v21 = vpop.xlane.xlu0 %1557  ;;  %vm1664_vm6 = vcmp.eq.f32.partialorder %v7045_v54, %v5472_v6  ;;  %vm1694_vm8 = vcmp.eq.f32.partialorder %v7048_v39, %v5484_v34  ;;  %v7051_v54 = vld [vmem:[#allocation57_spill] sm:$0xff] }
 0x27e   :  { %vm1559_vm3 = vcmp.eq.f32.partialorder %v7040_v3, %v5466_v21  ;;  %v1660_v22 = vcvt.s32.f32 %v1658_v2  ;;  %v7047_v3 = vld [vmem:[#allocation10_spill] sm:$0xff]  ;;  %v1718_v2 = vand.u32 65535, %v7049_v30 }
 0x27f   :  { %v1560_v27 = vsel %vm1559_vm3, %v1555_v36, inf  ;;  %v1615_v36 = vcvt.s32.f32 %v1613_v62  ;;  %v1690_v62 = vcvt.s32.f32 %v1688_v53  ;;  %v7052_v53 = vld [vmem:[#allocation69_spill] sm:$0xff] }
 0x280   :  { %1561 = vmin.xlane.f32.xlu0 %v1560_v27  ;;  %1606 = vmin.xlane.f32.xlu1 %v1605_v46  ;;  %v1665_v46 = vsel %vm1664_vm6, %v1660_v22, inf  ;;  %v1720_v18 = vcvt.s32.f32 %v1718_v2  ;;  %v1703_v44 = vand.u32 65535, %v7052_v53  ;;  %v7058_v53 = vld [vmem:[#allocation14_spill] sm:$0xff] }
 0x281   :  { %v5476_v7 = vpop.xlane.xlu0 %1587 }
 0x282   :  { %vm1589_vm5 = vcmp.eq.f32.partialorder %v7044_v31, %v5476_v7  ;;  %v7050_v31 = vld [vmem:[#allocation11_spill] sm:$0xff]  ;;  %v1705_v23 = vcvt.s32.f32 %v1703_v44 }
 0x283   :  { %v1590_v58 = vsel %vm1589_vm5, %v1585_v52, inf  ;;  %v5494_v52 = vpop.xlane.xlu1 %1722 }
 0x284   :  { %1591 = vmin.xlane.f32.xlu0 %v1590_v58  ;;  %1636 = vmin.xlane.f32.xlu1 %v1635_v41  ;;  %v1695_v41 = vsel %vm1694_vm8, %v1690_v62, inf  ;;  %vm1724_vm10 = vcmp.eq.f32.partialorder %v7051_v54, %v5494_v52  ;;  %v7055_v62 = vld [vmem:[#allocation60_spill] sm:$0xff] }
 0x285   :  { %v5486_v5 = vpop.xlane.xlu0 %1617 }
 0x286   :  { %vm1619_vm7 = vcmp.eq.f32.partialorder %v7047_v3, %v5486_v5  ;;  %v7053_v3 = vld [vmem:[#allocation59_spill] sm:$0xff] }
 0x287   :  { %v1620_v27 = vsel %vm1619_vm7, %v1615_v36, inf  ;;  %v5504_v36 = vpop.xlane.xlu1 %1752 }
 0x288   :  { %1621 = vmin.xlane.f32.xlu0 %v1620_v27  ;;  %1666 = vmin.xlane.f32.xlu1 %v1665_v46  ;;  %v1748_v27 = vand.u32 65535, %v7053_v3  ;;  %v7054_v46 = vld [vmem:[#allocation12_spill] sm:$0xff]  ;;  %vm1754_vm12 = vcmp.eq.f32.partialorder %v7055_v62, %v5504_v36  ;;  %v7059_v3 = vld [vmem:[#allocation65_spill] sm:$0xff]  ;;  %v7063_v62 = vld [vmem:[#allocation66_spill] sm:$0xff] }
 0x289   :  { %v5496_v38 = vpop.xlane.xlu0 %1647 }
 0x28a   :  { %vm1649_vm9 = vcmp.eq.f32.partialorder %v7050_v31, %v5496_v38  ;;  %v1750_v2 = vcvt.s32.f32 %v1748_v27 }
 0x28b   :  { %v1650_v58 = vsel %vm1649_vm9, %v1645_v49, inf  ;;  %v1725_v49 = vsel %vm1724_vm10, %v1720_v18, inf  ;;  %v5514_v30 = vpop.xlane.xlu1 %1782 }
 0x28c   :  { %1651 = vmin.xlane.f32.xlu0 %v1650_v58  ;;  %1696 = vmin.xlane.f32.xlu1 %v1695_v41  ;;  %7056 = vst [vmem:[#allocation23_spill] sm:$0xff] %v5514_v30  ;;  %v1733_v58 = vand.u32 65535, %v5151_v47  ;;  %v7057_v41 = vld [vmem:[#allocation62_spill] sm:$0xff]  ;;  %v1755_v18 = vsel %vm1754_vm12, %v1750_v2, inf  ;;  %vm1784_vm14 = vcmp.eq.f32.partialorder %v7059_v3, %v5514_v30  ;;  %v1793_v3 = vand.u32 65535, %v5178_v60 }
 0x28d   :  { %v5506_v22 = vpop.xlane.xlu0 %1677  ;;  %v1778_v54 = vand.u32 65535, %v7057_v41  ;;  %v1808_v41 = vand.u32 65535, %v7063_v62  ;;  %v7067_v30 = vld [vmem:[#allocation18_spill] sm:$0xff] }
 0x28e   :  { %vm1679_vm11 = vcmp.eq.f32.partialorder %v7054_v46, %v5506_v22  ;;  %v1735_v44 = vcvt.s32.f32 %v1733_v58 }
 0x28f   :  { %v1680_v39 = vsel %vm1679_vm11, %v1675_v59, inf  ;;  %v5524_v46 = vpop.xlane.xlu1 %1812  ;;  %v1780_v27 = vcvt.s32.f32 %v1778_v54  ;;  %v1810_v54 = vcvt.s32.f32 %v1808_v41 }
 0x290   :  { %1681 = vmin.xlane.f32.xlu0 %v1680_v39  ;;  %1726 = vmin.xlane.f32.xlu1 %v1725_v49  ;;  %7060 = vst [vmem:[#allocation24_spill] sm:$0xff] %v5524_v46  ;;  %v7062_v49 = vld [vmem:[#allocation72_spill] sm:$0xff] }
 0x291   :  { %v5516_v31 = vpop.xlane.xlu0 %1707  ;;  %v1763_v47 = vand.u32 65535, %v7062_v49  ;;  %v1785_v2 = vsel %vm1784_vm14, %v1780_v27, inf  ;;  %v7066_v49 = vld [vmem:[#allocation15_spill] sm:$0xff]  ;;  %v7068_v27 = vld [vmem:[#allocation68_spill] sm:$0xff] }
 0x292   :  { %vm1709_vm13 = vcmp.eq.f32.partialorder %v7058_v53, %v5516_v31  ;;  %v7064_v53 = vld [vmem:[#allocation67_spill] sm:$0xff]  ;;  %v1838_v62 = vand.u32 65535, %v7066_v49 }
 0x293   :  { %v1710_v59 = vsel %vm1709_vm13, %v1705_v23, inf  ;;  %vm1814_vm1 = vcmp.eq.f32.partialorder %v7064_v53, %v5524_v46  ;;  %v1765_v58 = vcvt.s32.f32 %v1763_v47  ;;  %v1795_v47 = vcvt.s32.f32 %v1793_v3  ;;  %v7071_v53 = vld [vmem:[#allocation73_spill] sm:$0xff]  ;;  %v7072_v46 = vld [vmem:[#allocation70_spill] sm:$0xff] }
 0x294   :  { %1711 = vmin.xlane.f32.xlu0 %v1710_v59  ;;  %1756 = vmin.xlane.f32.xlu1 %v1755_v18  ;;  %v5534_v59 = vpop.xlane.xlu1 %1842  ;;  %v1840_v41 = vcvt.s32.f32 %v1838_v62  ;;  %v1823_v60 = vand.u32 65535, %v7071_v53  ;;  %v1868_v49 = vand.u32 65535, %v7072_v46  ;;  %v7076_v53 = vld [vmem:[#allocation16_spill] sm:$0xff] }
 0x295   :  { %v5526_v39 = vpop.xlane.xlu0 %1737  ;;  %7065 = vst [vmem:[#allocation26_spill] sm:$0xff] %v5534_v59  ;;  %vm1844_vm4 = vcmp.eq.f32.partialorder %v7068_v27, %v5534_v59  ;;  %v1853_v27 = vand.u32 65535, %v5207_v17  ;;  %v1898_v46 = vand.u32 65535, %v7076_v53  ;;  %v7077_v59 = vld [vmem:[#allocation76_spill] sm:$0xff] }
 0x296   :  { %7061 = vst [vmem:[#allocation25_spill] sm:$0xff] %v5526_v39  ;;  %vm1739_vm15 = vcmp.eq.f32.partialorder %v5174_v35, %v5526_v39  ;;  %v7073_v39 = vld [vmem:[#allocation74_spill] sm:$0xff]  ;;  %v1825_v3 = vcvt.s32.f32 %v1823_v60  ;;  %v1870_v62 = vcvt.s32.f32 %v1868_v49 }
 0x297   :  { %v1740_v23 = vsel %vm1739_vm15, %v1735_v44, inf  ;;  %v1815_v44 = vsel %vm1814_vm1, %v1810_v54, inf  ;;  %v7074_v54 = vld [vmem:[#allocation71_spill] sm:$0xff]  ;;  %v1855_v60 = vcvt.s32.f32 %v1853_v27  ;;  %v1900_v49 = vcvt.s32.f32 %v1898_v46 }
 0x298   :  { %1741 = vmin.xlane.f32.xlu0 %v1740_v23  ;;  %1786 = vmin.xlane.f32.xlu1 %v1785_v2  ;;  %v5544_v23 = vpop.xlane.xlu1 %1872 }
 0x299   :  { %v5536_v18 = vpop.xlane.xlu0 %1767  ;;  %7069 = vst [vmem:[#allocation27_spill] sm:$0xff] %v5544_v23  ;;  %vm1874_vm6 = vcmp.eq.f32.partialorder %v7074_v54, %v5544_v23  ;;  %v7081_v54 = vld [vmem:[#allocation78_spill] sm:$0xff]  ;;  %v7082_v23 = vld [vmem:[#allocation75_spill] sm:$0xff] }
 0x29a   :  { %vm1769_vm3 = vcmp.eq.f32.partialorder %v7067_v30, %v5536_v18  ;;  %v1883_v17 = vand.u32 65535, %v7081_v54  ;;  %v1928_v53 = vand.u32 65535, %v7082_v23  ;;  %v7086_v54 = vld [vmem:[#allocation81_spill] sm:$0xff] }
 0x29b   :  { %v1770_v35 = vsel %vm1769_vm3, %v1765_v58, inf  ;;  %v1845_v58 = vsel %vm1844_vm4, %v1840_v41, inf  ;;  %v7078_v41 = vld [vmem:[#allocation17_spill] sm:$0xff]  ;;  %v1958_v23 = vand.u32 65535, %v7086_v54 }
 0x29c   :  { %1771 = vmin.xlane.f32.xlu0 %v1770_v35  ;;  %1816 = vmin.xlane.f32.xlu1 %v1815_v44  ;;  %v5554_v35 = vpop.xlane.xlu1 %1902  ;;  %v1885_v27 = vcvt.s32.f32 %v1883_v17  ;;  %v1930_v46 = vcvt.s32.f32 %v1928_v53  ;;  %v7090_v17 = vld [vmem:[#allocation84_spill] sm:$0xff]  ;;  %v7092_v54 = vld [vmem:[#allocation85_spill] sm:$0xff] }
 0x29d   :  { %v5546_v2 = vpop.xlane.xlu0 %1797  ;;  %7075 = vst [vmem:[#allocation29_spill] sm:$0xff] %v5554_v35  ;;  %vm1904_vm8 = vcmp.eq.f32.partialorder %v7078_v41, %v5554_v35  ;;  %v1913_v41 = vand.u32 65535, %v5237_v20  ;;  %v7087_v35 = vld [vmem:[#allocation82_spill] sm:$0xff]  ;;  %v1943_v53 = vand.u32 65535, %v7090_v17 }
 0x29e   :  { %7070 = vst [vmem:[#allocation28_spill] sm:$0xff] %v5546_v2  ;;  %vm1799_vm5 = vcmp.eq.f32.partialorder %v7073_v39, %v5546_v2  ;;  %v7083_v2 = vld [vmem:[#allocation80_spill] sm:$0xff] }
 0x29f   :  { %v1800_v30 = vsel %vm1799_vm5, %v1795_v47, inf  ;;  %v1875_v47 = vsel %vm1874_vm6, %v1870_v62, inf  ;;  %v7084_v62 = vld [vmem:[#allocation77_spill] sm:$0xff]  ;;  %vm2032_vm5 = vcmask 7168  }
 0x2a0   :  { %1801 = vmin.xlane.f32.xlu0 %v1800_v30  ;;  %1846 = vmin.xlane.f32.xlu1 %v1845_v58 }
 0x2a1   :  { %v5556_v44 = vpop.xlane.xlu0 %1827  ;;  %v5564_v30 = vpop.xlane.xlu1 %1932 }
 0x2a2   :  { %vm1829_vm7 = vcmp.eq.f32.partialorder %v7077_v59, %v5556_v44  ;;  %7079 = vst [vmem:[#allocation30_spill] sm:$0xff] %v5564_v30  ;;  %vm1934_vm10 = vcmp.eq.f32.partialorder %v7084_v62, %v5564_v30  ;;  %v1960_v62 = vcvt.s32.f32 %v1958_v23  ;;  %v7091_v30 = vld [vmem:[#allocation86_spill] sm:$0xff]  ;;  %v7096_v23 = vld [vmem:[#allocation87_spill] sm:$0xff] }
 0x2a3   :  { %v1830_v39 = vsel %vm1829_vm7, %v1825_v3, inf  ;;  %v1905_v3 = vsel %vm1904_vm8, %v1900_v49, inf  ;;  %v7088_v49 = vld [vmem:[#allocation83_spill] sm:$0xff]  ;;  %v1988_v20 = vand.u32 65535, %v7091_v30  ;;  %v7097_v30 = vld [vmem:[#allocation88_spill] sm:$0xff] }
 0x2a4   :  { %1831 = vmin.xlane.f32.xlu0 %v1830_v39  ;;  %1876 = vmin.xlane.f32.xlu1 %v1875_v47 }
 0x2a5   :  { %v5566_v58 = vpop.xlane.xlu0 %1857 }
 0x2a6   :  { %7080 = vst [vmem:[#allocation31_spill] sm:$0xff] %v5566_v58  ;;  %vm1859_vm9 = vcmp.eq.f32.partialorder %v7083_v2, %v5566_v58 }
 0x2a7   :  { %v1860_v59 = vsel %vm1859_vm9, %v1855_v60, inf  ;;  %v1935_v60 = vsel %vm1934_vm10, %v1930_v46, inf }
 0x2a8   :  { %1861 = vmin.xlane.f32.xlu0 %v1860_v59  ;;  %1906 = vmin.xlane.f32.xlu1 %v1905_v3  ;;  %v1915_v3 = vcvt.s32.f32 %v1913_v41 }
 0x2a9   :  { %v5574_v39 = vpop.xlane.xlu0 %1887  ;;  %v5576_v47 = vpop.xlane.xlu1 %1962 }
 0x2aa   :  { %7085 = vst [vmem:[#allocation32_spill] sm:$0xff] %v5576_v47  ;;  %vm1889_vm11 = vcmp.eq.f32.partialorder %v7087_v35, %v5574_v39  ;;  %vm1964_vm12 = vcmp.eq.f32.partialorder %v7088_v49, %v5576_v47  ;;  %v7095_v49 = vld [vmem:[#allocation89_spill] sm:$0xff] }
 0x2ab   :  { %v1890_v2 = vsel %vm1889_vm11, %v1885_v27, inf  ;;  %v1965_v35 = vsel %vm1964_vm12, %v1960_v62, inf  ;;  %v1973_v41 = vand.u32 65535, %v7095_v49  ;;  %v7099_v62 = vld [vmem:[#allocation91_spill] sm:$0xff] }
 0x2ac   :  { %1891 = vmin.xlane.f32.xlu0 %v1890_v2  ;;  %1936 = vmin.xlane.f32.xlu1 %v1935_v60  ;;  %v1945_v2 = vcvt.s32.f32 %v1943_v53  ;;  %v1990_v60 = vcvt.s32.f32 %v1988_v20  ;;  %v7100_v53 = vld [vmem:[#allocation90_spill] sm:$0xff] }
 0x2ad   :  { %v5584_v59 = vpop.xlane.xlu0 %1917 }
 0x2ae   :  { %7089 = vst [vmem:[#allocation33_spill] sm:$0xff] %v5584_v59  ;;  %vm1919_vm13 = vcmp.eq.f32.partialorder %v7092_v54, %v5584_v59 }
 0x2af   :  { %v1920_v58 = vsel %vm1919_vm13, %v1915_v3, inf  ;;  %v1975_v3 = vcvt.s32.f32 %v1973_v41  ;;  %v1084_v41 = vcvt.f32.s32 %v5216_v9  ;;  %v1159_v9 = vcvt.f32.s32 %v5259_v56 }
 0x2b0   :  { %1921 = vmin.xlane.f32.xlu0 %v1920_v58  ;;  %1966 = vmin.xlane.f32.xlu1 %v1965_v35  ;;  %v2018_v35 = vand.u32 65535, %v7099_v62  ;;  %v1144_v56 = vcvt.f32.s32 %v5271_v12 }
 0x2b1   :  { %v5590_v27 = vpop.xlane.xlu0 %1947  ;;  %v5592_v46 = vpop.xlane.xlu1 %1992 }
 0x2b2   :  { %7093 = vst [vmem:[#allocation34_spill] sm:$0xff] %v5590_v27  ;;  %7094 = vst [vmem:[#allocation35_spill] sm:$0xff] %v5592_v46  ;;  %vm1949_vm14 = vcmp.eq.f32.partialorder %v7096_v23, %v5590_v27  ;;  %vm1994_vm15 = vcmp.eq.f32.partialorder %v7097_v30, %v5592_v46  ;;  %v2020_v23 = vcvt.s32.f32 %v2018_v35  ;;  %v7102_v27 = vld [vmem:[#allocation92_spill] sm:$0xff]  ;;  %v7106_v35 = vld [vmem:[#allocation22_spill] sm:$0xff] }
 0x2b3   :  { %v1950_v17 = vsel %vm1949_vm14, %v1945_v2, inf  ;;  %v1995_v54 = vsel %vm1994_vm15, %v1990_v60, inf  ;;  %v2003_v59 = vand.u32 65535, %v7102_v27  ;;  %v7103_v30 = vld [vmem:[#allocation20_spill] sm:$0xff]  ;;  %v7104_v60 = vld [vmem:[#allocation21_spill] sm:$0xff] }
 0x2b4   :  { %1951 = vmin.xlane.f32.xlu0 %v1950_v17  ;;  %1996 = vmin.xlane.f32.xlu1 %v1995_v54  ;;  %v1099_v2 = vcvt.f32.s32 %v7103_v30 }
 0x2b5   :  { %v5599_v58 = vpop.xlane.xlu0 %1977 }
 0x2b6   :  { %7098 = vst [vmem:[#allocation36_spill] sm:$0xff] %v5599_v58  ;;  %vm1979_vm1 = vcmp.eq.f32.partialorder %v7100_v53, %v5599_v58  ;;  %v2005_v53 = vcvt.s32.f32 %v2003_v59  ;;  %v7107_v59 = vld [vmem:[#allocation19_spill] sm:$0xff] }
 0x2b7   :  { %v1980_v20 = vsel %vm1979_vm1, %v1975_v3, inf  ;;  %v1100_v3 = vshll.u32 %v1099_v2, 16 }
 0x2b8   :  { %1981 = vmin.xlane.f32.xlu0 %v1980_v20  ;;  %v7105_v20 = vld [vmem:[#allocation79_spill] sm:$0xff] }
 0x2b9   :  { %v5604_v49 = vpop.xlane.xlu1 %2022  ;;  %v1129_v58 = vcvt.f32.s32 %v7105_v20  ;;  %v4040_v20 = vmov 0.0  }
 0x2ba   :  { %7101 = vst [vmem:[#allocation37_spill] sm:$0xff] %v5604_v49  ;;  %vm2024_vm3 = vcmp.eq.f32.partialorder %v7104_v60, %v5604_v49  ;;  %v1085_v60 = vshll.u32 %v1084_v41, 16 }
 0x2bb   :  { %v2025_v17 = vsel %vm2024_vm3, %v2020_v23, inf  ;;  %v1114_v23 = vcvt.f32.s32 %v5245_v10  ;;  %v1130_v47 = vshll.u32 %v1129_v58, 16 }
 0x2bc   :  { %2026 = vmin.xlane.f32.xlu1 %v2025_v17 }
 0x2bd   :  { %v5611_v54 = vpop.xlane.xlu0 %2007  ;;  %v1097_v62 = vpop.xlane.xlu1 %1096  ;;  %v1115_v10 = vshll.u32 %v1114_v23, 16 }
 0x2be   :  { %vm2009_vm4 = vcmp.eq.f32.partialorder %v7106_v35, %v5611_v54  ;;  %v1098_v27 = vcvt.f32.s32 %v1097_v62  ;;  %v1160_v35 = vshll.u32 %v1159_v9, 16  ;;  %v1145_v9 = vshll.u32 %v1144_v56, 16 }
 0x2bf   :  { %v2010_v30 = vsel %vm2009_vm4, %v2005_v53, inf }
 0x2c0   :  { %v1101_v46 = vadd.s32 %v1100_v3, %v1098_v27  ;;  %2011 = vmin.xlane.f32.xlu0 %v2010_v30  ;;  %v1189_v30 = vcvt.f32.s32 %v5285_v11 }
 0x2c1   :  { %v1082_v17 = vpop.xlane.xlu0 %1081  ;;  %v1127_v49 = vpop.xlane.xlu1 %1126 }
 0x2c2   :  { %2034 = vst.msk [vmem:[%s6777_s4 + $0x8] sm:$0xff] %vm2032_vm5, %v1101_v46  ;;  %vm2098_vm6 = vcmp.eq.s32.totalorder %v7107_v59, %v1101_v46  ;;  %v1083_v2 = vcvt.f32.s32 %v1082_v17  ;;  %v1128_v62 = vcvt.f32.s32 %v1127_v49  ;;  %v1174_v17 = vcvt.f32.s32 %v5297_v16 }
 0x2c3   :  { %v3434_v41 = vsel %vm2098_vm6, 1.0, %v4040_v20 }
 0x2c4   :  { %v1086_v53 = vadd.s32 %v1085_v60, %v1083_v2  ;;  %v1131_v3 = vadd.s32 %v1130_v47, %v1128_v62  ;;  %v3194_v49 = vsel %vm749_vm2, %v3434_v41, 0.0  ;;  %v1219_v2 = vcvt.f32.s32 %v5311_v19 }
 0x2c5   :  { %v1112_v27 = vpop.xlane.xlu0 %1111  ;;  %v1157_v58 = vpop.xlane.xlu1 %1156  ;;  %v1204_v19 = vcvt.f32.s32 %v5322_v48 }
 0x2c6   :  { %2033 = vst.msk [vmem:[%s6777_s4] sm:$0xff] %vm2032_vm5, %v1086_v53  ;;  %2036 = vst.msk [vmem:[%s6777_s4 + $0x18] sm:$0xff] %vm2032_vm5, %v1131_v3  ;;  %v1113_v47 = vcvt.f32.s32 %v1112_v27  ;;  %v1158_v46 = vcvt.f32.s32 %v1157_v58  ;;  %vm2097_vm7 = vcmp.eq.s32.totalorder %v7107_v59, %v1086_v53  ;;  %vm2100_vm8 = vcmp.eq.s32.totalorder %v7107_v59, %v1131_v3 }
 0x2c7   :  { %v3433_v12 = vsel %vm2097_vm7, 1.0, %v4040_v20  ;;  %v1190_v58 = vshll.u32 %v1189_v30, 16 }
 0x2c8   :  { %v1116_v60 = vadd.s32 %v1115_v10, %v1113_v47  ;;  %v1161_v11 = vadd.s32 %v1160_v35, %v1158_v46  ;;  %3809 = vmatprep.mubr.msk.f32.mxu1 %vm749_vm2, %v3433_v12  ;;  %v3193_v23 = vsel %vm749_vm2, %v3433_v12, 0.0  ;;  %v3436_v35 = vsel %vm2100_vm8, 1.0, %v4040_v20 }
 0x2c9   :  { %v3195_v62 = vadd.f32 %v3194_v49, %v3193_v23  ;;  %v1142_v27 = vpop.xlane.xlu0 %1141  ;;  %3810 = vmatmul.mubr.msk.f32.vlgmr.msra.gmra.mrb[0].mxu1 %vm749_vm2, %v3434_v41  ;;  %v1187_v53 = vpop.xlane.xlu1 %1186  ;;  %v1175_v46 = vshll.u32 %v1174_v17, 16  ;;  %v1220_v12 = vshll.u32 %v1219_v2, 16  ;;  %v1249_v49 = vcvt.f32.s32 %v5330_v24 }
 0x2ca   :  { %2035 = vst.msk [vmem:[%s6777_s4 + $0x10] sm:$0xff] %vm2032_vm5, %v1116_v60  ;;  %2038 = vst.msk [vmem:[%s6777_s4 + $0x28] sm:$0xff] %vm2032_vm5, %v1161_v11  ;;  %v1143_v10 = vcvt.f32.s32 %v1142_v27  ;;  %v1188_v16 = vcvt.f32.s32 %v1187_v53  ;;  %vm2099_vm9 = vcmp.eq.s32.totalorder %v7107_v59, %v1116_v60  ;;  %vm2102_vm10 = vcmp.eq.s32.totalorder %v7107_v59, %v1161_v11 }
 0x2cb   :  { %v3435_v41 = vsel %vm2099_vm9, 1.0, %v4040_v20  ;;  %v1205_v24 = vshll.u32 %v1204_v19, 16  ;;  %v3438_v27 = vsel %vm2102_vm10, 1.0, %v4040_v20  ;;  %v1279_v19 = vcvt.f32.s32 %v5346_v33 }
 0x2cc   :  { %v1146_v56 = vadd.s32 %v1145_v9, %v1143_v10  ;;  %v1191_v30 = vadd.s32 %v1190_v58, %v1188_v16  ;;  %3812 = vmatprep.mubr.msk.f32.mxu1 %vm749_vm2, %v3435_v41  ;;  %v3196_v47 = vsel %vm749_vm2, %v3435_v41, 0.0  ;;  %v3198_v9 = vsel %vm749_vm2, %v3436_v35, 0.0 }
 0x2cd   :  { %v3197_v60 = vadd.f32 %v3196_v47, %v3195_v62  ;;  %v1172_v48 = vpop.xlane.xlu0 %1171  ;;  %3813 = vmatmul.mubr.msk.f32.gmra.mrb[2].mxu1 %vm749_vm2, %v3436_v35  ;;  %v1217_v23 = vpop.xlane.xlu1 %1216  ;;  %v1250_v16 = vshll.u32 %v1249_v49, 16  ;;  %v1234_v41 = vcvt.f32.s32 %v5338_v13  ;;  %v3202_v13 = vsel %vm749_vm2, %v3438_v27, 0.0 }
 0x2ce   :  { %2037 = vst.msk [vmem:[%s6777_s4 + $0x20] sm:$0xff] %vm2032_vm5, %v1146_v56  ;;  %2040 = vst.msk [vmem:[%s6777_s4 + $0x38] sm:$0xff] %vm2032_vm5, %v1191_v30  ;;  %v1173_v3 = vcvt.f32.s32 %v1172_v48  ;;  %v1218_v17 = vcvt.f32.s32 %v1217_v23  ;;  %vm2101_vm11 = vcmp.eq.s32.totalorder %v7107_v59, %v1146_v56  ;;  %vm2104_vm12 = vcmp.eq.s32.totalorder %v7107_v59, %v1191_v30 }
 0x2cf   :  { %v3199_v2 = vadd.f32 %v3198_v9, %v3197_v60  ;;  %v3437_v62 = vsel %vm2101_vm11, 1.0, %v4040_v20  ;;  %v1264_v33 = vcvt.f32.s32 %v5354_v4  ;;  %v3440_v60 = vsel %vm2104_vm12, 1.0, %v4040_v20 }
 0x2d0   :  { %v1176_v53 = vadd.s32 %v1175_v46, %v1173_v3  ;;  %v1221_v58 = vadd.s32 %v1220_v12, %v1218_v17  ;;  %3815 = vmatprep.mubr.msk.f32.mxu1 %vm749_vm2, %v3437_v62  ;;  %v3200_v10 = vsel %vm749_vm2, %v3437_v62, 0.0  ;;  %v1235_v9 = vshll.u32 %v1234_v41, 16 }
 0x2d1   :  { %v3201_v35 = vadd.f32 %v3200_v10, %v3199_v2  ;;  %v1202_v56 = vpop.xlane.xlu0 %1201  ;;  %3816 = vmatmul.mubr.msk.f32.gmra.mrb[4].mxu1 %vm749_vm2, %v3438_v27  ;;  %v1247_v47 = vpop.xlane.xlu1 %1246  ;;  %v1280_v17 = vshll.u32 %v1279_v19, 16  ;;  %v1309_v2 = vcvt.f32.s32 %v5362_v51  ;;  %v1265_v51 = vshll.u32 %v1264_v33, 16 }
 0x2d2   :  { %2039 = vst.msk [vmem:[%s6777_s4 + $0x30] sm:$0xff] %vm2032_vm5, %v1176_v53  ;;  %2042 = vst.msk [vmem:[%s6777_s4 + $0x48] sm:$0xff] %vm2032_vm5, %v1221_v58  ;;  %v1203_v11 = vcvt.f32.s32 %v1202_v56  ;;  %v1248_v46 = vcvt.f32.s32 %v1247_v47  ;;  %vm2103_vm13 = vcmp.eq.s32.totalorder %v7107_v59, %v1176_v53  ;;  %vm2106_vm14 = vcmp.eq.s32.totalorder %v7107_v59, %v1221_v58 }
 0x2d3   :  { %v3203_v12 = vadd.f32 %v3202_v13, %v3201_v35  ;;  %v3439_v49 = vsel %vm2103_vm13, 1.0, %v4040_v20  ;;  %v3442_v41 = vsel %vm2106_vm14, 1.0, %v4040_v20  ;;  %v1310_v47 = vshll.u32 %v1309_v2, 16 }
 0x2d4   :  { %v1206_v48 = vadd.s32 %v1205_v24, %v1203_v11  ;;  %v1251_v23 = vadd.s32 %v1250_v16, %v1248_v46  ;;  %3818 = vmatprep.mubr.msk.f32.mxu1 %vm749_vm2, %v3439_v49  ;;  %v3204_v3 = vsel %vm749_vm2, %v3439_v49, 0.0  ;;  %v3206_v24 = vsel %vm749_vm2, %v3440_v60, 0.0 }
 0x2d5   :  { %v3205_v4 = vadd.f32 %v3204_v3, %v3203_v12  ;;  %v1232_v62 = vpop.xlane.xlu0 %1231  ;;  %3819 = vmatmul.mubr.msk.f32.gmra.mrb[6].mxu1 %vm749_vm2, %v3440_v60  ;;  %v1277_v27 = vpop.xlane.xlu1 %1276  ;;  %v1294_v11 = vcvt.f32.s32 %v5370_v8  ;;  %v1339_v13 = vcvt.f32.s32 %v5375_v57  ;;  %v3210_v8 = vsel %vm749_vm2, %v3442_v41, 0.0 }
 0x2d6   :  { %2041 = vst.msk [vmem:[%s6777_s4 + $0x40] sm:$0xff] %vm2032_vm5, %v1206_v48  ;;  %2044 = vst.msk [vmem:[%s6777_s4 + $0x58] sm:$0xff] %vm2032_vm5, %v1251_v23  ;;  %v1233_v30 = vcvt.f32.s32 %v1232_v62  ;;  %v1278_v53 = vcvt.f32.s32 %v1277_v27  ;;  %vm2105_vm15 = vcmp.eq.s32.totalorder %v7107_v59, %v1206_v48  ;;  %vm2108_vm1 = vcmp.eq.s32.totalorder %v7107_v59, %v1251_v23 }
 0x2d7   :  { %v3207_v10 = vadd.f32 %v3206_v24, %v3205_v4  ;;  %v3441_v16 = vsel %vm2105_vm15, 1.0, %v4040_v20  ;;  %v3444_v48 = vsel %vm2108_vm1, 1.0, %v4040_v20  ;;  %v1295_v2 = vshll.u32 %v1294_v11, 16 }
 0x2d8   :  { %v1236_v19 = vadd.s32 %v1235_v9, %v1233_v30  ;;  %v1281_v35 = vadd.s32 %v1280_v17, %v1278_v53  ;;  %3821 = vmatprep.mubr.msk.f32.mxu1 %vm749_vm2, %v3441_v16  ;;  %v3208_v56 = vsel %vm749_vm2, %v3441_v16, 0.0  ;;  %v1340_v4 = vshll.u32 %v1339_v13, 16 }
 0x2d9   :  { %v3209_v46 = vadd.f32 %v3208_v56, %v3207_v10  ;;  %v1262_v33 = vpop.xlane.xlu0 %1261  ;;  %3822 = vmatmul.mubr.msk.f32.gmra.mrb[8].mxu1 %vm749_vm2, %v3442_v41  ;;  %v1307_v12 = vpop.xlane.xlu1 %1306  ;;  %v1324_v62 = vcvt.f32.s32 %v5380_v26  ;;  %v3214_v53 = vsel %vm749_vm2, %v3444_v48, 0.0 }
 0x2da   :  { %2043 = vst.msk [vmem:[%s6777_s4 + $0x50] sm:$0xff] %vm2032_vm5, %v1236_v19  ;;  %2046 = vst.msk [vmem:[%s6777_s4 + $0x68] sm:$0xff] %vm2032_vm5, %v1281_v35  ;;  %v1263_v58 = vcvt.f32.s32 %v1262_v33  ;;  %v1308_v49 = vcvt.f32.s32 %v1307_v12  ;;  %vm2107_vm3 = vcmp.eq.s32.totalorder %v7107_v59, %v1236_v19  ;;  %vm2110_vm4 = vcmp.eq.s32.totalorder %v7107_v59, %v1281_v35 }
 0x2db   :  { %v3211_v57 = vadd.f32 %v3210_v8, %v3209_v46  ;;  %v3443_v60 = vsel %vm2107_vm3, 1.0, %v4040_v20  ;;  %v3446_v16 = vsel %vm2110_vm4, 1.0, %v4040_v20  ;;  %v1369_v46 = vcvt.f32.s32 %v5387_v37 }
 0x2dc   :  { %v1266_v3 = vadd.s32 %v1265_v51, %v1263_v58  ;;  %v1311_v9 = vadd.s32 %v1310_v47, %v1308_v49  ;;  %3824 = vmatprep.mubr.msk.f32.mxu1 %vm749_vm2, %v3443_v60  ;;  %v3212_v17 = vsel %vm749_vm2, %v3443_v60, 0.0  ;;  %v1325_v47 = vshll.u32 %v1324_v62, 16 }
 0x2dd   :  { %v3213_v27 = vadd.f32 %v3212_v17, %v3211_v57  ;;  %v1292_v30 = vpop.xlane.xlu0 %1291  ;;  %3825 = vmatmul.mubr.msk.f32.gmra.mrb[10].mxu1 %vm749_vm2, %v3444_v48  ;;  %v1337_v24 = vpop.xlane.xlu1 %1336  ;;  %v3218_v33 = vsel %vm749_vm2, %v3446_v16, 0.0  ;;  %v1370_v60 = vshll.u32 %v1369_v46, 16  ;;  %v1354_v48 = vcvt.f32.s32 %v5392_v14 }
 0x2de   :  { %2045 = vst.msk [vmem:[%s6777_s4 + $0x60] sm:$0xff] %vm2032_vm5, %v1266_v3  ;;  %2048 = vst.msk [vmem:[%s6777_s4 + $0x78] sm:$0xff] %vm2032_vm5, %v1311_v9  ;;  %v1293_v23 = vcvt.f32.s32 %v1292_v30  ;;  %v1338_v51 = vcvt.f32.s32 %v1337_v24  ;;  %vm2109_vm6 = vcmp.eq.s32.totalorder %v7107_v59, %v1266_v3  ;;  %vm2112_vm7 = vcmp.eq.s32.totalorder %v7107_v59, %v1311_v9 }
 0x2df   :  { %v3215_v26 = vadd.f32 %v3214_v53, %v3213_v27  ;;  %v3445_v10 = vsel %vm2109_vm6, 1.0, %v4040_v20  ;;  %v3448_v49 = vsel %vm2112_vm7, 1.0, %v4040_v20  ;;  %v1355_v14 = vshll.u32 %v1354_v48, 16 }
 0x2e0   :  { %v1296_v41 = vadd.s32 %v1295_v2, %v1293_v23  ;;  %v1341_v19 = vadd.s32 %v1340_v4, %v1338_v51  ;;  %3827 = vmatprep.mubr.msk.f32.mxu1 %vm749_vm2, %v3445_v10  ;;  %v3216_v56 = vsel %vm749_vm2, %v3445_v10, 0.0  ;;  %v1399_v27 = vcvt.f32.s32 %v5399_v32 }
 0x2e1   :  { %v3217_v11 = vadd.f32 %v3216_v56, %v3215_v26  ;;  %v1322_v13 = vpop.xlane.xlu0 %1321  ;;  %3828 = vmatmul.mubr.msk.f32.gmra.mrb[12].mxu1 %vm749_vm2, %v3446_v16  ;;  %v3222_v30 = vsel %vm749_vm2, %v3448_v49, 0.0  ;;  %v1384_v26 = vcvt.f32.s32 %v5406_v28 }
 0x2e2   :  { %2047 = vst.msk [vmem:[%s6777_s4 + $0x70] sm:$0xff] %vm2032_vm5, %v1296_v41  ;;  %2050 = vst.msk [vmem:[%s6777_s4 + $0x88] sm:$0xff] %vm2032_vm5, %v1341_v19  ;;  %v1323_v35 = vcvt.f32.s32 %v1322_v13  ;;  %vm2111_vm8 = vcmp.eq.s32.totalorder %v7107_v59, %v1296_v41  ;;  %vm2114_vm9 = vcmp.eq.s32.totalorder %v7107_v59, %v1341_v19  ;;  %v1400_v16 = vshll.u32 %v1399_v27, 16 }
 0x2e3   :  { %v3219_v12 = vadd.f32 %v3218_v33, %v3217_v11  ;;  %v3447_v58 = vsel %vm2111_vm8, 1.0, %v4040_v20  ;;  %v3450_v4 = vsel %vm2114_vm9, 1.0, %v4040_v20  ;;  %v1429_v13 = vcvt.f32.s32 %v5412_v61 }
 0x2e4   :  { %v1326_v8 = vadd.s32 %v1325_v47, %v1323_v35  ;;  %3830 = vmatprep.mubr.msk.f32.mxu1 %vm749_vm2, %v3447_v58  ;;  %v3220_v37 = vsel %vm749_vm2, %v3447_v58, 0.0  ;;  %v1385_v47 = vshll.u32 %v1384_v26, 16  ;;  %v3226_v46 = vsel %vm749_vm2, %v3450_v4, 0.0 }
 0x2e5   :  { %3831 = vmatmul.mubr.msk.f32.gmra.mrb[14].mxu1 %vm749_vm2, %v3448_v49  ;;  %v1367_v57 = vpop.xlane.xlu1 %1366  ;;  %v3221_v9 = vadd.f32 %v3220_v37, %v3219_v12  ;;  %v1414_v61 = vcvt.f32.s32 %v5422_v43  ;;  %v1489_v43 = vcvt.f32.s32 %v5396_v55 }
 0x2e6   :  { %2049 = vst.msk [vmem:[%s6777_s4 + $0x80] sm:$0xff] %vm2032_vm5, %v1326_v8  ;;  %v1368_v3 = vcvt.f32.s32 %v1367_v57  ;;  %vm2113_vm10 = vcmp.eq.s32.totalorder %v7107_v59, %v1326_v8  ;;  %v1459_v8 = vcvt.f32.s32 %v5385_v63  ;;  %v1430_v57 = vshll.u32 %v1429_v13, 16 }
 0x2e7   :  { %v3449_v17 = vsel %vm2113_vm10, 1.0, %v4040_v20  ;;  %v3223_v23 = vadd.f32 %v3222_v30, %v3221_v9  ;;  %v1415_v30 = vshll.u32 %v1414_v61, 16  ;;  %v1490_v55 = vshll.u32 %v1489_v43, 16 }
 0x2e8   :  { %v1371_v2 = vadd.s32 %v1370_v60, %v1368_v3  ;;  %3833 = vmatprep.mubr.msk.f32.mxu1 %vm749_vm2, %v3449_v17  ;;  %v3224_v53 = vsel %vm749_vm2, %v3449_v17, 0.0  ;;  %v1460_v27 = vshll.u32 %v1459_v8, 16  ;;  %v1579_v43 = vcvt.f32.s32 %v5430_v15 }
 0x2e9   :  { %v1352_v62 = vpop.xlane.xlu0 %1351  ;;  %3834 = vmatmul.mubr.msk.f32.gmra.mrb[16].mxu1 %vm749_vm2, %v3450_v4  ;;  %v3225_v41 = vadd.f32 %v3224_v53, %v3223_v23 }
 0x2ea   :  { %2052 = vst.msk [vmem:[%s6777_s4 + $0x98] sm:$0xff] %vm2032_vm5, %v1371_v2  ;;  %v1353_v24 = vcvt.f32.s32 %v1352_v62  ;;  %vm2116_vm11 = vcmp.eq.s32.totalorder %v7107_v59, %v1371_v2  ;;  %v1444_v2 = vcvt.f32.s32 %v5432_v42  ;;  %v1519_v42 = vcvt.f32.s32 %v5404_v50 }
 0x2eb   :  { %v3452_v28 = vsel %vm2116_vm11, 1.0, %v4040_v20  ;;  %v3227_v12 = vadd.f32 %v3226_v46, %v3225_v41  ;;  %v1549_v50 = vcvt.f32.s32 %v5416_v25 }
 0x2ec   :  { %v1356_v51 = vadd.s32 %v1355_v14, %v1353_v24  ;;  %v3230_v3 = vsel %vm749_vm2, %v3452_v28, 0.0 }
 0x2ed   :  { %v1397_v10 = vpop.xlane.xlu1 %1396 }
 0x2ee   :  { %2051 = vst.msk [vmem:[%s6777_s4 + $0x90] sm:$0xff] %vm2032_vm5, %v1356_v51  ;;  %v1398_v32 = vcvt.f32.s32 %v1397_v10  ;;  %vm2115_vm12 = vcmp.eq.s32.totalorder %v7107_v59, %v1356_v51  ;;  %v1445_v10 = vshll.u32 %v1444_v2, 16 }
 0x2ef   :  { %v3451_v19 = vsel %vm2115_vm12, 1.0, %v4040_v20 }
 0x2f0   :  { %v1401_v56 = vadd.s32 %v1400_v16, %v1398_v32  ;;  %3836 = vmatprep.mubr.msk.f32.mxu1 %vm749_vm2, %v3451_v19  ;;  %v3228_v35 = vsel %vm749_vm2, %v3451_v19, 0.0  ;;  %v1474_v16 = vcvt.f32.s32 %v5440_v45 }
 0x2f1   :  { %v1382_v11 = vpop.xlane.xlu0 %1381  ;;  %3837 = vmatmul.mubr.msk.f32.gmra.mrb[18].mxu1 %vm749_vm2, %v3452_v28  ;;  %v3229_v37 = vadd.f32 %v3228_v35, %v3227_v12 }
 0x2f2   :  { %2054 = vst.msk [vmem:[%s6777_s4 + $0xa8] sm:$0xff] %vm2032_vm5, %v1401_v56  ;;  %v1383_v33 = vcvt.f32.s32 %v1382_v11  ;;  %vm2118_vm13 = vcmp.eq.s32.totalorder %v7107_v59, %v1401_v56  ;;  %v1475_v12 = vshll.u32 %v1474_v16, 16 }
 0x2f3   :  { %v3454_v17 = vsel %vm2118_vm13, 1.0, %v4040_v20  ;;  %v3231_v4 = vadd.f32 %v3230_v3, %v3229_v37 }
 0x2f4   :  { %v1386_v58 = vadd.s32 %v1385_v47, %v1383_v33  ;;  %v3234_v19 = vsel %vm749_vm2, %v3454_v17, 0.0  ;;  %v1520_v33 = vshll.u32 %v1519_v42, 16 }
 0x2f5   :  { %v1427_v49 = vpop.xlane.xlu1 %1426 }
 0x2f6   :  { %2053 = vst.msk [vmem:[%s6777_s4 + $0xa0] sm:$0xff] %vm2032_vm5, %v1386_v58  ;;  %v1428_v60 = vcvt.f32.s32 %v1427_v49  ;;  %vm2117_vm14 = vcmp.eq.s32.totalorder %v7107_v59, %v1386_v58  ;;  %v1504_v58 = vcvt.f32.s32 %v5450_v29  ;;  %v1550_v29 = vshll.u32 %v1549_v50, 16 }
 0x2f7   :  { %v3453_v48 = vsel %vm2117_vm14, 1.0, %v4040_v20 }
 0x2f8   :  { %v1431_v63 = vadd.s32 %v1430_v57, %v1428_v60  ;;  %3839 = vmatprep.mubr.msk.f32.mxu1 %vm749_vm2, %v3453_v48  ;;  %v3232_v9 = vsel %vm749_vm2, %v3453_v48, 0.0  ;;  %v1505_v2 = vshll.u32 %v1504_v58, 16  ;;  %v1594_v58 = vcvt.f32.s32 %v5476_v7 }
 0x2f9   :  { %v1412_v62 = vpop.xlane.xlu0 %1411  ;;  %3840 = vmatmul.mubr.msk.f32.gmra.mrb[20].mxu1 %vm749_vm2, %v3454_v17  ;;  %v1457_v14 = vpop.xlane.xlu1 %1456  ;;  %v3233_v53 = vadd.f32 %v3232_v9, %v3231_v4  ;;  %v1534_v4 = vcvt.f32.s32 %v5459_v40  ;;  %v1609_v40 = vcvt.f32.s32 %v5444_v0  ;;  %v1669_v7 = vcvt.f32.s32 %v5472_v6 }
 0x2fa   :  { %2056 = vst.msk [vmem:[%s6777_s4 + $0xb8] sm:$0xff] %vm2032_vm5, %v1431_v63  ;;  %v1413_v24 = vcvt.f32.s32 %v1412_v62  ;;  %v1458_v23 = vcvt.f32.s32 %v1457_v14  ;;  %vm2120_vm15 = vcmp.eq.s32.totalorder %v7107_v59, %v1431_v63 }
 0x2fb   :  { %v3235_v45 = vadd.f32 %v3234_v19, %v3233_v53  ;;  %v3456_v11 = vsel %vm2120_vm15, 1.0, %v4040_v20  ;;  %v1535_v16 = vshll.u32 %v1534_v4, 16 }
 0x2fc   :  { %v1416_v51 = vadd.s32 %v1415_v30, %v1413_v24  ;;  %v1461_v26 = vadd.s32 %v1460_v27, %v1458_v23  ;;  %v3238_v57 = vsel %vm749_vm2, %v3456_v11, 0.0 }
 0x2fd   :  { %v1442_v32 = vpop.xlane.xlu0 %1441  ;;  %v1487_v41 = vpop.xlane.xlu1 %1486 }
 0x2fe   :  { %2055 = vst.msk [vmem:[%s6777_s4 + $0xb0] sm:$0xff] %vm2032_vm5, %v1416_v51  ;;  %2058 = vst.msk [vmem:[%s6777_s4 + $0xc8] sm:$0xff] %vm2032_vm5, %v1461_v26  ;;  %v1443_v56 = vcvt.f32.s32 %v1442_v32  ;;  %v1488_v28 = vcvt.f32.s32 %v1487_v41  ;;  %vm2119_vm1 = vcmp.eq.s32.totalorder %v7107_v59, %v1416_v51  ;;  %vm2122_vm3 = vcmp.eq.s32.totalorder %v7107_v59, %v1461_v26 }
 0x2ff   :  { %v3455_v47 = vsel %vm2119_vm1, 1.0, %v4040_v20  ;;  %v3458_v3 = vsel %vm2122_vm3, 1.0, %v4040_v20  ;;  %v1564_v32 = vcvt.f32.s32 %v5466_v21  ;;  %v1610_v21 = vshll.u32 %v1609_v40, 16 }
 0x300   :  { %v1446_v13 = vadd.s32 %v1445_v10, %v1443_v56  ;;  %v1491_v46 = vadd.s32 %v1490_v55, %v1488_v28  ;;  %3842 = vmatprep.mubr.msk.f32.mxu1 %vm749_vm2, %v3455_v47  ;;  %v3236_v35 = vsel %vm749_vm2, %v3455_v47, 0.0  ;;  %v3242_v15 = vsel %vm749_vm2, %v3458_v3, 0.0 }
 0x301   :  { %v3237_v25 = vadd.f32 %v3236_v35, %v3235_v45  ;;  %v1472_v8 = vpop.xlane.xlu0 %1471  ;;  %3843 = vmatmul.mubr.msk.f32.gmra.mrb[22].mxu1 %vm749_vm2, %v3456_v11  ;;  %v1517_v37 = vpop.xlane.xlu1 %1516  ;;  %v1580_v10 = vshll.u32 %v1579_v43, 16  ;;  %v1624_v43 = vcvt.f32.s32 %v5486_v5  ;;  %v1670_v5 = vshll.u32 %v1669_v7, 16 }
 0x302   :  { %2057 = vst.msk [vmem:[%s6777_s4 + $0xc0] sm:$0xff] %vm2032_vm5, %v1446_v13  ;;  %2060 = vst.msk [vmem:[%s6777_s4 + $0xd8] sm:$0xff] %vm2032_vm5, %v1491_v46  ;;  %v1473_v49 = vcvt.f32.s32 %v1472_v8  ;;  %v1518_v61 = vcvt.f32.s32 %v1517_v37  ;;  %vm2121_vm4 = vcmp.eq.s32.totalorder %v7107_v59, %v1446_v13  ;;  %vm2124_vm6 = vcmp.eq.s32.totalorder %v7107_v59, %v1491_v46 }
 0x303   :  { %v3239_v60 = vadd.f32 %v3238_v57, %v3237_v25  ;;  %v3457_v48 = vsel %vm2121_vm4, 1.0, %v4040_v20  ;;  %v3460_v51 = vsel %vm2124_vm6, 1.0, %v4040_v20 }
 0x304   :  { %v1476_v63 = vadd.s32 %v1475_v12, %v1473_v49  ;;  %v1521_v9 = vadd.s32 %v1520_v33, %v1518_v61  ;;  %3845 = vmatprep.mubr.msk.f32.mxu1 %vm749_vm2, %v3457_v48  ;;  %v3240_v17 = vsel %vm749_vm2, %v3457_v48, 0.0  ;;  %v3246_v28 = vsel %vm749_vm2, %v3460_v51, 0.0 }
 0x305   :  { %v3241_v62 = vadd.f32 %v3240_v17, %v3239_v60  ;;  %v1502_v14 = vpop.xlane.xlu0 %1501  ;;  %3846 = vmatmul.mubr.msk.f32.gmra.mrb[24].mxu1 %vm749_vm2, %v3458_v3  ;;  %v1547_v27 = vpop.xlane.xlu1 %1546  ;;  %v1639_v33 = vcvt.f32.s32 %v5457_v1  ;;  %v1565_v12 = vshll.u32 %v1564_v32, 16  ;;  %v1595_v17 = vshll.u32 %v1594_v58, 16 }
 0x306   :  { %2059 = vst.msk [vmem:[%s6777_s4 + $0xd0] sm:$0xff] %vm2032_vm5, %v1476_v63  ;;  %2062 = vst.msk [vmem:[%s6777_s4 + $0xe8] sm:$0xff] %vm2032_vm5, %v1521_v9  ;;  %v1503_v30 = vcvt.f32.s32 %v1502_v14  ;;  %v1548_v24 = vcvt.f32.s32 %v1547_v27  ;;  %vm2123_vm7 = vcmp.eq.s32.totalorder %v7107_v59, %v1476_v63  ;;  %vm2126_vm8 = vcmp.eq.s32.totalorder %v7107_v59, %v1521_v9 }
 0x307   :  { %v3243_v23 = vadd.f32 %v3242_v15, %v3241_v62  ;;  %v3459_v53 = vsel %vm2123_vm7, 1.0, %v4040_v20  ;;  %v3462_v11 = vsel %vm2126_vm8, 1.0, %v4040_v20  ;;  %v1640_v9 = vshll.u32 %v1639_v33, 16 }
 0x308   :  { %v1506_v26 = vadd.s32 %v1505_v2, %v1503_v30  ;;  %v1551_v55 = vadd.s32 %v1550_v29, %v1548_v24  ;;  %3848 = vmatprep.mubr.msk.f32.mxu1 %vm749_vm2, %v3459_v53  ;;  %v3244_v42 = vsel %vm749_vm2, %v3459_v53, 0.0  ;;  %v3250_v1 = vsel %vm749_vm2, %v3462_v11, 0.0 }
 0x309   :  { %v3245_v0 = vadd.f32 %v3244_v42, %v3243_v23  ;;  %v1532_v41 = vpop.xlane.xlu0 %1531  ;;  %3849 = vmatmul.mubr.msk.f32.gmra.mrb[26].mxu1 %vm749_vm2, %v3460_v51  ;;  %v1577_v19 = vpop.xlane.xlu1 %1576  ;;  %v1699_v51 = vcvt.f32.s32 %v5484_v34 }
 0x30a   :  { %2061 = vst.msk [vmem:[%s6777_s4 + $0xe0] sm:$0xff] %vm2032_vm5, %v1506_v26  ;;  %2064 = vst.msk [vmem:[%s6777_s4 + $0xf8] sm:$0xff] %vm2032_vm5, %v1551_v55  ;;  %v1533_v56 = vcvt.f32.s32 %v1532_v41  ;;  %v1578_v50 = vcvt.f32.s32 %v1577_v19  ;;  %vm2125_vm9 = vcmp.eq.s32.totalorder %v7107_v59, %v1506_v26  ;;  %vm2128_vm10 = vcmp.eq.s32.totalorder %v7107_v59, %v1551_v55 }
 0x30b   :  { %v3247_v45 = vadd.f32 %v3246_v28, %v3245_v0  ;;  %v3461_v47 = vsel %vm2125_vm9, 1.0, %v4040_v20  ;;  %v3464_v60 = vsel %vm2128_vm10, 1.0, %v4040_v20  ;;  %v1625_v26 = vshll.u32 %v1624_v43, 16 }
 0x30c   :  { %v1536_v13 = vadd.s32 %v1535_v16, %v1533_v56  ;;  %v1581_v46 = vadd.s32 %v1580_v10, %v1578_v50  ;;  %3851 = vmatprep.mubr.msk.f32.mxu1 %vm749_vm2, %v3461_v47  ;;  %v3248_v35 = vsel %vm749_vm2, %v3461_v47, 0.0  ;;  %v3254_v14 = vsel %vm749_vm2, %v3464_v60, 0.0 }
 0x30d   :  { %v3249_v25 = vadd.f32 %v3248_v35, %v3247_v45  ;;  %v1562_v8 = vpop.xlane.xlu0 %1561  ;;  %3852 = vmatmul.mubr.msk.f32.gmra.mrb[28].mxu1 %vm749_vm2, %v3462_v11  ;;  %v1607_v37 = vpop.xlane.xlu1 %1606  ;;  %v1654_v55 = vcvt.f32.s32 %v5496_v38  ;;  %v1729_v38 = vcvt.f32.s32 %v5494_v52  ;;  %v1700_v45 = vshll.u32 %v1699_v51, 16 }
 0x30e   :  { %2063 = vst.msk [vmem:[%s6777_s4 + $0xf0] sm:$0xff] %vm2032_vm5, %v1536_v13  ;;  %2066 = vst.msk [vmem:[%s6777_s4 + $0x108] sm:$0xff] %vm2032_vm5, %v1581_v46  ;;  %v1563_v49 = vcvt.f32.s32 %v1562_v8  ;;  %v1608_v57 = vcvt.f32.s32 %v1607_v37  ;;  %vm2127_vm11 = vcmp.eq.s32.totalorder %v7107_v59, %v1536_v13  ;;  %vm2130_vm12 = vcmp.eq.s32.totalorder %v7107_v59, %v1581_v46 }
 0x30f   :  { %v3251_v61 = vadd.f32 %v3250_v1, %v3249_v25  ;;  %v3463_v29 = vsel %vm2127_vm11, 1.0, %v4040_v20  ;;  %v3466_v24 = vsel %vm2130_vm12, 1.0, %v4040_v20  ;;  %v1655_v47 = vshll.u32 %v1654_v55, 16 }
 0x310   :  { %v1566_v48 = vadd.s32 %v1565_v12, %v1563_v49  ;;  %v1611_v3 = vadd.s32 %v1610_v21, %v1608_v57  ;;  %3854 = vmatprep.mubr.msk.f32.mxu1 %vm749_vm2, %v3463_v29  ;;  %v3252_v63 = vsel %vm749_vm2, %v3463_v29, 0.0  ;;  %v3258_v34 = vsel %vm749_vm2, %v3466_v24, 0.0 }
 0x311   :  { %v3253_v6 = vadd.f32 %v3252_v63, %v3251_v61  ;;  %v1592_v2 = vpop.xlane.xlu0 %1591  ;;  %3855 = vmatmul.mubr.msk.f32.gmra.mrb[30].mxu1 %vm749_vm2, %v3464_v60  ;;  %v1637_v4 = vpop.xlane.xlu1 %1636  ;;  %v1684_v11 = vcvt.f32.s32 %v5506_v22  ;;  %v1730_v22 = vshll.u32 %v1729_v38, 16  ;;  %v1759_v57 = vcvt.f32.s32 %v5504_v36 }
 0x312   :  { %2065 = vst.msk [vmem:[%s6777_s4 + $0x100] sm:$0xff] %vm2032_vm5, %v1566_v48  ;;  %2068 = vst.msk [vmem:[%s6777_s4 + $0x118] sm:$0xff] %vm2032_vm5, %v1611_v3  ;;  %v1593_v62 = vcvt.f32.s32 %v1592_v2  ;;  %v1638_v27 = vcvt.f32.s32 %v1637_v4  ;;  %vm2129_vm13 = vcmp.eq.s32.totalorder %v7107_v59, %v1566_v48  ;;  %vm2132_vm14 = vcmp.eq.s32.totalorder %v7107_v59, %v1611_v3 }
 0x313   :  { %v3255_v30 = vadd.f32 %v3254_v14, %v3253_v6  ;;  %v3465_v15 = vsel %vm2129_vm13, 1.0, %v4040_v20  ;;  %v3468_v56 = vsel %vm2132_vm14, 1.0, %v4040_v20  ;;  %v1685_v7 = vshll.u32 %v1684_v11, 16 }
 0x314   :  { %v1596_v40 = vadd.s32 %v1595_v17, %v1593_v62  ;;  %v1641_v23 = vadd.s32 %v1640_v9, %v1638_v27  ;;  %3857 = vmatprep.mubr.msk.f32.mxu1 %vm749_vm2, %v3465_v15  ;;  %v3256_v53 = vsel %vm749_vm2, %v3465_v15, 0.0  ;;  %v3262_v33 = vsel %vm749_vm2, %v3468_v56, 0.0 }
 0x315   :  { %v3257_v42 = vadd.f32 %v3256_v53, %v3255_v30  ;;  %v1622_v10 = vpop.xlane.xlu0 %1621  ;;  %3858 = vmatmul.mubr.msk.f32.gmra.mrb[32].mxu1 %vm749_vm2, %v3466_v24  ;;  %v1667_v16 = vpop.xlane.xlu1 %1666  ;;  %v1714_v61 = vcvt.f32.s32 %v5516_v31  ;;  %v7108_v31 = vld [vmem:[#allocation23_spill] sm:$0xff]  ;;  %v1760_v14 = vshll.u32 %v1759_v57, 16 }
 0x316   :  { %2067 = vst.msk [vmem:[%s6777_s4 + $0x110] sm:$0xff] %vm2032_vm5, %v1596_v40  ;;  %2070 = vst.msk [vmem:[%s6777_s4 + $0x128] sm:$0xff] %vm2032_vm5, %v1641_v23  ;;  %v1623_v32 = vcvt.f32.s32 %v1622_v10  ;;  %v1668_v0 = vcvt.f32.s32 %v1667_v16  ;;  %vm2131_vm15 = vcmp.eq.s32.totalorder %v7107_v59, %v1596_v40  ;;  %vm2134_vm1 = vcmp.eq.s32.totalorder %v7107_v59, %v1641_v23 }
 0x317   :  { %v3259_v41 = vadd.f32 %v3258_v34, %v3257_v42  ;;  %v3467_v19 = vsel %vm2131_vm15, 1.0, %v4040_v20  ;;  %v3470_v8 = vsel %vm2134_vm1, 1.0, %v4040_v20  ;;  %v1789_v9 = vcvt.f32.s32 %v7108_v31 }
 0x318   :  { %v1626_v28 = vadd.s32 %v1625_v26, %v1623_v32  ;;  %v1671_v50 = vadd.s32 %v1670_v5, %v1668_v0  ;;  %3860 = vmatprep.mubr.msk.f32.mxu1 %vm749_vm2, %v3467_v19  ;;  %v3260_v21 = vsel %vm749_vm2, %v3467_v19, 0.0  ;;  %v3266_v36 = vsel %vm749_vm2, %v3470_v8, 0.0  ;;  %v7109_v5 = vld [vmem:[#allocation25_spill] sm:$0xff]  ;;  %v7110_v0 = vld [vmem:[#allocation24_spill] sm:$0xff] }
 0x319   :  { %v3261_v52 = vadd.f32 %v3260_v21, %v3259_v41  ;;  %v1652_v13 = vpop.xlane.xlu0 %1651  ;;  %3861 = vmatmul.mubr.msk.f32.gmra.mrb[34].mxu1 %vm749_vm2, %v3468_v56  ;;  %v1697_v46 = vpop.xlane.xlu1 %1696  ;;  %v1715_v27 = vshll.u32 %v1714_v61, 16  ;;  %v1744_v30 = vcvt.f32.s32 %v7109_v5  ;;  %v1790_v26 = vshll.u32 %v1789_v9, 16  ;;  %v7113_v9 = vld [vmem:[#allocation27_spill] sm:$0xff] }
 0x31a   :  { %2069 = vst.msk [vmem:[%s6777_s4 + $0x120] sm:$0xff] %vm2032_vm5, %v1626_v28  ;;  %2072 = vst.msk [vmem:[%s6777_s4 + $0x138] sm:$0xff] %vm2032_vm5, %v1671_v50  ;;  %v1653_v35 = vcvt.f32.s32 %v1652_v13  ;;  %v1698_v12 = vcvt.f32.s32 %v1697_v46  ;;  %vm2133_vm3 = vcmp.eq.s32.totalorder %v7107_v59, %v1626_v28  ;;  %vm2136_vm4 = vcmp.eq.s32.totalorder %v7107_v59, %v1671_v50 }
 0x31b   :  { %v3263_v58 = vadd.f32 %v3262_v33, %v3261_v52  ;;  %v3469_v25 = vsel %vm2133_vm3, 1.0, %v4040_v20  ;;  %v3472_v6 = vsel %vm2136_vm4, 1.0, %v4040_v20  ;;  %v1819_v38 = vcvt.f32.s32 %v7110_v0 }
 0x31c   :  { %v1656_v37 = vadd.s32 %v1655_v47, %v1653_v35  ;;  %v1701_v49 = vadd.s32 %v1700_v45, %v1698_v12  ;;  %3863 = vmatprep.mubr.msk.f32.mxu1 %vm749_vm2, %v3469_v25  ;;  %v3264_v1 = vsel %vm749_vm2, %v3469_v25, 0.0  ;;  %v3270_v53 = vsel %vm749_vm2, %v3472_v6, 0.0  ;;  %v7112_v25 = vld [vmem:[#allocation28_spill] sm:$0xff] }
 0x31d   :  { %v3265_v29 = vadd.f32 %v3264_v1, %v3263_v58  ;;  %v1682_v60 = vpop.xlane.xlu0 %1681  ;;  %3864 = vmatmul.mubr.msk.f32.gmra.mrb[36].mxu1 %vm749_vm2, %v3470_v8  ;;  %v1727_v48 = vpop.xlane.xlu1 %1726  ;;  %v1745_v41 = vshll.u32 %v1744_v30, 16  ;;  %v1774_v19 = vcvt.f32.s32 %v5536_v18  ;;  %v7111_v18 = vld [vmem:[#allocation26_spill] sm:$0xff]  ;;  %v1804_v8 = vcvt.f32.s32 %v7112_v25 }
 0x31e   :  { %2071 = vst.msk [vmem:[%s6777_s4 + $0x130] sm:$0xff] %vm2032_vm5, %v1656_v37  ;;  %2074 = vst.msk [vmem:[%s6777_s4 + $0x148] sm:$0xff] %vm2032_vm5, %v1701_v49  ;;  %v1683_v3 = vcvt.f32.s32 %v1682_v60  ;;  %v1728_v63 = vcvt.f32.s32 %v1727_v48  ;;  %vm2135_vm6 = vcmp.eq.s32.totalorder %v7107_v59, %v1656_v37  ;;  %vm2138_vm7 = vcmp.eq.s32.totalorder %v7107_v59, %v1701_v49 }
 0x31f   :  { %v3267_v17 = vadd.f32 %v3266_v36, %v3265_v29  ;;  %v3471_v43 = vsel %vm2135_vm6, 1.0, %v4040_v20  ;;  %v3474_v10 = vsel %vm2138_vm7, 1.0, %v4040_v20  ;;  %v1849_v11 = vcvt.f32.s32 %v7111_v18  ;;  %v7116_v18 = vld [vmem:[#allocation30_spill] sm:$0xff] }
 0x320   :  { %v1686_v2 = vadd.s32 %v1685_v7, %v1683_v3  ;;  %v1731_v4 = vadd.s32 %v1730_v22, %v1728_v63  ;;  %3866 = vmatprep.mubr.msk.f32.mxu1 %vm749_vm2, %v3471_v43  ;;  %v3268_v62 = vsel %vm749_vm2, %v3471_v43, 0.0  ;;  %v3274_v45 = vsel %vm749_vm2, %v3474_v10, 0.0 }
 0x321   :  { %v3269_v15 = vadd.f32 %v3268_v62, %v3267_v17  ;;  %v1712_v24 = vpop.xlane.xlu0 %1711  ;;  %3867 = vmatmul.mubr.msk.f32.gmra.mrb[38].mxu1 %vm749_vm2, %v3472_v6  ;;  %v1757_v40 = vpop.xlane.xlu1 %1756  ;;  %v1820_v22 = vshll.u32 %v1819_v38, 16  ;;  %v1775_v58 = vshll.u32 %v1774_v19, 16  ;;  %v1850_v29 = vshll.u32 %v1849_v11, 16 }
 0x322   :  { %2073 = vst.msk [vmem:[%s6777_s4 + $0x140] sm:$0xff] %vm2032_vm5, %v1686_v2  ;;  %2076 = vst.msk [vmem:[%s6777_s4 + $0x158] sm:$0xff] %vm2032_vm5, %v1731_v4  ;;  %v1713_v23 = vcvt.f32.s32 %v1712_v24  ;;  %v1758_v51 = vcvt.f32.s32 %v1757_v40  ;;  %vm2137_vm8 = vcmp.eq.s32.totalorder %v7107_v59, %v1686_v2  ;;  %vm2140_vm9 = vcmp.eq.s32.totalorder %v7107_v59, %v1731_v4 }
 0x323   :  { %v3271_v55 = vadd.f32 %v3270_v53, %v3269_v15  ;;  %v3473_v42 = vsel %vm2137_vm8, 1.0, %v4040_v20  ;;  %v3476_v46 = vsel %vm2140_vm9, 1.0, %v4040_v20  ;;  %v1879_v17 = vcvt.f32.s32 %v7113_v9 }
 0x324   :  { %v1716_v16 = vadd.s32 %v1715_v27, %v1713_v23  ;;  %v1761_v32 = vadd.s32 %v1760_v14, %v1758_v51  ;;  %3869 = vmatprep.mubr.msk.f32.mxu1 %vm749_vm2, %v3473_v42  ;;  %v3272_v34 = vsel %vm749_vm2, %v3473_v42, 0.0  ;;  %v3278_v7 = vsel %vm749_vm2, %v3476_v46, 0.0  ;;  %v7115_v42 = vld [vmem:[#allocation31_spill] sm:$0xff] }
 0x325   :  { %v3273_v56 = vadd.f32 %v3272_v34, %v3271_v55  ;;  %v1742_v28 = vpop.xlane.xlu0 %1741  ;;  %3870 = vmatmul.mubr.msk.f32.gmra.mrb[40].mxu1 %vm749_vm2, %v3474_v10  ;;  %v1787_v50 = vpop.xlane.xlu1 %1786  ;;  %v1805_v43 = vshll.u32 %v1804_v8, 16  ;;  %v1834_v6 = vcvt.f32.s32 %v5556_v44  ;;  %v7114_v44 = vld [vmem:[#allocation29_spill] sm:$0xff]  ;;  %v1864_v10 = vcvt.f32.s32 %v7115_v42 }
 0x326   :  { %2075 = vst.msk [vmem:[%s6777_s4 + $0x150] sm:$0xff] %vm2032_vm5, %v1716_v16  ;;  %2078 = vst.msk [vmem:[%s6777_s4 + $0x168] sm:$0xff] %vm2032_vm5, %v1761_v32  ;;  %v1743_v21 = vcvt.f32.s32 %v1742_v28  ;;  %v1788_v47 = vcvt.f32.s32 %v1787_v50  ;;  %vm2139_vm10 = vcmp.eq.s32.totalorder %v7107_v59, %v1716_v16  ;;  %vm2142_vm11 = vcmp.eq.s32.totalorder %v7107_v59, %v1761_v32 }
 0x327   :  { %v3275_v52 = vadd.f32 %v3274_v45, %v3273_v56  ;;  %v3475_v13 = vsel %vm2139_vm10, 1.0, %v4040_v20  ;;  %v3478_v3 = vsel %vm2142_vm11, 1.0, %v4040_v20  ;;  %v1909_v30 = vcvt.f32.s32 %v7114_v44  ;;  %v7119_v44 = vld [vmem:[#allocation34_spill] sm:$0xff] }
 0x328   :  { %v1746_v35 = vadd.s32 %v1745_v41, %v1743_v21  ;;  %v1791_v33 = vadd.s32 %v1790_v26, %v1788_v47  ;;  %3872 = vmatprep.mubr.msk.f32.mxu1 %vm749_vm2, %v3475_v13  ;;  %v3276_v12 = vsel %vm749_vm2, %v3475_v13, 0.0  ;;  %v3282_v27 = vsel %vm749_vm2, %v3478_v3, 0.0 }
 0x329   :  { %v3277_v37 = vadd.f32 %v3276_v12, %v3275_v52  ;;  %v1772_v49 = vpop.xlane.xlu0 %1771  ;;  %3873 = vmatmul.mubr.msk.f32.gmra.mrb[42].mxu1 %vm749_vm2, %v3476_v46  ;;  %v1817_v1 = vpop.xlane.xlu1 %1816  ;;  %v1880_v26 = vshll.u32 %v1879_v17, 16  ;;  %v1835_v55 = vshll.u32 %v1834_v6, 16  ;;  %v1910_v19 = vshll.u32 %v1909_v30, 16 }
 0x32a   :  { %2077 = vst.msk [vmem:[%s6777_s4 + $0x160] sm:$0xff] %vm2032_vm5, %v1746_v35  ;;  %2080 = vst.msk [vmem:[%s6777_s4 + $0x178] sm:$0xff] %vm2032_vm5, %v1791_v33  ;;  %v1773_v57 = vcvt.f32.s32 %v1772_v49  ;;  %v1818_v61 = vcvt.f32.s32 %v1817_v1  ;;  %vm2141_vm12 = vcmp.eq.s32.totalorder %v7107_v59, %v1746_v35  ;;  %vm2144_vm13 = vcmp.eq.s32.totalorder %v7107_v59, %v1791_v33 }
 0x32b   :  { %v3279_v60 = vadd.f32 %v3278_v7, %v3277_v37  ;;  %v3477_v48 = vsel %vm2141_vm12, 1.0, %v4040_v20  ;;  %v3480_v40 = vsel %vm2144_vm13, 1.0, %v4040_v20  ;;  %v1939_v11 = vcvt.f32.s32 %v7116_v18 }
 0x32c   :  { %v1776_v36 = vadd.s32 %v1775_v58, %v1773_v57  ;;  %v1821_v63 = vadd.s32 %v1820_v22, %v1818_v61  ;;  %3875 = vmatprep.mubr.msk.f32.mxu1 %vm749_vm2, %v3477_v48  ;;  %v3280_v31 = vsel %vm749_vm2, %v3477_v48, 0.0  ;;  %v3286_v38 = vsel %vm749_vm2, %v3480_v40, 0.0 }
 0x32d   :  { %v3281_v2 = vadd.f32 %v3280_v31, %v3279_v60  ;;  %v1802_v4 = vpop.xlane.xlu0 %1801  ;;  %3876 = vmatmul.mubr.msk.f32.gmra.mrb[44].mxu1 %vm749_vm2, %v3478_v3  ;;  %v1847_v62 = vpop.xlane.xlu1 %1846  ;;  %v1865_v52 = vshll.u32 %v1864_v10, 16  ;;  %v1894_v13 = vcvt.f32.s32 %v5574_v39  ;;  %v7117_v39 = vld [vmem:[#allocation32_spill] sm:$0xff]  ;;  %v1940_v61 = vshll.u32 %v1939_v11, 16  ;;  %v7118_v60 = vld [vmem:[#allocation33_spill] sm:$0xff] }
 0x32e   :  { %2079 = vst.msk [vmem:[%s6777_s4 + $0x170] sm:$0xff] %vm2032_vm5, %v1776_v36  ;;  %2082 = vst.msk [vmem:[%s6777_s4 + $0x188] sm:$0xff] %vm2032_vm5, %v1821_v63  ;;  %v1803_v14 = vcvt.f32.s32 %v1802_v4  ;;  %v1848_v5 = vcvt.f32.s32 %v1847_v62  ;;  %vm2143_vm14 = vcmp.eq.s32.totalorder %v7107_v59, %v1776_v36  ;;  %vm2146_vm15 = vcmp.eq.s32.totalorder %v7107_v59, %v1821_v63 }
 0x32f   :  { %v3283_v15 = vadd.f32 %v3282_v27, %v3281_v2  ;;  %v3479_v24 = vsel %vm2143_vm14, 1.0, %v4040_v20  ;;  %v3482_v50 = vsel %vm2146_vm15, 1.0, %v4040_v20  ;;  %v1969_v25 = vcvt.f32.s32 %v7117_v39 }
 0x330   :  { %v1806_v23 = vadd.s32 %v1805_v43, %v1803_v14  ;;  %v1851_v53 = vadd.s32 %v1850_v29, %v1848_v5  ;;  %3878 = vmatprep.mubr.msk.f32.mxu1 %vm749_vm2, %v3479_v24  ;;  %v3284_v51 = vsel %vm749_vm2, %v3479_v24, 0.0  ;;  %v3290_v22 = vsel %vm749_vm2, %v3482_v50, 0.0 }
 0x331   :  { %v3285_v16 = vadd.f32 %v3284_v51, %v3283_v15  ;;  %v1832_v32 = vpop.xlane.xlu0 %1831  ;;  %3879 = vmatmul.mubr.msk.f32.gmra.mrb[46].mxu1 %vm749_vm2, %v3480_v40  ;;  %v1877_v34 = vpop.xlane.xlu1 %1876  ;;  %v1895_v29 = vshll.u32 %v1894_v13, 16  ;;  %v1924_v48 = vcvt.f32.s32 %v7118_v60  ;;  %v1970_v43 = vshll.u32 %v1969_v25, 16  ;;  %v7120_v15 = vld [vmem:[#allocation35_spill] sm:$0xff] }
 0x332   :  { %2081 = vst.msk [vmem:[%s6777_s4 + $0x180] sm:$0xff] %vm2032_vm5, %v1806_v23  ;;  %2084 = vst.msk [vmem:[%s6777_s4 + $0x198] sm:$0xff] %vm2032_vm5, %v1851_v53  ;;  %v1833_v0 = vcvt.f32.s32 %v1832_v32  ;;  %v1878_v41 = vcvt.f32.s32 %v1877_v34  ;;  %vm2145_vm1 = vcmp.eq.s32.totalorder %v7107_v59, %v1806_v23  ;;  %vm2148_vm3 = vcmp.eq.s32.totalorder %v7107_v59, %v1851_v53 }
 0x333   :  { %v3287_v56 = vadd.f32 %v3286_v38, %v3285_v16  ;;  %v3481_v28 = vsel %vm2145_vm1, 1.0, %v4040_v20  ;;  %v3484_v49 = vsel %vm2148_vm3, 1.0, %v4040_v20  ;;  %v1925_v5 = vshll.u32 %v1924_v48, 16 }
 0x334   :  { %v1836_v21 = vadd.s32 %v1835_v55, %v1833_v0  ;;  %v1881_v45 = vadd.s32 %v1880_v26, %v1878_v41  ;;  %3881 = vmatprep.mubr.msk.f32.mxu1 %vm749_vm2, %v3481_v28  ;;  %v3288_v47 = vsel %vm749_vm2, %v3481_v28, 0.0  ;;  %v3294_v9 = vsel %vm749_vm2, %v3484_v49, 0.0 }
 0x335   :  { %v3289_v46 = vadd.f32 %v3288_v47, %v3287_v56  ;;  %v1862_v35 = vpop.xlane.xlu0 %1861  ;;  %3882 = vmatmul.mubr.msk.f32.gmra.mrb[48].mxu1 %vm749_vm2, %v3482_v50  ;;  %v1907_v33 = vpop.xlane.xlu1 %1906  ;;  %v1954_v30 = vcvt.f32.s32 %v7119_v44  ;;  %v1999_v24 = vcvt.f32.s32 %v7120_v15 }
 0x336   :  { %2083 = vst.msk [vmem:[%s6777_s4 + $0x190] sm:$0xff] %vm2032_vm5, %v1836_v21  ;;  %2086 = vst.msk [vmem:[%s6777_s4 + $0x1a8] sm:$0xff] %vm2032_vm5, %v1881_v45  ;;  %v1863_v12 = vcvt.f32.s32 %v1862_v35  ;;  %v1908_v58 = vcvt.f32.s32 %v1907_v33  ;;  %vm2147_vm4 = vcmp.eq.s32.totalorder %v7107_v59, %v1836_v21  ;;  %vm2150_vm6 = vcmp.eq.s32.totalorder %v7107_v59, %v1881_v45 }
 0x337   :  { %v3291_v8 = vadd.f32 %v3290_v22, %v3289_v46  ;;  %v3483_v37 = vsel %vm2147_vm4, 1.0, %v4040_v20  ;;  %v3486_v4 = vsel %vm2150_vm6, 1.0, %v4040_v20  ;;  %v1955_v38 = vshll.u32 %v1954_v30, 16 }
 0x338   :  { %v1866_v1 = vadd.s32 %v1865_v52, %v1863_v12  ;;  %v1911_v57 = vadd.s32 %v1910_v19, %v1908_v58  ;;  %3884 = vmatprep.mubr.msk.f32.mxu1 %vm749_vm2, %v3483_v37  ;;  %v3292_v7 = vsel %vm749_vm2, %v3483_v37, 0.0  ;;  %v3298_v26 = vsel %vm749_vm2, %v3486_v4, 0.0  ;;  %v7121_v19 = vld [vmem:[#allocation36_spill] sm:$0xff]  ;;  %v7122_v12 = vld [vmem:[#allocation37_spill] sm:$0xff] }
 0x339   :  { %v3293_v3 = vadd.f32 %v3292_v7, %v3291_v8  ;;  %v1892_v36 = vpop.xlane.xlu0 %1891  ;;  %3885 = vmatmul.mubr.msk.f32.gmra.mrb[50].mxu1 %vm749_vm2, %v3484_v49  ;;  %v1937_v63 = vpop.xlane.xlu1 %1936  ;;  %v2000_v41 = vshll.u32 %v1999_v24, 16  ;;  %v1984_v56 = vcvt.f32.s32 %v7121_v19  ;;  %v2029_v22 = vcvt.f32.s32 %v7122_v12 }
 0x33a   :  { %2085 = vst.msk [vmem:[%s6777_s4 + $0x1a0] sm:$0xff] %vm2032_vm5, %v1866_v1  ;;  %2088 = vst.msk [vmem:[%s6777_s4 + $0x1b8] sm:$0xff] %vm2032_vm5, %v1911_v57  ;;  %v1893_v31 = vcvt.f32.s32 %v1892_v36  ;;  %v1938_v17 = vcvt.f32.s32 %v1937_v63  ;;  %vm2149_vm7 = vcmp.eq.s32.totalorder %v7107_v59, %v1866_v1  ;;  %vm2152_vm8 = vcmp.eq.s32.totalorder %v7107_v59, %v1911_v57 }
 0x33b   :  { %v3295_v6 = vadd.f32 %v3294_v9, %v3293_v3  ;;  %v3485_v2 = vsel %vm2149_vm7, 1.0, %v4040_v20  ;;  %v3488_v16 = vsel %vm2152_vm8, 1.0, %v4040_v20  ;;  %v1985_v25 = vshll.u32 %v1984_v56, 16 }
 0x33c   :  { %v1896_v62 = vadd.s32 %v1895_v29, %v1893_v31  ;;  %v1941_v14 = vadd.s32 %v1940_v61, %v1938_v17  ;;  %3887 = vmatprep.mubr.msk.f32.mxu1 %vm749_vm2, %v3485_v2  ;;  %v3296_v27 = vsel %vm749_vm2, %v3485_v2, 0.0  ;;  %v3302_v47 = vsel %vm749_vm2, %v3488_v16, 0.0 }
 0x33d   :  { %v3297_v40 = vadd.f32 %v3296_v27, %v3295_v6  ;;  %v1922_v23 = vpop.xlane.xlu0 %1921  ;;  %3888 = vmatmul.mubr.msk.f32.gmra.mrb[52].mxu1 %vm749_vm2, %v3486_v4  ;;  %v1967_v53 = vpop.xlane.xlu1 %1966  ;;  %v2030_v29 = vshll.u32 %v2029_v22, 16  ;;  %v2014_v3 = vcvt.f32.s32 %v5611_v54 }
 0x33e   :  { %2087 = vst.msk [vmem:[%s6777_s4 + $0x1b0] sm:$0xff] %vm2032_vm5, %v1896_v62  ;;  %2090 = vst.msk [vmem:[%s6777_s4 + $0x1c8] sm:$0xff] %vm2032_vm5, %v1941_v14  ;;  %v1923_v51 = vcvt.f32.s32 %v1922_v23  ;;  %v1968_v55 = vcvt.f32.s32 %v1967_v53  ;;  %vm2151_vm9 = vcmp.eq.s32.totalorder %v7107_v59, %v1896_v62  ;;  %vm2154_vm10 = vcmp.eq.s32.totalorder %v7107_v59, %v1941_v14 }
 0x33f   :  { %v3299_v42 = vadd.f32 %v3298_v26, %v3297_v40  ;;  %v3487_v10 = vsel %vm2151_vm9, 1.0, %v4040_v20  ;;  %v3490_v13 = vsel %vm2154_vm10, 1.0, %v4040_v20  ;;  %v2015_v4 = vshll.u32 %v2014_v3, 16 }
 0x340   :  { %v1926_v32 = vadd.s32 %v1925_v5, %v1923_v51  ;;  %v1971_v34 = vadd.s32 %v1970_v43, %v1968_v55  ;;  %3890 = vmatprep.mubr.msk.f32.mxu1 %vm749_vm2, %v3487_v10  ;;  %v3300_v0 = vsel %vm749_vm2, %v3487_v10, 0.0  ;;  %v3306_v37 = vsel %vm749_vm2, %v3490_v13, 0.0 }
 0x341   :  { %v3301_v28 = vadd.f32 %v3300_v0, %v3299_v42  ;;  %v1952_v50 = vpop.xlane.xlu0 %1951  ;;  %3891 = vmatmul.mubr.msk.f32.gmra.mrb[54].mxu1 %vm749_vm2, %v3488_v16  ;;  %v1997_v21 = vpop.xlane.xlu1 %1996 }
 0x342   :  { %2089 = vst.msk [vmem:[%s6777_s4 + $0x1c0] sm:$0xff] %vm2032_vm5, %v1926_v32  ;;  %2092 = vst.msk [vmem:[%s6777_s4 + $0x1d8] sm:$0xff] %vm2032_vm5, %v1971_v34  ;;  %v1953_v45 = vcvt.f32.s32 %v1952_v50  ;;  %v1998_v18 = vcvt.f32.s32 %v1997_v21  ;;  %vm2153_vm11 = vcmp.eq.s32.totalorder %v7107_v59, %v1926_v32  ;;  %vm2156_vm12 = vcmp.eq.s32.totalorder %v7107_v59, %v1971_v34  ;;  %v3929_v34 = vld [vmem:[%s6773_s0] sm:$0xff] }
 0x343   :  { %v3303_v11 = vadd.f32 %v3302_v47, %v3301_v28  ;;  %v3489_v52 = vsel %vm2153_vm11, 1.0, %v4040_v20  ;;  %v3492_v57 = vsel %vm2156_vm12, 1.0, %v4040_v20  ;;  %v3930_v28 = vld [vmem:[%s6773_s0 + $0x18] sm:$0xff]  ;;  %v3931_v47 = vld [vmem:[%s6773_s0 + $0x10] sm:$0xff] }
 0x344   :  { %v1956_v46 = vadd.s32 %v1955_v38, %v1953_v45  ;;  %v2001_v35 = vadd.s32 %v2000_v41, %v1998_v18  ;;  %3893 = vmatprep.mubr.msk.f32.mxu1 %vm749_vm2, %v3489_v52  ;;  %v3304_v33 = vsel %vm749_vm2, %v3489_v52, 0.0  ;;  %v3310_v36 = vsel %vm749_vm2, %v3492_v57, 0.0 }
 0x345   :  { %v3305_v58 = vadd.f32 %v3304_v33, %v3303_v11  ;;  %v1982_v39 = vpop.xlane.xlu0 %1981  ;;  %3894 = vmatmul.mubr.msk.f32.gmra.mrb[56].mxu1 %vm749_vm2, %v3490_v13 }
 0x346   :  { %2091 = vst.msk [vmem:[%s6777_s4 + $0x1d0] sm:$0xff] %vm2032_vm5, %v1956_v46  ;;  %2094 = vst.msk [vmem:[%s6777_s4 + $0x1e8] sm:$0xff] %vm2032_vm5, %v2001_v35  ;;  %v1983_v8 = vcvt.f32.s32 %v1982_v39  ;;  %vm2155_vm13 = vcmp.eq.s32.totalorder %v7107_v59, %v1956_v46  ;;  %vm2158_vm14 = vcmp.eq.s32.totalorder %v7107_v59, %v2001_v35  ;;  %v3932_v35 = vld [vmem:[%s6773_s0 + $0x28] sm:$0xff] }
 0x347   :  { %v3307_v49 = vadd.f32 %v3306_v37, %v3305_v58  ;;  %v3491_v1 = vsel %vm2155_vm13, 1.0, %v4040_v20  ;;  %v3494_v17 = vsel %vm2158_vm14, 1.0, %v4040_v20  ;;  %v3933_v58 = vld [vmem:[%s6773_s0 + $0x20] sm:$0xff] }
 0x348   :  { %v1986_v7 = vadd.s32 %v1985_v25, %v1983_v8  ;;  %3896 = vmatprep.mubr.msk.f32.mxu1 %vm749_vm2, %v3491_v1  ;;  %v3308_v61 = vsel %vm749_vm2, %v3491_v1, 0.0  ;;  %v3314_v14 = vsel %vm749_vm2, %v3494_v17, 0.0 }
 0x349   :  { %v3309_v60 = vadd.f32 %v3308_v61, %v3307_v49  ;;  %3897 = vmatmul.mubr.msk.f32.gmra.mrb[58].mxu1 %vm749_vm2, %v3492_v57  ;;  %v2027_v48 = vpop.xlane.xlu1 %2026 }
 0x34a   :  { %2093 = vst.msk [vmem:[%s6777_s4 + $0x1e0] sm:$0xff] %vm2032_vm5, %v1986_v7  ;;  %v2028_v63 = vcvt.f32.s32 %v2027_v48  ;;  %vm2157_vm15 = vcmp.eq.s32.totalorder %v7107_v59, %v1986_v7  ;;  %v3934_v7 = vld [vmem:[%s6773_s0 + $0x38] sm:$0xff]  ;;  %v3935_v48 = vld [vmem:[%s6773_s0 + $0x30] sm:$0xff] }
 0x34b   :  { %v3311_v31 = vadd.f32 %v3310_v36, %v3309_v60  ;;  %v3493_v9 = vsel %vm2157_vm15, 1.0, %v4040_v20 }
 0x34c   :  { %v2031_v43 = vadd.s32 %v2030_v29, %v2028_v63  ;;  %3899 = vmatprep.mubr.msk.f32.mxu1 %vm749_vm2, %v3493_v9  ;;  %v3312_v54 = vsel %vm749_vm2, %v3493_v9, 0.0 }
 0x34d   :  { %v3313_v6 = vadd.f32 %v3312_v54, %v3311_v31  ;;  %v2012_v2 = vpop.xlane.xlu0 %2011  ;;  %3900 = vmatmul.mubr.msk.f32.gmra.mrb[60].mxu1 %vm749_vm2, %v3494_v17  ;;  %v3936_v54 = vld [vmem:[%s6773_s0 + $0x48] sm:$0xff] }
 0x34e   :  { %2096 = vst.msk [vmem:[%s6777_s4 + $0x1f8] sm:$0xff] %vm2032_vm5, %v2031_v43  ;;  %v2013_v62 = vcvt.f32.s32 %v2012_v2  ;;  %vm2160_vm1 = vcmp.eq.s32.totalorder %v7107_v59, %v2031_v43 }
 0x34f   :  { %v3315_v27 = vadd.f32 %v3314_v14, %v3313_v6  ;;  %v3496_v30 = vsel %vm2160_vm1, 1.0, %v4040_v20 }
 0x350   :  { %v2016_v5 = vadd.s32 %v2015_v4, %v2013_v62  ;;  %v3318_v40 = vsel %vm749_vm2, %v3496_v30, 0.0  ;;  %v3937_v62 = vld [vmem:[%s6773_s0 + $0x40] sm:$0xff] }
 0x352   :  { %2095 = vst.msk [vmem:[%s6777_s4 + $0x1f0] sm:$0xff] %vm2032_vm5, %v2016_v5  ;;  %vm2159_vm3 = vcmp.eq.s32.totalorder %v7107_v59, %v2016_v5  ;;  %vm3326_vm5 = vcmask 253952  }
 0x353   :  { %v3495_v44 = vsel %vm2159_vm3, 1.0, %v4040_v20  ;;  %v3928_v20 = vld [vmem:[%s6773_s0 + $0x8] sm:$0xff] }
 0x354   :  { %3902 = vmatprep.mubr.msk.f32.mxu1 %vm749_vm2, %v3495_v44  ;;  %v3316_v15 = vsel %vm749_vm2, %v3495_v44, 0.0 }
 0x355   :  { %v3317_v24 = vadd.f32 %v3316_v15, %v3315_v27  ;;  %3903 = vmatmul.mubr.msk.f32.gmra.mrb[62].mxu1 %vm749_vm2, %v3496_v30 }
 0x357   :  { %v3319_v23 = vadd.f32 %v3318_v40, %v3317_v24  ;;  %v3938_v40 = vld [vmem:[%s6773_s0 + $0x58] sm:$0xff] }
 0x359   :  { %v3320_v53 = vrot.slane %v3319_v23, 4 }
 0x35b   :  { %v3321_v51 = vadd.f32 %v3320_v53, %v3319_v23 }
 0x35d   :  { %v3322_v26 = vrot.slane %v3321_v51, 2 }
 0x35f   :  { %v3323_v55 = vadd.f32 %v3322_v26, %v3321_v51  ;;  %v3939_v26 = vld [vmem:[%s6773_s0 + $0x50] sm:$0xff] }
 0x361   :  { %v3324_v42 = vrot.slane %v3323_v55, 1 }
 0x363   :  { %v3325_v59 = vadd.f32 %v3324_v42, %v3323_v55 }
 0x365   :  { %3327 = vst.msk [vmem:[#allocation4] sm:$0x1] %vm3326_vm5, %v3325_v59 }
 0x39c   :  { %v3811_v10 = vpop.f32.mrb[0].mxu1 }
 0x39d   :  { %2867 = vst.msk [vmem:[%s6776_s3 + $0x8] sm:$0xff] %vm89_vm0, %v3811_v10  ;;  %v2931_v16 = vsub.f32 %v3811_v10, %v3928_v20  ;;  %v2547_v32 = vpop.f32.mrb[1].mxu1 }
 0x39e   :  { %2866 = vst.msk [vmem:[%s6776_s3] sm:$0xff] %vm89_vm0, %v2547_v32  ;;  %v2930_v0 = vsub.f32 %v2547_v32, %v3929_v34  ;;  %v3940_v34 = vld [vmem:[%s6773_s0 + $0x68] sm:$0xff] }
 0x39f   :  { %v2995_v38 = vmul.f32 %v2931_v16, %v2931_v16 }
 0x3a0   :  { %v2994_v41 = vmul.f32 %v2930_v0, %v2930_v0  ;;  %v3814_v19 = vpop.f32.mrb[2].mxu1 }
 0x3a1   :  { %v3059_v56 = vsel %vm89_vm0, %v2995_v38, 0.0  ;;  %2869 = vst.msk [vmem:[%s6776_s3 + $0x18] sm:$0xff] %vm89_vm0, %v3814_v19  ;;  %v2933_v50 = vsub.f32 %v3814_v19, %v3930_v28  ;;  %v2557_v21 = vpop.f32.mrb[3].mxu1  ;;  %v3941_v19 = vld [vmem:[%s6773_s0 + $0x60] sm:$0xff] }
 0x3a2   :  { %v3058_v45 = vsel %vm89_vm0, %v2994_v41, 0.0  ;;  %2868 = vst.msk [vmem:[%s6776_s3 + $0x10] sm:$0xff] %vm89_vm0, %v2557_v21  ;;  %v2932_v18 = vsub.f32 %v2557_v21, %v3931_v47 }
 0x3a3   :  { %v3060_v11 = vadd.f32 %v3059_v56, %v3058_v45  ;;  %v2997_v52 = vmul.f32 %v2933_v50, %v2933_v50 }
 0x3a4   :  { %v2996_v13 = vmul.f32 %v2932_v18, %v2932_v18  ;;  %v3817_v46 = vpop.f32.mrb[4].mxu1 }
 0x3a5   :  { %2871 = vst.msk [vmem:[%s6776_s3 + $0x28] sm:$0xff] %vm89_vm0, %v3817_v46  ;;  %v2935_v33 = vsub.f32 %v3817_v46, %v3932_v35  ;;  %v2567_v12 = vpop.f32.mrb[5].mxu1  ;;  %v3063_v8 = vsel %vm89_vm0, %v2997_v52, 0.0  ;;  %v3943_v35 = vld [vmem:[%s6773_s0 + $0x70] sm:$0xff] }
 0x3a6   :  { %v3061_v22 = vsel %vm89_vm0, %v2996_v13, 0.0  ;;  %2870 = vst.msk [vmem:[%s6776_s3 + $0x20] sm:$0xff] %vm89_vm0, %v2567_v12  ;;  %v2934_v39 = vsub.f32 %v2567_v12, %v3933_v58 }
 0x3a7   :  { %v3062_v25 = vadd.f32 %v3061_v22, %v3060_v11  ;;  %v2999_v37 = vmul.f32 %v2935_v33, %v2935_v33  ;;  %v3942_v11 = vld [vmem:[%s6773_s0 + $0x78] sm:$0xff] }
 0x3a8   :  { %v2998_v49 = vmul.f32 %v2934_v39, %v2934_v39  ;;  %v3820_v1 = vpop.f32.mrb[6].mxu1 }
 0x3a9   :  { %v3064_v57 = vadd.f32 %v3063_v8, %v3062_v25  ;;  %2873 = vst.msk [vmem:[%s6776_s3 + $0x38] sm:$0xff] %vm89_vm0, %v3820_v1  ;;  %v2937_v61 = vsub.f32 %v3820_v1, %v3934_v7  ;;  %v2577_v29 = vpop.f32.mrb[7].mxu1  ;;  %v3067_v63 = vsel %vm89_vm0, %v2999_v37, 0.0  ;;  %v3944_v37 = vld [vmem:[%s6773_s0 + $0x88] sm:$0xff]  ;;  %v3945_v7 = vld [vmem:[%s6773_s0 + $0x80] sm:$0xff] }
 0x3aa   :  { %v3065_v60 = vsel %vm89_vm0, %v2998_v49, 0.0  ;;  %2872 = vst.msk [vmem:[%s6776_s3 + $0x30] sm:$0xff] %vm89_vm0, %v2577_v29  ;;  %v2936_v3 = vsub.f32 %v2577_v29, %v3935_v48 }
 0x3ab   :  { %v3066_v36 = vadd.f32 %v3065_v60, %v3064_v57  ;;  %v3001_v31 = vmul.f32 %v2937_v61, %v2937_v61 }
 0x3ac   :  { %v3000_v9 = vmul.f32 %v2936_v3, %v2936_v3  ;;  %v3823_v17 = vpop.f32.mrb[8].mxu1 }
 0x3ad   :  { %v3068_v43 = vadd.f32 %v3067_v63, %v3066_v36  ;;  %2875 = vst.msk [vmem:[%s6776_s3 + $0x48] sm:$0xff] %vm89_vm0, %v3823_v17  ;;  %v2939_v6 = vsub.f32 %v3823_v17, %v3936_v54  ;;  %v2587_v2 = vpop.f32.mrb[9].mxu1  ;;  %v3071_v5 = vsel %vm89_vm0, %v3001_v31, 0.0 }
 0x3ae   :  { %v3069_v4 = vsel %vm89_vm0, %v3000_v9, 0.0  ;;  %2874 = vst.msk [vmem:[%s6776_s3 + $0x40] sm:$0xff] %vm89_vm0, %v2587_v2  ;;  %v2938_v14 = vsub.f32 %v2587_v2, %v3937_v62 }
 0x3af   :  { %v3070_v27 = vadd.f32 %v3069_v4, %v3068_v43  ;;  %v3003_v44 = vmul.f32 %v2939_v6, %v2939_v6 }
 0x3b0   :  { %v3002_v30 = vmul.f32 %v2938_v14, %v2938_v14  ;;  %v3826_v15 = vpop.f32.mrb[10].mxu1 }
 0x3b1   :  { %v3072_v24 = vadd.f32 %v3071_v5, %v3070_v27  ;;  %2877 = vst.msk [vmem:[%s6776_s3 + $0x58] sm:$0xff] %vm89_vm0, %v3826_v15  ;;  %v2941_v23 = vsub.f32 %v3826_v15, %v3938_v40  ;;  %v2597_v53 = vpop.f32.mrb[11].mxu1  ;;  %v3075_v59 = vsel %vm89_vm0, %v3003_v44, 0.0 }
 0x3b2   :  { %v3073_v51 = vsel %vm89_vm0, %v3002_v30, 0.0  ;;  %2876 = vst.msk [vmem:[%s6776_s3 + $0x50] sm:$0xff] %vm89_vm0, %v2597_v53  ;;  %v2940_v55 = vsub.f32 %v2597_v53, %v3939_v26 }
 0x3b3   :  { %v3074_v42 = vadd.f32 %v3073_v51, %v3072_v24  ;;  %v3005_v10 = vmul.f32 %v2941_v23, %v2941_v23 }
 0x3b4   :  { %v3004_v20 = vmul.f32 %v2940_v55, %v2940_v55  ;;  %v3829_v16 = vpop.f32.mrb[12].mxu1 }
 0x3b5   :  { %v3076_v32 = vadd.f32 %v3075_v59, %v3074_v42  ;;  %2879 = vst.msk [vmem:[%s6776_s3 + $0x68] sm:$0xff] %vm89_vm0, %v3829_v16  ;;  %v2943_v0 = vsub.f32 %v3829_v16, %v3940_v34  ;;  %v2607_v38 = vpop.f32.mrb[13].mxu1  ;;  %v3079_v50 = vsel %vm89_vm0, %v3005_v10, 0.0 }
 0x3b6   :  { %v3077_v41 = vsel %vm89_vm0, %v3004_v20, 0.0  ;;  %2878 = vst.msk [vmem:[%s6776_s3 + $0x60] sm:$0xff] %vm89_vm0, %v2607_v38  ;;  %v2942_v56 = vsub.f32 %v2607_v38, %v3941_v19 }
 0x3b7   :  { %v3078_v28 = vadd.f32 %v3077_v41, %v3076_v32  ;;  %v3007_v21 = vmul.f32 %v2943_v0, %v2943_v0 }
 0x3b8   :  { %v3006_v45 = vmul.f32 %v2942_v56, %v2942_v56  ;;  %v3832_v47 = vpop.f32.mrb[14].mxu1 }
 0x3b9   :  { %v3080_v18 = vadd.f32 %v3079_v50, %v3078_v28  ;;  %2881 = vst.msk [vmem:[%s6776_s3 + $0x78] sm:$0xff] %vm89_vm0, %v3832_v47  ;;  %v2945_v52 = vsub.f32 %v3832_v47, %v3942_v11  ;;  %v2617_v13 = vpop.f32.mrb[15].mxu1  ;;  %v3083_v22 = vsel %vm89_vm0, %v3007_v21, 0.0 }
 0x3ba   :  { %v3081_v46 = vsel %vm89_vm0, %v3006_v45, 0.0  ;;  %2880 = vst.msk [vmem:[%s6776_s3 + $0x70] sm:$0xff] %vm89_vm0, %v2617_v13  ;;  %v2944_v33 = vsub.f32 %v2617_v13, %v3943_v35 }
 0x3bb   :  { %v3082_v12 = vadd.f32 %v3081_v46, %v3080_v18  ;;  %v3009_v58 = vmul.f32 %v2945_v52, %v2945_v52 }
 0x3bc   :  { %v3008_v39 = vmul.f32 %v2944_v33, %v2944_v33  ;;  %v3835_v25 = vpop.f32.mrb[16].mxu1 }
 0x3bd   :  { %v3084_v8 = vadd.f32 %v3083_v22, %v3082_v12  ;;  %2883 = vst.msk [vmem:[%s6776_s3 + $0x88] sm:$0xff] %vm89_vm0, %v3835_v25  ;;  %v2947_v49 = vsub.f32 %v3835_v25, %v3944_v37  ;;  %v2627_v1 = vpop.f32.mrb[17].mxu1  ;;  %v3087_v60 = vsel %vm89_vm0, %v3009_v58, 0.0 }
 0x3be   :  { %v3085_v57 = vsel %vm89_vm0, %v3008_v39, 0.0  ;;  %2882 = vst.msk [vmem:[%s6776_s3 + $0x80] sm:$0xff] %vm89_vm0, %v2627_v1  ;;  %v2946_v61 = vsub.f32 %v2627_v1, %v3945_v7 }
 0x3bf   :  { %v3086_v29 = vadd.f32 %v3085_v57, %v3084_v8  ;;  %v3011_v48 = vmul.f32 %v2947_v49, %v2947_v49 }
 0x3c0   :  { %v3010_v3 = vmul.f32 %v2946_v61, %v2946_v61 }
 0x3c1   :  { %v3088_v36 = vadd.f32 %v3087_v60, %v3086_v29 }
 0x3c2   :  { %4003 = shalt.err (!%p4000_p4)
}
 0x3c3   :  { %s4004_s29 = scalar_lea.hbm %s6779_s6, 16 }
 0x3c4   :  { %p4005_p5 = scmp.ne.s32.totalorder %s6779_s6, %s4004_s29  ;;  %p4008_p6 = scmp.lt.u32.totalorder %s4004_s29, %s6779_s6 }
 0x3c6   :  { %p4010_p7 = pnand %p4008_p6, %p4005_p5 }
 0x3c8   :  { %4013 = shalt.err (!%p4010_p7)
}
 0x3c9   :  { %3351 = dma.vmem_to_hbm [thread:$0]  %s3349_s24, 16, %s6779_s6, [#allocation5]   ;;  %v3089_v63 = vsel %vm89_vm0, %v3010_v3, 0.0  ;;  %v3091_v9 = vsel %vm89_vm0, %v3011_v48, 0.0  ;;  %v3838_v17 = vpop.f32.mrb[18].mxu1  ;;  %v3946_v43 = vld [vmem:[%s6773_s0 + $0x98] sm:$0xff] }
 0x3ca   :  { %v3090_v31 = vadd.f32 %v3089_v63, %v3088_v36  ;;  %2885 = vst.msk [vmem:[%s6776_s3 + $0x98] sm:$0xff] %vm89_vm0, %v3838_v17  ;;  %v2949_v54 = vsub.f32 %v3838_v17, %v3946_v43  ;;  %v2637_v6 = vpop.f32.mrb[19].mxu1  ;;  %v3947_v4 = vld [vmem:[%s6773_s0 + $0x90] sm:$0xff]  ;;  %v3948_v24 = vld [vmem:[%s6773_s0 + $0xa8] sm:$0xff]  ;;  %v3949_v51 = vld [vmem:[%s6773_s0 + $0xa0] sm:$0xff]  ;;  %s4042_s24 = smov [#allocation2]  }
 0x3cb   :  { %2884 = vst.msk [vmem:[%s6776_s3 + $0x90] sm:$0xff] %vm89_vm0, %v2637_v6  ;;  %v2948_v62 = vsub.f32 %v2637_v6, %v3947_v4  ;;  %v3950_v32 = vld [vmem:[%s6773_s0 + $0xb8] sm:$0xff]  ;;  %v3951_v41 = vld [vmem:[%s6773_s0 + $0xb0] sm:$0xff]  ;;  %v3952_v21 = vld [vmem:[%s6773_s0 + $0xc8] sm:$0xff]  ;;  %s3338_s25 = sshll.u32 %s4042_s24, 4  ;;  %vm3191_vm2 = vcmask 516096   ;;  %s3339_s25 = int_to_ptr.vmem [resolvable:$true] %s3338_s25 }
 0x3cc   :  { %v3092_v2 = vadd.f32 %v3091_v9, %v3090_v31  ;;  %v3013_v14 = vmul.f32 %v2949_v54, %v2949_v54  ;;  %v3841_v15 = vpop.f32.mrb[20].mxu1  ;;  %v3953_v11 = vld [vmem:[%s6773_s0 + $0xc0] sm:$0xff]  ;;  %v3954_v58 = vld [vmem:[%s6773_s0 + $0xd8] sm:$0xff]  ;;  %v3955_v37 = vld [vmem:[%s6773_s0 + $0xd0] sm:$0xff]  ;;  %p4019_p9 = scmp.lt.s32.totalorder %s3339_s25, %s3339_s25 }
 0x3cd   :  { %v3012_v27 = vmul.f32 %v2948_v62, %v2948_v62  ;;  %2887 = vst.msk [vmem:[%s6776_s3 + $0xa8] sm:$0xff] %vm89_vm0, %v3841_v15  ;;  %v2951_v40 = vsub.f32 %v3841_v15, %v3948_v24  ;;  %v2647_v23 = vpop.f32.mrb[21].mxu1  ;;  %v3956_v48 = vld [vmem:[%s6773_s0 + $0xe8] sm:$0xff]  ;;  %v3957_v31 = vld [vmem:[%s6773_s0 + $0xe0] sm:$0xff]  ;;  %v3958_v62 = vld [vmem:[%s6773_s0 + $0xf8] sm:$0xff] }
 0x3ce   :  { %v3095_v30 = vsel %vm89_vm0, %v3013_v14, 0.0  ;;  %2886 = vst.msk [vmem:[%s6776_s3 + $0xa0] sm:$0xff] %vm89_vm0, %v2647_v23  ;;  %v2950_v26 = vsub.f32 %v2647_v23, %v3949_v51 }
 0x3cf   :  { %v3093_v5 = vsel %vm89_vm0, %v3012_v27, 0.0  ;;  %v3015_v55 = vmul.f32 %v2951_v40, %v2951_v40 }
 0x3d0   :  { %v3094_v44 = vadd.f32 %v3093_v5, %v3092_v2  ;;  %v3014_v42 = vmul.f32 %v2950_v26, %v2950_v26  ;;  %v3960_v26 = vld [vmem:[%s6773_s0 + $0x108] sm:$0xff] }
 0x3d1   :  { %v3099_v20 = vsel %vm89_vm0, %v3015_v55, 0.0 }
 0x3d2   :  { %v3096_v53 = vadd.f32 %v3095_v30, %v3094_v44  ;;  %v3097_v59 = vsel %vm89_vm0, %v3014_v42, 0.0  ;;  %v3959_v44 = vld [vmem:[%s6773_s0 + $0xf0] sm:$0xff] }
 0x3d4   :  { %v3098_v10 = vadd.f32 %v3097_v59, %v3096_v53  ;;  %v3844_v16 = vpop.f32.mrb[22].mxu1 }
 0x3d5   :  { %2889 = vst.msk [vmem:[%s6776_s3 + $0xb8] sm:$0xff] %vm89_vm0, %v3844_v16  ;;  %v2953_v34 = vsub.f32 %v3844_v16, %v3950_v32  ;;  %v2657_v0 = vpop.f32.mrb[23].mxu1 }
 0x3d6   :  { %v3100_v38 = vadd.f32 %v3099_v20, %v3098_v10  ;;  %2888 = vst.msk [vmem:[%s6776_s3 + $0xb0] sm:$0xff] %vm89_vm0, %v2657_v0  ;;  %v2952_v19 = vsub.f32 %v2657_v0, %v3951_v41  ;;  %v3961_v10 = vld [vmem:[%s6773_s0 + $0x100] sm:$0xff] }
 0x3d7   :  { %v3017_v56 = vmul.f32 %v2953_v34, %v2953_v34 }
 0x3d8   :  { %v3016_v28 = vmul.f32 %v2952_v19, %v2952_v19  ;;  %v3847_v50 = vpop.f32.mrb[24].mxu1  ;;  %v3962_v19 = vld [vmem:[%s6773_s0 + $0x118] sm:$0xff] }
 0x3d9   :  { %2891 = vst.msk [vmem:[%s6776_s3 + $0xc8] sm:$0xff] %vm89_vm0, %v3847_v50  ;;  %v2955_v45 = vsub.f32 %v3847_v50, %v3952_v21  ;;  %v2667_v47 = vpop.f32.mrb[25].mxu1  ;;  %v3103_v46 = vsel %vm89_vm0, %v3017_v56, 0.0  ;;  %v3963_v21 = vld [vmem:[%s6773_s0 + $0x110] sm:$0xff] }
 0x3da   :  { %v3101_v18 = vsel %vm89_vm0, %v3016_v28, 0.0  ;;  %2890 = vst.msk [vmem:[%s6776_s3 + $0xc0] sm:$0xff] %vm89_vm0, %v2667_v47  ;;  %v2954_v52 = vsub.f32 %v2667_v47, %v3953_v11 }
 0x3db   :  { %v3102_v13 = vadd.f32 %v3101_v18, %v3100_v38  ;;  %v3019_v35 = vmul.f32 %v2955_v45, %v2955_v45 }
 0x3dc   :  { %v3018_v33 = vmul.f32 %v2954_v52, %v2954_v52  ;;  %v3850_v12 = vpop.f32.mrb[26].mxu1 }
 0x3dd   :  { %v3104_v22 = vadd.f32 %v3103_v46, %v3102_v13  ;;  %2893 = vst.msk [vmem:[%s6776_s3 + $0xd8] sm:$0xff] %vm89_vm0, %v3850_v12  ;;  %v2957_v39 = vsub.f32 %v3850_v12, %v3954_v58  ;;  %v2677_v25 = vpop.f32.mrb[27].mxu1  ;;  %v3107_v57 = vsel %vm89_vm0, %v3019_v35, 0.0  ;;  %v3964_v35 = vld [vmem:[%s6773_s0 + $0x128] sm:$0xff]  ;;  %v3965_v58 = vld [vmem:[%s6773_s0 + $0x120] sm:$0xff] }
 0x3de   :  { %v3105_v8 = vsel %vm89_vm0, %v3018_v33, 0.0  ;;  %2892 = vst.msk [vmem:[%s6776_s3 + $0xd0] sm:$0xff] %vm89_vm0, %v2677_v25  ;;  %v2956_v49 = vsub.f32 %v2677_v25, %v3955_v37 }
 0x3df   :  { %v3106_v1 = vadd.f32 %v3105_v8, %v3104_v22  ;;  %v3021_v7 = vmul.f32 %v2957_v39, %v2957_v39 }
 0x3e0   :  { %v3020_v61 = vmul.f32 %v2956_v49, %v2956_v49  ;;  %v3853_v29 = vpop.f32.mrb[28].mxu1 }
 0x3e1   :  { %v3108_v60 = vadd.f32 %v3107_v57, %v3106_v1  ;;  %2895 = vst.msk [vmem:[%s6776_s3 + $0xe8] sm:$0xff] %vm89_vm0, %v3853_v29  ;;  %v2959_v3 = vsub.f32 %v3853_v29, %v3956_v48  ;;  %v2687_v36 = vpop.f32.mrb[29].mxu1  ;;  %v3111_v43 = vsel %vm89_vm0, %v3021_v7, 0.0  ;;  %v3966_v7 = vld [vmem:[%s6773_s0 + $0x138] sm:$0xff]  ;;  %v3967_v48 = vld [vmem:[%s6773_s0 + $0x130] sm:$0xff] }
 0x3e2   :  { %v3109_v63 = vsel %vm89_vm0, %v3020_v61, 0.0  ;;  %2894 = vst.msk [vmem:[%s6776_s3 + $0xe0] sm:$0xff] %vm89_vm0, %v2687_v36  ;;  %v2958_v9 = vsub.f32 %v2687_v36, %v3957_v31 }
 0x3e3   :  { %v3110_v17 = vadd.f32 %v3109_v63, %v3108_v60  ;;  %v3023_v54 = vmul.f32 %v2959_v3, %v2959_v3 }
 0x3e4   :  { %v3022_v6 = vmul.f32 %v2958_v9, %v2958_v9  ;;  %v3856_v2 = vpop.f32.mrb[30].mxu1 }
 0x3e5   :  { %v3112_v4 = vadd.f32 %v3111_v43, %v3110_v17  ;;  %2897 = vst.msk [vmem:[%s6776_s3 + $0xf8] sm:$0xff] %vm89_vm0, %v3856_v2  ;;  %v2961_v14 = vsub.f32 %v3856_v2, %v3958_v62  ;;  %v2697_v27 = vpop.f32.mrb[31].mxu1  ;;  %v3115_v24 = vsel %vm89_vm0, %v3023_v54, 0.0  ;;  %v3968_v54 = vld [vmem:[%s6773_s0 + $0x148] sm:$0xff]  ;;  %v3969_v62 = vld [vmem:[%s6773_s0 + $0x140] sm:$0xff] }
 0x3e6   :  { %v3113_v5 = vsel %vm89_vm0, %v3022_v6, 0.0  ;;  %2896 = vst.msk [vmem:[%s6776_s3 + $0xf0] sm:$0xff] %vm89_vm0, %v2697_v27  ;;  %v2960_v30 = vsub.f32 %v2697_v27, %v3959_v44 }
 0x3e7   :  { %v3114_v15 = vadd.f32 %v3113_v5, %v3112_v4  ;;  %v3025_v40 = vmul.f32 %v2961_v14, %v2961_v14 }
 0x3e8   :  { %v3024_v23 = vmul.f32 %v2960_v30, %v2960_v30  ;;  %v3859_v53 = vpop.f32.mrb[32].mxu1 }
 0x3e9   :  { %v3116_v51 = vadd.f32 %v3115_v24, %v3114_v15  ;;  %2899 = vst.msk [vmem:[%s6776_s3 + $0x108] sm:$0xff] %vm89_vm0, %v3859_v53  ;;  %v2963_v55 = vsub.f32 %v3859_v53, %v3960_v26  ;;  %v2707_v42 = vpop.f32.mrb[33].mxu1  ;;  %v3119_v32 = vsel %vm89_vm0, %v3025_v40, 0.0  ;;  %v3970_v40 = vld [vmem:[%s6773_s0 + $0x158] sm:$0xff]  ;;  %v3971_v26 = vld [vmem:[%s6773_s0 + $0x150] sm:$0xff] }
 0x3ea   :  { %v3117_v59 = vsel %vm89_vm0, %v3024_v23, 0.0  ;;  %2898 = vst.msk [vmem:[%s6776_s3 + $0x100] sm:$0xff] %vm89_vm0, %v2707_v42  ;;  %v2962_v20 = vsub.f32 %v2707_v42, %v3961_v10 }
 0x3eb   :  { %v3118_v16 = vadd.f32 %v3117_v59, %v3116_v51  ;;  %v3027_v34 = vmul.f32 %v2963_v55, %v2963_v55 }
 0x3ec   :  { %v3026_v0 = vmul.f32 %v2962_v20, %v2962_v20  ;;  %v3862_v38 = vpop.f32.mrb[34].mxu1 }
 0x3ed   :  { %v3120_v41 = vadd.f32 %v3119_v32, %v3118_v16  ;;  %2901 = vst.msk [vmem:[%s6776_s3 + $0x118] sm:$0xff] %vm89_vm0, %v3862_v38  ;;  %v2965_v56 = vsub.f32 %v3862_v38, %v3962_v19  ;;  %v2717_v28 = vpop.f32.mrb[35].mxu1  ;;  %v3123_v18 = vsel %vm89_vm0, %v3027_v34, 0.0  ;;  %v3972_v34 = vld [vmem:[%s6773_s0 + $0x168] sm:$0xff]  ;;  %v3973_v19 = vld [vmem:[%s6773_s0 + $0x160] sm:$0xff] }
 0x3ee   :  { %v3121_v50 = vsel %vm89_vm0, %v3026_v0, 0.0  ;;  %2900 = vst.msk [vmem:[%s6776_s3 + $0x110] sm:$0xff] %vm89_vm0, %v2717_v28  ;;  %v2964_v45 = vsub.f32 %v2717_v28, %v3963_v21 }
 0x3ef   :  { %v3122_v47 = vadd.f32 %v3121_v50, %v3120_v41  ;;  %v3029_v11 = vmul.f32 %v2965_v56, %v2965_v56 }
 0x3f0   :  { %v3028_v52 = vmul.f32 %v2964_v45, %v2964_v45  ;;  %v3865_v13 = vpop.f32.mrb[36].mxu1 }
 0x3f1   :  { %v3124_v46 = vadd.f32 %v3123_v18, %v3122_v47  ;;  %2903 = vst.msk [vmem:[%s6776_s3 + $0x128] sm:$0xff] %vm89_vm0, %v3865_v13  ;;  %v2967_v33 = vsub.f32 %v3865_v13, %v3964_v35  ;;  %v2727_v12 = vpop.f32.mrb[37].mxu1  ;;  %v3127_v8 = vsel %vm89_vm0, %v3029_v11, 0.0  ;;  %v3974_v11 = vld [vmem:[%s6773_s0 + $0x178] sm:$0xff]  ;;  %v3975_v35 = vld [vmem:[%s6773_s0 + $0x170] sm:$0xff] }
 0x3f2   :  { %v3125_v22 = vsel %vm89_vm0, %v3028_v52, 0.0  ;;  %2902 = vst.msk [vmem:[%s6776_s3 + $0x120] sm:$0xff] %vm89_vm0, %v2727_v12  ;;  %v2966_v39 = vsub.f32 %v2727_v12, %v3965_v58 }
 0x3f3   :  { %v3126_v25 = vadd.f32 %v3125_v22, %v3124_v46  ;;  %v3031_v37 = vmul.f32 %v2967_v33, %v2967_v33 }
 0x3f4   :  { %v3030_v49 = vmul.f32 %v2966_v39, %v2966_v39  ;;  %v3868_v1 = vpop.f32.mrb[38].mxu1 }
 0x3f5   :  { %v3128_v57 = vadd.f32 %v3127_v8, %v3126_v25  ;;  %2905 = vst.msk [vmem:[%s6776_s3 + $0x138] sm:$0xff] %vm89_vm0, %v3868_v1  ;;  %v2969_v61 = vsub.f32 %v3868_v1, %v3966_v7  ;;  %v2737_v29 = vpop.f32.mrb[39].mxu1  ;;  %v3131_v63 = vsel %vm89_vm0, %v3031_v37, 0.0  ;;  %v3976_v37 = vld [vmem:[%s6773_s0 + $0x188] sm:$0xff]  ;;  %v3977_v7 = vld [vmem:[%s6773_s0 + $0x180] sm:$0xff] }
 0x3f6   :  { %v3129_v60 = vsel %vm89_vm0, %v3030_v49, 0.0  ;;  %2904 = vst.msk [vmem:[%s6776_s3 + $0x130] sm:$0xff] %vm89_vm0, %v2737_v29  ;;  %v2968_v3 = vsub.f32 %v2737_v29, %v3967_v48 }
 0x3f7   :  { %v3130_v36 = vadd.f32 %v3129_v60, %v3128_v57  ;;  %v3033_v31 = vmul.f32 %v2969_v61, %v2969_v61 }
 0x3f8   :  { %v3032_v9 = vmul.f32 %v2968_v3, %v2968_v3  ;;  %v3871_v17 = vpop.f32.mrb[40].mxu1 }
 0x3f9   :  { %v3132_v43 = vadd.f32 %v3131_v63, %v3130_v36  ;;  %2907 = vst.msk [vmem:[%s6776_s3 + $0x148] sm:$0xff] %vm89_vm0, %v3871_v17  ;;  %v2971_v6 = vsub.f32 %v3871_v17, %v3968_v54  ;;  %v2747_v2 = vpop.f32.mrb[41].mxu1  ;;  %v3135_v5 = vsel %vm89_vm0, %v3033_v31, 0.0  ;;  %v3978_v31 = vld [vmem:[%s6773_s0 + $0x198] sm:$0xff]  ;;  %v3979_v54 = vld [vmem:[%s6773_s0 + $0x190] sm:$0xff] }
 0x3fa   :  { %v3133_v4 = vsel %vm89_vm0, %v3032_v9, 0.0  ;;  %2906 = vst.msk [vmem:[%s6776_s3 + $0x140] sm:$0xff] %vm89_vm0, %v2747_v2  ;;  %v2970_v14 = vsub.f32 %v2747_v2, %v3969_v62 }
 0x3fb   :  { %v3134_v27 = vadd.f32 %v3133_v4, %v3132_v43  ;;  %v3035_v44 = vmul.f32 %v2971_v6, %v2971_v6 }
 0x3fc   :  { %v3034_v30 = vmul.f32 %v2970_v14, %v2970_v14  ;;  %v3874_v15 = vpop.f32.mrb[42].mxu1 }
 0x3fd   :  { %v3136_v24 = vadd.f32 %v3135_v5, %v3134_v27  ;;  %2909 = vst.msk [vmem:[%s6776_s3 + $0x158] sm:$0xff] %vm89_vm0, %v3874_v15  ;;  %v2973_v23 = vsub.f32 %v3874_v15, %v3970_v40  ;;  %v2757_v53 = vpop.f32.mrb[43].mxu1  ;;  %v3139_v59 = vsel %vm89_vm0, %v3035_v44, 0.0  ;;  %v3980_v44 = vld [vmem:[%s6773_s0 + $0x1a8] sm:$0xff]  ;;  %v3981_v40 = vld [vmem:[%s6773_s0 + $0x1a0] sm:$0xff] }
 0x3fe   :  { %v3137_v51 = vsel %vm89_vm0, %v3034_v30, 0.0  ;;  %2908 = vst.msk [vmem:[%s6776_s3 + $0x150] sm:$0xff] %vm89_vm0, %v2757_v53  ;;  %v2972_v55 = vsub.f32 %v2757_v53, %v3971_v26 }
 0x3ff   :  { %v3138_v42 = vadd.f32 %v3137_v51, %v3136_v24  ;;  %v3037_v10 = vmul.f32 %v2973_v23, %v2973_v23 }
 0x400   :  { %v3036_v20 = vmul.f32 %v2972_v55, %v2972_v55  ;;  %v3877_v16 = vpop.f32.mrb[44].mxu1 }
 0x401   :  { %v3140_v32 = vadd.f32 %v3139_v59, %v3138_v42  ;;  %2911 = vst.msk [vmem:[%s6776_s3 + $0x168] sm:$0xff] %vm89_vm0, %v3877_v16  ;;  %v2975_v0 = vsub.f32 %v3877_v16, %v3972_v34  ;;  %v2767_v38 = vpop.f32.mrb[45].mxu1  ;;  %v3143_v50 = vsel %vm89_vm0, %v3037_v10, 0.0  ;;  %v3982_v10 = vld [vmem:[%s6773_s0 + $0x1b8] sm:$0xff]  ;;  %v3983_v34 = vld [vmem:[%s6773_s0 + $0x1b0] sm:$0xff] }
 0x402   :  { %v3141_v41 = vsel %vm89_vm0, %v3036_v20, 0.0  ;;  %2910 = vst.msk [vmem:[%s6776_s3 + $0x160] sm:$0xff] %vm89_vm0, %v2767_v38  ;;  %v2974_v56 = vsub.f32 %v2767_v38, %v3973_v19 }
 0x403   :  { %v3142_v28 = vadd.f32 %v3141_v41, %v3140_v32  ;;  %v3039_v21 = vmul.f32 %v2975_v0, %v2975_v0 }
 0x404   :  { %v3038_v45 = vmul.f32 %v2974_v56, %v2974_v56  ;;  %v3880_v47 = vpop.f32.mrb[46].mxu1 }
 0x405   :  { %v3144_v18 = vadd.f32 %v3143_v50, %v3142_v28  ;;  %2913 = vst.msk [vmem:[%s6776_s3 + $0x178] sm:$0xff] %vm89_vm0, %v3880_v47  ;;  %v2977_v52 = vsub.f32 %v3880_v47, %v3974_v11  ;;  %v2777_v13 = vpop.f32.mrb[47].mxu1  ;;  %v3147_v22 = vsel %vm89_vm0, %v3039_v21, 0.0  ;;  %v3984_v21 = vld [vmem:[%s6773_s0 + $0x1c8] sm:$0xff]  ;;  %v3985_v11 = vld [vmem:[%s6773_s0 + $0x1c0] sm:$0xff] }
 0x406   :  { %v3145_v46 = vsel %vm89_vm0, %v3038_v45, 0.0  ;;  %2912 = vst.msk [vmem:[%s6776_s3 + $0x170] sm:$0xff] %vm89_vm0, %v2777_v13  ;;  %v2976_v33 = vsub.f32 %v2777_v13, %v3975_v35 }
 0x407   :  { %v3146_v12 = vadd.f32 %v3145_v46, %v3144_v18  ;;  %v3041_v58 = vmul.f32 %v2977_v52, %v2977_v52 }
 0x408   :  { %v3040_v39 = vmul.f32 %v2976_v33, %v2976_v33  ;;  %v3883_v25 = vpop.f32.mrb[48].mxu1 }
 0x409   :  { %v3148_v8 = vadd.f32 %v3147_v22, %v3146_v12  ;;  %2915 = vst.msk [vmem:[%s6776_s3 + $0x188] sm:$0xff] %vm89_vm0, %v3883_v25  ;;  %v2979_v49 = vsub.f32 %v3883_v25, %v3976_v37  ;;  %v2787_v1 = vpop.f32.mrb[49].mxu1  ;;  %v3151_v60 = vsel %vm89_vm0, %v3041_v58, 0.0  ;;  %v3986_v58 = vld [vmem:[%s6773_s0 + $0x1d8] sm:$0xff]  ;;  %v3987_v37 = vld [vmem:[%s6773_s0 + $0x1d0] sm:$0xff] }
 0x40a   :  { %v3149_v57 = vsel %vm89_vm0, %v3040_v39, 0.0  ;;  %2914 = vst.msk [vmem:[%s6776_s3 + $0x180] sm:$0xff] %vm89_vm0, %v2787_v1  ;;  %v2978_v61 = vsub.f32 %v2787_v1, %v3977_v7 }
 0x40b   :  { %v3150_v29 = vadd.f32 %v3149_v57, %v3148_v8  ;;  %v3043_v48 = vmul.f32 %v2979_v49, %v2979_v49 }
 0x40c   :  { %v3042_v3 = vmul.f32 %v2978_v61, %v2978_v61  ;;  %v3886_v36 = vpop.f32.mrb[50].mxu1 }
 0x40d   :  { %v3152_v63 = vadd.f32 %v3151_v60, %v3150_v29  ;;  %2917 = vst.msk [vmem:[%s6776_s3 + $0x198] sm:$0xff] %vm89_vm0, %v3886_v36  ;;  %v2981_v9 = vsub.f32 %v3886_v36, %v3978_v31  ;;  %v2797_v17 = vpop.f32.mrb[51].mxu1  ;;  %v3155_v4 = vsel %vm89_vm0, %v3043_v48, 0.0  ;;  %v3988_v48 = vld [vmem:[%s6773_s0 + $0x1e8] sm:$0xff]  ;;  %v3989_v31 = vld [vmem:[%s6773_s0 + $0x1e0] sm:$0xff] }
 0x40e   :  { %v3153_v43 = vsel %vm89_vm0, %v3042_v3, 0.0  ;;  %2916 = vst.msk [vmem:[%s6776_s3 + $0x190] sm:$0xff] %vm89_vm0, %v2797_v17  ;;  %v2980_v6 = vsub.f32 %v2797_v17, %v3979_v54 }
 0x40f   :  { %v3154_v2 = vadd.f32 %v3153_v43, %v3152_v63  ;;  %v3045_v62 = vmul.f32 %v2981_v9, %v2981_v9 }
 0x410   :  { %v3044_v14 = vmul.f32 %v2980_v6, %v2980_v6  ;;  %v3889_v27 = vpop.f32.mrb[52].mxu1 }
 0x411   :  { %v3156_v5 = vadd.f32 %v3155_v4, %v3154_v2  ;;  %2919 = vst.msk [vmem:[%s6776_s3 + $0x1a8] sm:$0xff] %vm89_vm0, %v3889_v27  ;;  %v2983_v30 = vsub.f32 %v3889_v27, %v3980_v44  ;;  %v2807_v15 = vpop.f32.mrb[53].mxu1  ;;  %v3159_v51 = vsel %vm89_vm0, %v3045_v62, 0.0 }
 0x412   :  { %v3157_v24 = vsel %vm89_vm0, %v3044_v14, 0.0  ;;  %2918 = vst.msk [vmem:[%s6776_s3 + $0x1a0] sm:$0xff] %vm89_vm0, %v2807_v15  ;;  %v2982_v23 = vsub.f32 %v2807_v15, %v3981_v40 }
 0x413   :  { %v3158_v53 = vadd.f32 %v3157_v24, %v3156_v5  ;;  %v3047_v26 = vmul.f32 %v2983_v30, %v2983_v30  ;;  %v3990_v5 = vld [vmem:[%s6773_s0 + $0x1f8] sm:$0xff]  ;;  %v3991_v24 = vld [vmem:[%s6773_s0 + $0x1f0] sm:$0xff]  ;;  %s4014_s0 = scalar_lea.vmem %s3339_s25, 16 }
 0x414   :  { %v3046_v55 = vmul.f32 %v2982_v23, %v2982_v23  ;;  %v3892_v42 = vpop.f32.mrb[54].mxu1  ;;  %p4015_p8 = scmp.ne.s32.totalorder %s3339_s25, %s4014_s0 }
 0x415   :  { %v3160_v59 = vadd.f32 %v3159_v51, %v3158_v53  ;;  %2921 = vst.msk [vmem:[%s6776_s3 + $0x1b8] sm:$0xff] %vm89_vm0, %v3892_v42  ;;  %v2985_v20 = vsub.f32 %v3892_v42, %v3982_v10  ;;  %v2817_v16 = vpop.f32.mrb[55].mxu1  ;;  %v3163_v41 = vsel %vm89_vm0, %v3047_v26, 0.0 }
 0x416   :  { %v3161_v32 = vsel %vm89_vm0, %v3046_v55, 0.0  ;;  %2920 = vst.msk [vmem:[%s6776_s3 + $0x1b0] sm:$0xff] %vm89_vm0, %v2817_v16  ;;  %v2984_v0 = vsub.f32 %v2817_v16, %v3983_v34 }
 0x417   :  { %v3162_v38 = vadd.f32 %v3161_v32, %v3160_v59  ;;  %v3049_v19 = vmul.f32 %v2985_v20, %v2985_v20 }
 0x418   :  { %v3048_v56 = vmul.f32 %v2984_v0, %v2984_v0  ;;  %v3895_v28 = vpop.f32.mrb[56].mxu1 }
 0x419   :  { %v3164_v50 = vadd.f32 %v3163_v41, %v3162_v38  ;;  %2923 = vst.msk [vmem:[%s6776_s3 + $0x1c8] sm:$0xff] %vm89_vm0, %v3895_v28  ;;  %v2987_v45 = vsub.f32 %v3895_v28, %v3984_v21  ;;  %v2827_v47 = vpop.f32.mrb[57].mxu1  ;;  %v3167_v46 = vsel %vm89_vm0, %v3049_v19, 0.0 }
 0x41a   :  { %v3165_v18 = vsel %vm89_vm0, %v3048_v56, 0.0  ;;  %2922 = vst.msk [vmem:[%s6776_s3 + $0x1c0] sm:$0xff] %vm89_vm0, %v2827_v47  ;;  %v2986_v52 = vsub.f32 %v2827_v47, %v3985_v11 }
 0x41b   :  { %v3166_v13 = vadd.f32 %v3165_v18, %v3164_v50  ;;  %v3051_v35 = vmul.f32 %v2987_v45, %v2987_v45 }
 0x41c   :  { %v3050_v33 = vmul.f32 %v2986_v52, %v2986_v52  ;;  %v3898_v12 = vpop.f32.mrb[58].mxu1 }
 0x41d   :  { %v3168_v22 = vadd.f32 %v3167_v46, %v3166_v13  ;;  %2925 = vst.msk [vmem:[%s6776_s3 + $0x1d8] sm:$0xff] %vm89_vm0, %v3898_v12  ;;  %v2989_v39 = vsub.f32 %v3898_v12, %v3986_v58  ;;  %v2837_v25 = vpop.f32.mrb[59].mxu1  ;;  %v3171_v57 = vsel %vm89_vm0, %v3051_v35, 0.0 }
 0x41e   :  { %v3169_v8 = vsel %vm89_vm0, %v3050_v33, 0.0  ;;  %2924 = vst.msk [vmem:[%s6776_s3 + $0x1d0] sm:$0xff] %vm89_vm0, %v2837_v25  ;;  %v2988_v49 = vsub.f32 %v2837_v25, %v3987_v37 }
 0x41f   :  { %v3170_v1 = vadd.f32 %v3169_v8, %v3168_v22  ;;  %v3053_v7 = vmul.f32 %v2989_v39, %v2989_v39 }
 0x420   :  { %v3052_v61 = vmul.f32 %v2988_v49, %v2988_v49  ;;  %v3901_v29 = vpop.f32.mrb[60].mxu1 }
 0x421   :  { %v3172_v60 = vadd.f32 %v3171_v57, %v3170_v1  ;;  %2927 = vst.msk [vmem:[%s6776_s3 + $0x1e8] sm:$0xff] %vm89_vm0, %v3901_v29  ;;  %v2991_v3 = vsub.f32 %v3901_v29, %v3988_v48  ;;  %v2847_v36 = vpop.f32.mrb[61].mxu1  ;;  %v3175_v43 = vsel %vm89_vm0, %v3053_v7, 0.0 }
 0x422   :  { %v3173_v63 = vsel %vm89_vm0, %v3052_v61, 0.0  ;;  %2926 = vst.msk [vmem:[%s6776_s3 + $0x1e0] sm:$0xff] %vm89_vm0, %v2847_v36  ;;  %v2990_v9 = vsub.f32 %v2847_v36, %v3989_v31 }
 0x423   :  { %v3174_v17 = vadd.f32 %v3173_v63, %v3172_v60  ;;  %v3055_v54 = vmul.f32 %v2991_v3, %v2991_v3 }
 0x424   :  { %v3054_v6 = vmul.f32 %v2990_v9, %v2990_v9 }
 0x425   :  { %v3176_v2 = vadd.f32 %v3175_v43, %v3174_v17  ;;  %v3179_v14 = vsel %vm89_vm0, %v3055_v54, 0.0 }
 0x426   :  { %v3177_v4 = vsel %vm89_vm0, %v3054_v6, 0.0 }
 0x427   :  { %v3178_v62 = vadd.f32 %v3177_v4, %v3176_v2 }
 0x428   :  { %v3904_v27 = vpop.f32.mrb[62].mxu1 }
 0x429   :  { %2929 = vst.msk [vmem:[%s6776_s3 + $0x1f8] sm:$0xff] %vm89_vm0, %v3904_v27  ;;  %v2993_v44 = vsub.f32 %v3904_v27, %v3990_v5  ;;  %v2857_v30 = vpop.f32.mrb[63].mxu1  ;;  %v3180_v15 = vadd.f32 %v3179_v14, %v3178_v62 }
 0x42a   :  { %2928 = vst.msk [vmem:[%s6776_s3 + $0x1f0] sm:$0xff] %vm89_vm0, %v2857_v30  ;;  %v2992_v40 = vsub.f32 %v2857_v30, %v3991_v24  ;;  %s4018_s3 = scalar_lea.vmem %s3339_s25, 32 }
 0x42b   :  { %v3057_v23 = vmul.f32 %v2993_v44, %v2993_v44  ;;  %p4020_p10 = scmp.lt.s32.totalorder %s4018_s3, %s4014_s0 }
 0x42c   :  { %v3056_v53 = vmul.f32 %v2992_v40, %v2992_v40 }
 0x42d   :  { %v3183_v55 = vsel %vm89_vm0, %v3057_v23, 0.0  ;;  %p4021_p11 = por %p4020_p10, %p4019_p9 }
 0x42e   :  { %v3181_v51 = vsel %vm89_vm0, %v3056_v53, 0.0 }
 0x42f   :  { %v3182_v26 = vadd.f32 %v3181_v51, %v3180_v15  ;;  %p4022_p12 = pnand %p4021_p11, %p4015_p8 }
 0x431   :  { %v3184_v42 = vadd.f32 %v3183_v55, %v3182_v26 }
 0x433   :  { %v3185_v59 = vrot.slane %v3184_v42, 4 }
 0x435   :  { %v3186_v10 = vadd.f32 %v3185_v59, %v3184_v42 }
 0x437   :  { %v3187_v20 = vrot.slane %v3186_v10, 2 }
 0x439   :  { %v3188_v16 = vadd.f32 %v3187_v20, %v3186_v10 }
 0x43b   :  { %v3189_v32 = vrot.slane %v3188_v16, 1 }
 0x43d   :  { %v3190_v34 = vadd.f32 %v3189_v32, %v3188_v16 }
 0x43f   :  { %3192 = vst.msk [vmem:[#allocation2] sm:$0x1] %vm3191_vm2, %v3190_v34 }
 0x440   :  { %4025 = shalt.err (!%p4022_p12)
}
 0x441   :  { %s4026_s28 = scalar_lea.hbm %s6778_s5, 16 }
 0x442   :  { %p4027_p13 = scmp.ne.s32.totalorder %s6778_s5, %s4026_s28  ;;  %p4030_p0 = scmp.lt.u32.totalorder %s4026_s28, %s6778_s5 }
 0x444   :  { %p4032_p1 = pnand %p4030_p0, %p4027_p13 }
 0x446   :  { %4035 = shalt.err (!%p4032_p1)
}
 0x447   :  { %3341 = dma.vmem_to_hbm [thread:$0]  %s3339_s25, 16, %s6778_s5, [#allocation3]  }
 0x448   :  { %4036 = dma.done.wait [#allocation3], 16  }
 0x449   :  { %4037 = vsyncadd [#allocation3], 4294967280 }
 0x44a   :  { %4038 = dma.done.wait [#allocation5], 16  }
 0x44b   :  { %4039 = vsyncadd [#allocation5], 4294967280 }
 0x44c   :  { %3362 = vsyncpa [#allocation3], 1 }
 0x44d   :  { %3363 = vsyncpa [#allocation5], 1 }

</bundles_post_ra>
